<compile_context>
chip_gen: v7x
topology: tpu7x:2x2x1
jax: 0.10.0
libtpu: 0.0.40
codegen_flags: <defaults>
</compile_context>

<pallas_src>
import functools

import jax
import jax.numpy as jnp
from jax import lax
from jax.experimental import pallas as pl
from jax.experimental.pallas import tpu as pltpu

VMEM_SPEC = pl.BlockSpec(memory_space=pltpu.MemorySpace.VMEM)
# jnp.float32 for exact-f32 matmuls; bf16 is the MXU-native fast path.
MXU_DTYPE = jnp.bfloat16


# ----------------------------------------------------------------------------
# Fused whole-forward kernel
# ----------------------------------------------------------------------------
def _make_fused_kernel(n_layers, num_emb):
    def kernel(*refs):
        it = iter(refs)
        # ---- inputs ----
        idx_ref = next(it)        # [S*B, num_emb] int32 (time-major flat)
        xrest_ref = next(it)      # [S*B, R]       f32
        table_ref = next(it)      # [V, E]
        h1_ref = next(it)         # [L, B, H]
        c1_ref = next(it)         # [L, B, H]
        lstm1 = [(next(it), next(it), next(it)) for _ in range(n_layers)]
        #   layer 0: wih [E+R, 4H]; layers>0: wih [H, 4H]; whh [H, 4H]; b [1, 4H]
        fc1_w_ref = next(it); fc1_b_ref = next(it)
        fc2_w_ref = next(it); fc2_b_ref = next(it)
        h2_ref = next(it); c2_ref = next(it)          # [L, B, D]
        w2_ref = next(it)         # [L, 2D, 4D]  fused [Wih ; Whh]
        b2_ref = next(it)         # [L, 1, 4D]
        cat_w_ref = next(it)      # [E, V]
        cat_b_ref = next(it)      # [1, V]
        # ---- outputs (time-major flat; wrapper transposes back) ----
        logits_ref = next(it)     # [S*B, V]
        pred_ref = next(it)       # [S*B, 1] int32
        noncat_ref = next(it)     # [S*B, D-E]
        h1N_ref = next(it); c1N_ref = next(it)        # [L, B, H]
        h2N_ref = next(it); c2N_ref = next(it)        # [L, B, D]

        SB = idx_ref.shape[0]
        V, E = table_ref.shape
        L, B, H = h1_ref.shape
        D = h2_ref.shape[-1]
        S = SB // B

        def mm(a, w):
            # MXU-friendly dot: bf16 operands, f32 accumulation.
            return jnp.dot(a.astype(MXU_DTYPE), w.astype(MXU_DTYPE),
                           preferred_element_type=jnp.float32)

        def cell(gates, c):
            # Fused gate layout along the last axis: [i, f, o, g].
            n = gates.shape[-1] // 4
            ifo = jax.nn.sigmoid(gates[:, :3 * n])     # one EUP push for i,f,o
            g = jnp.tanh(gates[:, 3 * n:])
            c_new = ifo[:, n:2 * n] * c + ifo[:, :n] * g
            h_new = ifo[:, 2 * n:3 * n] * jnp.tanh(c_new)
            return h_new, c_new

        # ------------------------------------------------------------------
        # Embedding lookup (2D one-hot count; no 3D intermediate) + mean
        # ------------------------------------------------------------------
        idx = idx_ref[...]                                         # [S*B, n]
        iota_v = lax.broadcasted_iota(jnp.int32, (SB, V), 1)
        counts = jnp.zeros((SB, V), jnp.float32)
        for e in range(num_emb):                                   # 3 compares + adds
            counts = counts + (idx[:, e:e + 1] == iota_v).astype(jnp.float32)
        emb = mm(counts, table_ref[...]) * (1.0 / num_emb)         # [S*B, E]

        # ------------------------------------------------------------------
        # LSTM1: hoisted (fused) input projection; unrolled time loop;
        #        inter-layer sequence carried in vregs (no VMEM scratch).
        # ------------------------------------------------------------------
        seq = jnp.concatenate([emb, xrest_ref[...]], axis=-1)      # [S*B, E+R]
        h1_out, c1_out = [], []
        for l in range(n_layers):
            wih_ref, whh_ref, b_ref = lstm1[l]
            whh = whh_ref[...]
            xproj = mm(seq, wih_ref[...]) + b_ref[...]             # [S*B, 4H]
            h = h1_ref[l]
            c = c1_ref[l]
            hs = []
            for t in range(S):                                     # unrolled
                h, c = cell(xproj[t * B:(t + 1) * B, :] + mm(h, whh), c)
                hs.append(h)
            h1_out.append(h)
            c1_out.append(c)
            if l + 1 < n_layers:
                seq = jnp.concatenate(hs, axis=0)                  # [S*B, H]
                # TODO(synk): inter-layer dropout (training mode) not implemented.

        for l in range(n_layers):
            h1N_ref[l] = h1_out[l]
            c1N_ref[l] = c1_out[l]

        # enc = relu(fc1(lstm_enc[:, -1, :])) ; dec = relu(fc2(enc))
        enc = jnp.maximum(mm(h1_out[-1], fc1_w_ref[...]) + fc1_b_ref[...], 0.0)
        dec = jnp.maximum(mm(enc, fc2_w_ref[...]) + fc2_b_ref[...], 0.0)

        # ------------------------------------------------------------------
        # LSTM2: autoregressive decode; ONE fused matmul per (t, l);
        #        state in vregs; biases pre-broadcast outside the loop.
        # ------------------------------------------------------------------
        w2 = [w2_ref[l] for l in range(n_layers)]                  # [2D, 4D]
        b2 = [jnp.broadcast_to(b2_ref[l], (B, 4 * D)) for l in range(n_layers)]
        h2 = [h2_ref[l] for l in range(n_layers)]
        c2 = [c2_ref[l] for l in range(n_layers)]

        x_t = dec                                                  # [B, D]
        xs = []
        for t in range(S):
            for l in range(n_layers):
                xh = jnp.concatenate([x_t, h2[l]], axis=-1)        # [B, 2D] (1 vreg)
                gates = mm(xh, w2[l]) + b2[l]                      # single MXU push
                h2[l], c2[l] = cell(gates, c2[l])
                x_t = h2[l]
            xs.append(x_t)

        for l in range(n_layers):
            h2N_ref[l] = h2[l]
            c2N_ref[l] = c2[l]

        # ------------------------------------------------------------------
        # Hoisted output head: one batched matmul, one argmax, dense stores.
        # ------------------------------------------------------------------
        X = jnp.concatenate(xs, axis=0)                            # [S*B, D] time-major
        noncat_ref[...] = X[:, E:]
        logits = mm(X[:, :E], cat_w_ref[...]) + cat_b_ref[...]     # [S*B, V]
        logits_ref[...] = logits
        # argmax with first-occurrence tie-break (matches torch.argmax)
        m = jnp.max(logits, axis=-1, keepdims=True)
        ii = lax.broadcasted_iota(jnp.int32, logits.shape, 1)
        pred_ref[...] = jnp.min(jnp.where(logits == m, ii, V),
                                axis=-1, keepdims=True)

    return kernel


# ----------------------------------------------------------------------------
# Parameter construction (deterministic, synthetic; fused-gate layout)
# ----------------------------------------------------------------------------
def init_params(key, num_emb, vocab_size, input_dim, emb_dim, hidden_dim,
                encoder_dim, n_layers):
    d_in = input_dim - num_emb + emb_dim
    r = input_dim - num_emb
    keys = iter(jax.random.split(key, 128))

    def nrm(shape, dtype=jnp.float32, scale=0.1):
        return (scale * jax.random.normal(next(keys), shape)).astype(dtype)

    w = MXU_DTYPE
    params = {
        "emb_table": nrm((vocab_size, emb_dim), w),
        "fc1_w": nrm((hidden_dim, encoder_dim), w), "fc1_b": nrm((1, encoder_dim)),
        "fc2_w": nrm((encoder_dim, d_in), w), "fc2_b": nrm((1, d_in)),
        # LSTM2 weights pre-fused: [Wih ; Whh] -> [2D, 4D] per layer.
        "lstm2_w": nrm((n_layers, 2 * d_in, 4 * d_in), w),
        "lstm2_b": nrm((n_layers, 1, 4 * d_in)),
        "cat_w": nrm((emb_dim, vocab_size), w), "cat_b": nrm((1, vocab_size)),
        "lstm1": [],
    }
    for l in range(n_layers):
        in_dim = (emb_dim + r) if l == 0 else hidden_dim   # layer-0 wih pre-fused
        params["lstm1"].append({
            "wih": nrm((in_dim, 4 * hidden_dim), w),
            "whh": nrm((hidden_dim, 4 * hidden_dim), w),
            "b": nrm((1, 4 * hidden_dim)),
        })
    return params


# ----------------------------------------------------------------------------
# Forward pass (mirrors RNNModel.forward) — one pallas_call
# ----------------------------------------------------------------------------
def forward(params, x, hidden1, hidden2, cfg):
    num_emb = cfg["num_emb"]
    emb_dim = cfg["emb_dim"]
    n_layers = cfg["n_layers"]
    vocab_size = cfg["vocab_size"]
    hidden_dim = hidden1[0].shape[-1]
    d_in = hidden2[0].shape[-1]
    B, S, _ = x.shape

    # Glue (fused by XLA into tiny copies): slice, cast, time-major flatten.
    idx_flat = jnp.transpose(x[:, :, :num_emb], (1, 0, 2)).astype(
        jnp.int32).reshape(S * B, num_emb)
    xrest_flat = jnp.transpose(x[:, :, num_emb:], (1, 0, 2)).reshape(S * B, -1)

    args = [idx_flat, xrest_flat, params["emb_table"], hidden1[0], hidden1[1]]
    for l in range(n_layers):
        p = params["lstm1"][l]
        args += [p["wih"], p["whh"], p["b"]]
    args += [params["fc1_w"], params["fc1_b"], params["fc2_w"], params["fc2_b"]]
    args += [hidden2[0], hidden2[1], params["lstm2_w"], params["lstm2_b"]]
    args += [params["cat_w"], params["cat_b"]]

    # Time-major flat outputs (lane/sublane-dense single stores in-kernel).
    out_shape = (
        jax.ShapeDtypeStruct((S * B, vocab_size), jnp.float32),      # cat_logits
        jax.ShapeDtypeStruct((S * B, 1), jnp.int32),                 # cat_pred
        jax.ShapeDtypeStruct((S * B, d_in - emb_dim), jnp.float32),  # noncat_pred
        jax.ShapeDtypeStruct((n_layers, B, hidden_dim), jnp.float32),
        jax.ShapeDtypeStruct((n_layers, B, hidden_dim), jnp.float32),
        jax.ShapeDtypeStruct((n_layers, B, d_in), jnp.float32),
        jax.ShapeDtypeStruct((n_layers, B, d_in), jnp.float32),
    )
    outs = pl.pallas_call(
        _make_fused_kernel(n_layers, num_emb),
        out_shape=out_shape,
        in_specs=[VMEM_SPEC] * len(args),
        out_specs=tuple([VMEM_SPEC] * len(out_shape)),
        compiler_params=pltpu.CompilerParams(
            # Explicit budget with headroom; fits v7x's 64 MiB physical VMEM.
            vmem_limit_bytes=32 * 1024 * 1024),
    )(*args)

    logits_tm, pred_tm, noncat_tm, h1N, c1N, h2N, c2N = outs

    # Wrapper-side layout glue: time-major flat -> [B, S, .].
    cat_logits = jnp.transpose(logits_tm.reshape(S, B, vocab_size), (1, 0, 2))
    cat_pred = jnp.transpose(pred_tm.reshape(S, B, 1), (1, 0, 2))
    noncat_pred = jnp.transpose(noncat_tm.reshape(S, B, d_in - emb_dim), (1, 0, 2))
    return cat_pred, noncat_pred, cat_logits, (h1N, c1N), (h2N, c2N)


# ----------------------------------------------------------------------------
if __name__ == "__main__":
    # Small, module-consistent shapes
    num_emb, vocab_size, input_dim = 3, 16, 11
    emb_dim, hidden_dim, encoder_dim, n_layers = 8, 32, 24, 2
    B, S = 2, 8
    d_in = input_dim - num_emb + emb_dim                  # 16

    cfg = dict(num_emb=num_emb, vocab_size=vocab_size, emb_dim=emb_dim,
               n_layers=n_layers)

    key = jax.random.PRNGKey(0)
    kp, kx, kr = jax.random.split(key, 3)
    params = init_params(kp, num_emb, vocab_size, input_dim, emb_dim,
                         hidden_dim, encoder_dim, n_layers)

    idx_part = jax.random.randint(kx, (B, S, num_emb), 0, vocab_size).astype(jnp.float32)
    rest_part = jax.random.normal(kr, (B, S, input_dim - num_emb), dtype=jnp.float32)
    x = jnp.concatenate([idx_part, rest_part], axis=-1)    # [B, S, input_dim]

    hidden1 = (jnp.zeros((n_layers, B, hidden_dim), jnp.float32),
               jnp.zeros((n_layers, B, hidden_dim), jnp.float32))
    hidden2 = (jnp.zeros((n_layers, B, d_in), jnp.float32),
               jnp.zeros((n_layers, B, d_in), jnp.float32))

    fwd = jax.jit(functools.partial(forward, cfg=cfg))
    outs = fwd(params, x, hidden1, hidden2)
    jax.block_until_ready(outs)

    cat_pred, noncat_pred, cat_logits, h1, h2 = outs
    assert cat_pred.shape == (B, S, 1)
    assert noncat_pred.shape == (B, S, d_in - emb_dim)
    assert cat_logits.shape == (B, S, vocab_size)
    assert h1[0].shape == (n_layers, B, hidden_dim)
    assert h2[0].shape == (n_layers, B, d_in)
    assert bool(jnp.all(jnp.isfinite(cat_logits)))
    assert bool(jnp.all(jnp.isfinite(noncat_pred)))
    assert bool(jnp.all((cat_pred >= 0) & (cat_pred < vocab_size)))
    print("KERNEL_OK")
</pallas_src>

<mosaic_0001>
module attributes {stable_mosaic.version = 11 : i64} {
  func.func @kernel(%arg0: memref<16x3xi32, #tpu.memory_space<vmem>>, %arg1: memref<16x8xf32, #tpu.memory_space<vmem>>, %arg2: memref<16x8xbf16, #tpu.memory_space<vmem>>, %arg3: memref<2x2x32xf32, #tpu.memory_space<vmem>>, %arg4: memref<2x2x32xf32, #tpu.memory_space<vmem>>, %arg5: memref<16x128xbf16, #tpu.memory_space<vmem>>, %arg6: memref<32x128xbf16, #tpu.memory_space<vmem>>, %arg7: memref<1x128xf32, #tpu.memory_space<vmem>>, %arg8: memref<32x128xbf16, #tpu.memory_space<vmem>>, %arg9: memref<32x128xbf16, #tpu.memory_space<vmem>>, %arg10: memref<1x128xf32, #tpu.memory_space<vmem>>, %arg11: memref<32x24xbf16, #tpu.memory_space<vmem>>, %arg12: memref<1x24xf32, #tpu.memory_space<vmem>>, %arg13: memref<24x16xbf16, #tpu.memory_space<vmem>>, %arg14: memref<1x16xf32, #tpu.memory_space<vmem>>, %arg15: memref<2x2x16xf32, #tpu.memory_space<vmem>>, %arg16: memref<2x2x16xf32, #tpu.memory_space<vmem>>, %arg17: memref<2x32x64xbf16, #tpu.memory_space<vmem>>, %arg18: memref<2x1x64xf32, #tpu.memory_space<vmem>>, %arg19: memref<8x16xbf16, #tpu.memory_space<vmem>>, %arg20: memref<1x16xf32, #tpu.memory_space<vmem>>, %arg21: memref<16x16xf32, #tpu.memory_space<vmem>>, %arg22: memref<16x1xi32, #tpu.memory_space<vmem>>, %arg23: memref<16x8xf32, #tpu.memory_space<vmem>>, %arg24: memref<2x2x32xf32, #tpu.memory_space<vmem>>, %arg25: memref<2x2x32xf32, #tpu.memory_space<vmem>>, %arg26: memref<2x2x16xf32, #tpu.memory_space<vmem>>, %arg27: memref<2x2x16xf32, #tpu.memory_space<vmem>>) attributes {dimension_semantics = [], scalar_prefetch = 0 : i64, scratch_operands = 0 : i64, tpu.core_type = #tpu.core_type<tc>} {
    %c0 = arith.constant 0 : index
    %c0_0 = arith.constant 0 : index
    %0 = vector.load %arg0[%c0, %c0_0] : memref<16x3xi32, #tpu.memory_space<vmem>>, vector<16x3xi32>
    %1 = tpu.iota {dimensions = array<i32: 1>} : vector<16x16xi32>
    %cst = arith.constant 0.000000e+00 : f32
    %2 = vector.broadcast %cst : f32 to vector<16x16xf32>
    %3 = vector.extract_strided_slice %0 {offsets = [0, 0], sizes = [16, 1], strides = [1, 1]} : vector<16x3xi32> to vector<16x1xi32>
    %4 = vector.broadcast %3 : vector<16x1xi32> to vector<16x16xi32>
    %5 = arith.cmpi eq, %4, %1 : vector<16x16xi32>
    %6 = arith.extui %5 : vector<16x16xi1> to vector<16x16xi32>
    %7 = arith.sitofp %6 : vector<16x16xi32> to vector<16x16xf32>
    %8 = arith.addf %2, %7 : vector<16x16xf32>
    %9 = vector.extract_strided_slice %0 {offsets = [0, 1], sizes = [16, 1], strides = [1, 1]} : vector<16x3xi32> to vector<16x1xi32>
    %10 = vector.broadcast %9 : vector<16x1xi32> to vector<16x16xi32>
    %11 = arith.cmpi eq, %10, %1 : vector<16x16xi32>
    %12 = arith.extui %11 : vector<16x16xi1> to vector<16x16xi32>
    %13 = arith.sitofp %12 : vector<16x16xi32> to vector<16x16xf32>
    %14 = arith.addf %8, %13 : vector<16x16xf32>
    %15 = vector.extract_strided_slice %0 {offsets = [0, 2], sizes = [16, 1], strides = [1, 1]} : vector<16x3xi32> to vector<16x1xi32>
    %16 = vector.broadcast %15 : vector<16x1xi32> to vector<16x16xi32>
    %17 = arith.cmpi eq, %16, %1 : vector<16x16xi32>
    %18 = arith.extui %17 : vector<16x16xi1> to vector<16x16xi32>
    %19 = arith.sitofp %18 : vector<16x16xi32> to vector<16x16xf32>
    %20 = arith.addf %14, %19 : vector<16x16xf32>
    %c0_1 = arith.constant 0 : index
    %c0_2 = arith.constant 0 : index
    %21 = vector.load %arg2[%c0_1, %c0_2] : memref<16x8xbf16, #tpu.memory_space<vmem>>, vector<16x8xbf16>
    %22 = arith.truncf %20 : vector<16x16xf32> to vector<16x16xbf16>
    %cst_3 = arith.constant dense<0.000000e+00> : vector<16x8xf32>
    %23 = tpu.matmul %22, %21, %cst_3 {dimension_numbers = #tpu.dot_dimension_numbers<[1], [0], [0], [1], [0, 0, 1, 1], [], []>} : vector<16x16xbf16>, vector<16x8xbf16>, vector<16x8xf32> -> vector<16x8xf32>
    %cst_4 = arith.constant 0.333333343 : f32
    %24 = vector.broadcast %cst_4 : f32 to vector<16x8xf32>
    %25 = arith.mulf %23, %24 : vector<16x8xf32>
    %c0_5 = arith.constant 0 : index
    %c0_6 = arith.constant 0 : index
    %26 = vector.load %arg1[%c0_5, %c0_6] : memref<16x8xf32, #tpu.memory_space<vmem>>, vector<16x8xf32>
    %27 = tpu.concatenate %25, %26 in 1 : vector<16x8xf32>, vector<16x8xf32> -> vector<16x16xf32>
    %c0_7 = arith.constant 0 : index
    %c0_8 = arith.constant 0 : index
    %28 = vector.load %arg6[%c0_7, %c0_8] : memref<32x128xbf16, #tpu.memory_space<vmem>>, vector<32x128xbf16>
    %c0_9 = arith.constant 0 : index
    %c0_10 = arith.constant 0 : index
    %29 = vector.load %arg5[%c0_9, %c0_10] : memref<16x128xbf16, #tpu.memory_space<vmem>>, vector<16x128xbf16>
    %30 = arith.truncf %27 : vector<16x16xf32> to vector<16x16xbf16>
    %cst_11 = arith.constant dense<0.000000e+00> : vector<16x128xf32>
    %31 = tpu.matmul %30, %29, %cst_11 {dimension_numbers = #tpu.dot_dimension_numbers<[1], [0], [0], [1], [0, 0, 1, 1], [], []>} : vector<16x16xbf16>, vector<16x128xbf16>, vector<16x128xf32> -> vector<16x128xf32>
    %c0_12 = arith.constant 0 : index
    %c0_13 = arith.constant 0 : index
    %32 = vector.load %arg7[%c0_12, %c0_13] : memref<1x128xf32, #tpu.memory_space<vmem>>, vector<1x128xf32>
    %33 = vector.broadcast %32 : vector<1x128xf32> to vector<16x128xf32>
    %34 = arith.addf %31, %33 : vector<16x128xf32>
    %c0_14 = arith.constant 0 : index
    %c0_15 = arith.constant 0 : index
    %c0_16 = arith.constant 0 : index
    %35 = vector.load %arg3[%c0_14, %c0_15, %c0_16] : memref<2x2x32xf32, #tpu.memory_space<vmem>>, vector<1x2x32xf32>
    %36 = vector.shape_cast %35 : vector<1x2x32xf32> to vector<2x32xf32>
    %c0_17 = arith.constant 0 : index
    %c0_18 = arith.constant 0 : index
    %c0_19 = arith.constant 0 : index
    %37 = vector.load %arg4[%c0_17, %c0_18, %c0_19] : memref<2x2x32xf32, #tpu.memory_space<vmem>>, vector<1x2x32xf32>
    %38 = vector.shape_cast %37 : vector<1x2x32xf32> to vector<2x32xf32>
    %39 = vector.extract_strided_slice %34 {offsets = [0, 0], sizes = [2, 128], strides = [1, 1]} : vector<16x128xf32> to vector<2x128xf32>
    %40 = arith.truncf %36 : vector<2x32xf32> to vector<2x32xbf16>
    %cst_20 = arith.constant dense<0.000000e+00> : vector<2x128xf32>
    %41 = tpu.matmul %40, %28, %cst_20 {dimension_numbers = #tpu.dot_dimension_numbers<[1], [0], [0], [1], [0, 0, 1, 1], [], []>} : vector<2x32xbf16>, vector<32x128xbf16>, vector<2x128xf32> -> vector<2x128xf32>
    %42 = arith.addf %39, %41 : vector<2x128xf32>
    %43 = vector.extract_strided_slice %42 {offsets = [0, 0], sizes = [2, 96], strides = [1, 1]} : vector<2x128xf32> to vector<2x96xf32>
    %44 = arith.negf %43 : vector<2x96xf32>
    %45 = math.exp %44 : vector<2x96xf32>
    %cst_21 = arith.constant 1.000000e+00 : f32
    %46 = vector.broadcast %cst_21 : f32 to vector<2x96xf32>
    %47 = arith.addf %46, %45 : vector<2x96xf32>
    %48 = arith.divf %46, %47 : vector<2x96xf32>
    %49 = vector.extract_strided_slice %42 {offsets = [0, 96], sizes = [2, 32], strides = [1, 1]} : vector<2x128xf32> to vector<2x32xf32>
    %50 = math.tanh %49 : vector<2x32xf32>
    %51 = vector.extract_strided_slice %48 {offsets = [0, 32], sizes = [2, 32], strides = [1, 1]} : vector<2x96xf32> to vector<2x32xf32>
    %52 = arith.mulf %51, %38 : vector<2x32xf32>
    %53 = vector.extract_strided_slice %48 {offsets = [0, 0], sizes = [2, 32], strides = [1, 1]} : vector<2x96xf32> to vector<2x32xf32>
    %54 = arith.mulf %53, %50 : vector<2x32xf32>
    %55 = arith.addf %52, %54 : vector<2x32xf32>
    %56 = vector.extract_strided_slice %48 {offsets = [0, 64], sizes = [2, 32], strides = [1, 1]} : vector<2x96xf32> to vector<2x32xf32>
    %57 = math.tanh %55 : vector<2x32xf32>
    %58 = arith.mulf %56, %57 : vector<2x32xf32>
    %59 = vector.extract_strided_slice %34 {offsets = [2, 0], sizes = [2, 128], strides = [1, 1]} : vector<16x128xf32> to vector<2x128xf32>
    %60 = arith.truncf %58 : vector<2x32xf32> to vector<2x32xbf16>
    %cst_22 = arith.constant dense<0.000000e+00> : vector<2x128xf32>
    %61 = tpu.matmul %60, %28, %cst_22 {dimension_numbers = #tpu.dot_dimension_numbers<[1], [0], [0], [1], [0, 0, 1, 1], [], []>} : vector<2x32xbf16>, vector<32x128xbf16>, vector<2x128xf32> -> vector<2x128xf32>
    %62 = arith.addf %59, %61 : vector<2x128xf32>
    %63 = vector.extract_strided_slice %62 {offsets = [0, 0], sizes = [2, 96], strides = [1, 1]} : vector<2x128xf32> to vector<2x96xf32>
    %64 = arith.negf %63 : vector<2x96xf32>
    %65 = math.exp %64 : vector<2x96xf32>
    %cst_23 = arith.constant 1.000000e+00 : f32
    %66 = vector.broadcast %cst_23 : f32 to vector<2x96xf32>
    %67 = arith.addf %66, %65 : vector<2x96xf32>
    %68 = arith.divf %66, %67 : vector<2x96xf32>
    %69 = vector.extract_strided_slice %62 {offsets = [0, 96], sizes = [2, 32], strides = [1, 1]} : vector<2x128xf32> to vector<2x32xf32>
    %70 = math.tanh %69 : vector<2x32xf32>
    %71 = vector.extract_strided_slice %68 {offsets = [0, 32], sizes = [2, 32], strides = [1, 1]} : vector<2x96xf32> to vector<2x32xf32>
    %72 = arith.mulf %71, %55 : vector<2x32xf32>
    %73 = vector.extract_strided_slice %68 {offsets = [0, 0], sizes = [2, 32], strides = [1, 1]} : vector<2x96xf32> to vector<2x32xf32>
    %74 = arith.mulf %73, %70 : vector<2x32xf32>
    %75 = arith.addf %72, %74 : vector<2x32xf32>
    %76 = vector.extract_strided_slice %68 {offsets = [0, 64], sizes = [2, 32], strides = [1, 1]} : vector<2x96xf32> to vector<2x32xf32>
    %77 = math.tanh %75 : vector<2x32xf32>
    %78 = arith.mulf %76, %77 : vector<2x32xf32>
    %79 = vector.extract_strided_slice %34 {offsets = [4, 0], sizes = [2, 128], strides = [1, 1]} : vector<16x128xf32> to vector<2x128xf32>
    %80 = arith.truncf %78 : vector<2x32xf32> to vector<2x32xbf16>
    %cst_24 = arith.constant dense<0.000000e+00> : vector<2x128xf32>
    %81 = tpu.matmul %80, %28, %cst_24 {dimension_numbers = #tpu.dot_dimension_numbers<[1], [0], [0], [1], [0, 0, 1, 1], [], []>} : vector<2x32xbf16>, vector<32x128xbf16>, vector<2x128xf32> -> vector<2x128xf32>
    %82 = arith.addf %79, %81 : vector<2x128xf32>
    %83 = vector.extract_strided_slice %82 {offsets = [0, 0], sizes = [2, 96], strides = [1, 1]} : vector<2x128xf32> to vector<2x96xf32>
    %84 = arith.negf %83 : vector<2x96xf32>
    %85 = math.exp %84 : vector<2x96xf32>
    %cst_25 = arith.constant 1.000000e+00 : f32
    %86 = vector.broadcast %cst_25 : f32 to vector<2x96xf32>
    %87 = arith.addf %86, %85 : vector<2x96xf32>
    %88 = arith.divf %86, %87 : vector<2x96xf32>
    %89 = vector.extract_strided_slice %82 {offsets = [0, 96], sizes = [2, 32], strides = [1, 1]} : vector<2x128xf32> to vector<2x32xf32>
    %90 = math.tanh %89 : vector<2x32xf32>
    %91 = vector.extract_strided_slice %88 {offsets = [0, 32], sizes = [2, 32], strides = [1, 1]} : vector<2x96xf32> to vector<2x32xf32>
    %92 = arith.mulf %91, %75 : vector<2x32xf32>
    %93 = vector.extract_strided_slice %88 {offsets = [0, 0], sizes = [2, 32], strides = [1, 1]} : vector<2x96xf32> to vector<2x32xf32>
    %94 = arith.mulf %93, %90 : vector<2x32xf32>
    %95 = arith.addf %92, %94 : vector<2x32xf32>
    %96 = vector.extract_strided_slice %88 {offsets = [0, 64], sizes = [2, 32], strides = [1, 1]} : vector<2x96xf32> to vector<2x32xf32>
    %97 = math.tanh %95 : vector<2x32xf32>
    %98 = arith.mulf %96, %97 : vector<2x32xf32>
    %99 = vector.extract_strided_slice %34 {offsets = [6, 0], sizes = [2, 128], strides = [1, 1]} : vector<16x128xf32> to vector<2x128xf32>
    %100 = arith.truncf %98 : vector<2x32xf32> to vector<2x32xbf16>
    %cst_26 = arith.constant dense<0.000000e+00> : vector<2x128xf32>
    %101 = tpu.matmul %100, %28, %cst_26 {dimension_numbers = #tpu.dot_dimension_numbers<[1], [0], [0], [1], [0, 0, 1, 1], [], []>} : vector<2x32xbf16>, vector<32x128xbf16>, vector<2x128xf32> -> vector<2x128xf32>
    %102 = arith.addf %99, %101 : vector<2x128xf32>
    %103 = vector.extract_strided_slice %102 {offsets = [0, 0], sizes = [2, 96], strides = [1, 1]} : vector<2x128xf32> to vector<2x96xf32>
    %104 = arith.negf %103 : vector<2x96xf32>
    %105 = math.exp %104 : vector<2x96xf32>
    %cst_27 = arith.constant 1.000000e+00 : f32
    %106 = vector.broadcast %cst_27 : f32 to vector<2x96xf32>
    %107 = arith.addf %106, %105 : vector<2x96xf32>
    %108 = arith.divf %106, %107 : vector<2x96xf32>
    %109 = vector.extract_strided_slice %102 {offsets = [0, 96], sizes = [2, 32], strides = [1, 1]} : vector<2x128xf32> to vector<2x32xf32>
    %110 = math.tanh %109 : vector<2x32xf32>
    %111 = vector.extract_strided_slice %108 {offsets = [0, 32], sizes = [2, 32], strides = [1, 1]} : vector<2x96xf32> to vector<2x32xf32>
    %112 = arith.mulf %111, %95 : vector<2x32xf32>
    %113 = vector.extract_strided_slice %108 {offsets = [0, 0], sizes = [2, 32], strides = [1, 1]} : vector<2x96xf32> to vector<2x32xf32>
    %114 = arith.mulf %113, %110 : vector<2x32xf32>
    %115 = arith.addf %112, %114 : vector<2x32xf32>
    %116 = vector.extract_strided_slice %108 {offsets = [0, 64], sizes = [2, 32], strides = [1, 1]} : vector<2x96xf32> to vector<2x32xf32>
    %117 = math.tanh %115 : vector<2x32xf32>
    %118 = arith.mulf %116, %117 : vector<2x32xf32>
    %119 = vector.extract_strided_slice %34 {offsets = [8, 0], sizes = [2, 128], strides = [1, 1]} : vector<16x128xf32> to vector<2x128xf32>
    %120 = arith.truncf %118 : vector<2x32xf32> to vector<2x32xbf16>
    %cst_28 = arith.constant dense<0.000000e+00> : vector<2x128xf32>
    %121 = tpu.matmul %120, %28, %cst_28 {dimension_numbers = #tpu.dot_dimension_numbers<[1], [0], [0], [1], [0, 0, 1, 1], [], []>} : vector<2x32xbf16>, vector<32x128xbf16>, vector<2x128xf32> -> vector<2x128xf32>
    %122 = arith.addf %119, %121 : vector<2x128xf32>
    %123 = vector.extract_strided_slice %122 {offsets = [0, 0], sizes = [2, 96], strides = [1, 1]} : vector<2x128xf32> to vector<2x96xf32>
    %124 = arith.negf %123 : vector<2x96xf32>
    %125 = math.exp %124 : vector<2x96xf32>
    %cst_29 = arith.constant 1.000000e+00 : f32
    %126 = vector.broadcast %cst_29 : f32 to vector<2x96xf32>
    %127 = arith.addf %126, %125 : vector<2x96xf32>
    %128 = arith.divf %126, %127 : vector<2x96xf32>
    %129 = vector.extract_strided_slice %122 {offsets = [0, 96], sizes = [2, 32], strides = [1, 1]} : vector<2x128xf32> to vector<2x32xf32>
    %130 = math.tanh %129 : vector<2x32xf32>
    %131 = vector.extract_strided_slice %128 {offsets = [0, 32], sizes = [2, 32], strides = [1, 1]} : vector<2x96xf32> to vector<2x32xf32>
    %132 = arith.mulf %131, %115 : vector<2x32xf32>
    %133 = vector.extract_strided_slice %128 {offsets = [0, 0], sizes = [2, 32], strides = [1, 1]} : vector<2x96xf32> to vector<2x32xf32>
    %134 = arith.mulf %133, %130 : vector<2x32xf32>
    %135 = arith.addf %132, %134 : vector<2x32xf32>
    %136 = vector.extract_strided_slice %128 {offsets = [0, 64], sizes = [2, 32], strides = [1, 1]} : vector<2x96xf32> to vector<2x32xf32>
    %137 = math.tanh %135 : vector<2x32xf32>
    %138 = arith.mulf %136, %137 : vector<2x32xf32>
    %139 = vector.extract_strided_slice %34 {offsets = [10, 0], sizes = [2, 128], strides = [1, 1]} : vector<16x128xf32> to vector<2x128xf32>
    %140 = arith.truncf %138 : vector<2x32xf32> to vector<2x32xbf16>
    %cst_30 = arith.constant dense<0.000000e+00> : vector<2x128xf32>
    %141 = tpu.matmul %140, %28, %cst_30 {dimension_numbers = #tpu.dot_dimension_numbers<[1], [0], [0], [1], [0, 0, 1, 1], [], []>} : vector<2x32xbf16>, vector<32x128xbf16>, vector<2x128xf32> -> vector<2x128xf32>
    %142 = arith.addf %139, %141 : vector<2x128xf32>
    %143 = vector.extract_strided_slice %142 {offsets = [0, 0], sizes = [2, 96], strides = [1, 1]} : vector<2x128xf32> to vector<2x96xf32>
    %144 = arith.negf %143 : vector<2x96xf32>
    %145 = math.exp %144 : vector<2x96xf32>
    %cst_31 = arith.constant 1.000000e+00 : f32
    %146 = vector.broadcast %cst_31 : f32 to vector<2x96xf32>
    %147 = arith.addf %146, %145 : vector<2x96xf32>
    %148 = arith.divf %146, %147 : vector<2x96xf32>
    %149 = vector.extract_strided_slice %142 {offsets = [0, 96], sizes = [2, 32], strides = [1, 1]} : vector<2x128xf32> to vector<2x32xf32>
    %150 = math.tanh %149 : vector<2x32xf32>
    %151 = vector.extract_strided_slice %148 {offsets = [0, 32], sizes = [2, 32], strides = [1, 1]} : vector<2x96xf32> to vector<2x32xf32>
    %152 = arith.mulf %151, %135 : vector<2x32xf32>
    %153 = vector.extract_strided_slice %148 {offsets = [0, 0], sizes = [2, 32], strides = [1, 1]} : vector<2x96xf32> to vector<2x32xf32>
    %154 = arith.mulf %153, %150 : vector<2x32xf32>
    %155 = arith.addf %152, %154 : vector<2x32xf32>
    %156 = vector.extract_strided_slice %148 {offsets = [0, 64], sizes = [2, 32], strides = [1, 1]} : vector<2x96xf32> to vector<2x32xf32>
    %157 = math.tanh %155 : vector<2x32xf32>
    %158 = arith.mulf %156, %157 : vector<2x32xf32>
    %159 = vector.extract_strided_slice %34 {offsets = [12, 0], sizes = [2, 128], strides = [1, 1]} : vector<16x128xf32> to vector<2x128xf32>
    %160 = arith.truncf %158 : vector<2x32xf32> to vector<2x32xbf16>
    %cst_32 = arith.constant dense<0.000000e+00> : vector<2x128xf32>
    %161 = tpu.matmul %160, %28, %cst_32 {dimension_numbers = #tpu.dot_dimension_numbers<[1], [0], [0], [1], [0, 0, 1, 1], [], []>} : vector<2x32xbf16>, vector<32x128xbf16>, vector<2x128xf32> -> vector<2x128xf32>
    %162 = arith.addf %159, %161 : vector<2x128xf32>
    %163 = vector.extract_strided_slice %162 {offsets = [0, 0], sizes = [2, 96], strides = [1, 1]} : vector<2x128xf32> to vector<2x96xf32>
    %164 = arith.negf %163 : vector<2x96xf32>
    %165 = math.exp %164 : vector<2x96xf32>
    %cst_33 = arith.constant 1.000000e+00 : f32
    %166 = vector.broadcast %cst_33 : f32 to vector<2x96xf32>
    %167 = arith.addf %166, %165 : vector<2x96xf32>
    %168 = arith.divf %166, %167 : vector<2x96xf32>
    %169 = vector.extract_strided_slice %162 {offsets = [0, 96], sizes = [2, 32], strides = [1, 1]} : vector<2x128xf32> to vector<2x32xf32>
    %170 = math.tanh %169 : vector<2x32xf32>
    %171 = vector.extract_strided_slice %168 {offsets = [0, 32], sizes = [2, 32], strides = [1, 1]} : vector<2x96xf32> to vector<2x32xf32>
    %172 = arith.mulf %171, %155 : vector<2x32xf32>
    %173 = vector.extract_strided_slice %168 {offsets = [0, 0], sizes = [2, 32], strides = [1, 1]} : vector<2x96xf32> to vector<2x32xf32>
    %174 = arith.mulf %173, %170 : vector<2x32xf32>
    %175 = arith.addf %172, %174 : vector<2x32xf32>
    %176 = vector.extract_strided_slice %168 {offsets = [0, 64], sizes = [2, 32], strides = [1, 1]} : vector<2x96xf32> to vector<2x32xf32>
    %177 = math.tanh %175 : vector<2x32xf32>
    %178 = arith.mulf %176, %177 : vector<2x32xf32>
    %179 = vector.extract_strided_slice %34 {offsets = [14, 0], sizes = [2, 128], strides = [1, 1]} : vector<16x128xf32> to vector<2x128xf32>
    %180 = arith.truncf %178 : vector<2x32xf32> to vector<2x32xbf16>
    %cst_34 = arith.constant dense<0.000000e+00> : vector<2x128xf32>
    %181 = tpu.matmul %180, %28, %cst_34 {dimension_numbers = #tpu.dot_dimension_numbers<[1], [0], [0], [1], [0, 0, 1, 1], [], []>} : vector<2x32xbf16>, vector<32x128xbf16>, vector<2x128xf32> -> vector<2x128xf32>
    %182 = arith.addf %179, %181 : vector<2x128xf32>
    %183 = vector.extract_strided_slice %182 {offsets = [0, 0], sizes = [2, 96], strides = [1, 1]} : vector<2x128xf32> to vector<2x96xf32>
    %184 = arith.negf %183 : vector<2x96xf32>
    %185 = math.exp %184 : vector<2x96xf32>
    %cst_35 = arith.constant 1.000000e+00 : f32
    %186 = vector.broadcast %cst_35 : f32 to vector<2x96xf32>
    %187 = arith.addf %186, %185 : vector<2x96xf32>
    %188 = arith.divf %186, %187 : vector<2x96xf32>
    %189 = vector.extract_strided_slice %182 {offsets = [0, 96], sizes = [2, 32], strides = [1, 1]} : vector<2x128xf32> to vector<2x32xf32>
    %190 = math.tanh %189 : vector<2x32xf32>
    %191 = vector.extract_strided_slice %188 {offsets = [0, 32], sizes = [2, 32], strides = [1, 1]} : vector<2x96xf32> to vector<2x32xf32>
    %192 = arith.mulf %191, %175 : vector<2x32xf32>
    %193 = vector.extract_strided_slice %188 {offsets = [0, 0], sizes = [2, 32], strides = [1, 1]} : vector<2x96xf32> to vector<2x32xf32>
    %194 = arith.mulf %193, %190 : vector<2x32xf32>
    %195 = arith.addf %192, %194 : vector<2x32xf32>
    %196 = vector.extract_strided_slice %188 {offsets = [0, 64], sizes = [2, 32], strides = [1, 1]} : vector<2x96xf32> to vector<2x32xf32>
    %197 = math.tanh %195 : vector<2x32xf32>
    %198 = arith.mulf %196, %197 : vector<2x32xf32>
    %199 = tpu.concatenate %58, %78, %98, %118, %138, %158, %178, %198 in 0 : vector<2x32xf32>, vector<2x32xf32>, vector<2x32xf32>, vector<2x32xf32>, vector<2x32xf32>, vector<2x32xf32>, vector<2x32xf32>, vector<2x32xf32> -> vector<16x32xf32>
    %c0_36 = arith.constant 0 : index
    %c0_37 = arith.constant 0 : index
    %200 = vector.load %arg9[%c0_36, %c0_37] : memref<32x128xbf16, #tpu.memory_space<vmem>>, vector<32x128xbf16>
    %c0_38 = arith.constant 0 : index
    %c0_39 = arith.constant 0 : index
    %201 = vector.load %arg8[%c0_38, %c0_39] : memref<32x128xbf16, #tpu.memory_space<vmem>>, vector<32x128xbf16>
    %202 = arith.truncf %199 : vector<16x32xf32> to vector<16x32xbf16>
    %cst_40 = arith.constant dense<0.000000e+00> : vector<16x128xf32>
    %203 = tpu.matmul %202, %201, %cst_40 {dimension_numbers = #tpu.dot_dimension_numbers<[1], [0], [0], [1], [0, 0, 1, 1], [], []>} : vector<16x32xbf16>, vector<32x128xbf16>, vector<16x128xf32> -> vector<16x128xf32>
    %c0_41 = arith.constant 0 : index
    %c0_42 = arith.constant 0 : index
    %204 = vector.load %arg10[%c0_41, %c0_42] : memref<1x128xf32, #tpu.memory_space<vmem>>, vector<1x128xf32>
    %205 = vector.broadcast %204 : vector<1x128xf32> to vector<16x128xf32>
    %206 = arith.addf %203, %205 : vector<16x128xf32>
    %c1 = arith.constant 1 : index
    %c0_43 = arith.constant 0 : index
    %c0_44 = arith.constant 0 : index
    %207 = vector.load %arg3[%c1, %c0_43, %c0_44] : memref<2x2x32xf32, #tpu.memory_space<vmem>>, vector<1x2x32xf32>
    %208 = vector.shape_cast %207 : vector<1x2x32xf32> to vector<2x32xf32>
    %c1_45 = arith.constant 1 : index
    %c0_46 = arith.constant 0 : index
    %c0_47 = arith.constant 0 : index
    %209 = vector.load %arg4[%c1_45, %c0_46, %c0_47] : memref<2x2x32xf32, #tpu.memory_space<vmem>>, vector<1x2x32xf32>
    %210 = vector.shape_cast %209 : vector<1x2x32xf32> to vector<2x32xf32>
    %211 = vector.extract_strided_slice %206 {offsets = [0, 0], sizes = [2, 128], strides = [1, 1]} : vector<16x128xf32> to vector<2x128xf32>
    %212 = arith.truncf %208 : vector<2x32xf32> to vector<2x32xbf16>
    %cst_48 = arith.constant dense<0.000000e+00> : vector<2x128xf32>
    %213 = tpu.matmul %212, %200, %cst_48 {dimension_numbers = #tpu.dot_dimension_numbers<[1], [0], [0], [1], [0, 0, 1, 1], [], []>} : vector<2x32xbf16>, vector<32x128xbf16>, vector<2x128xf32> -> vector<2x128xf32>
    %214 = arith.addf %211, %213 : vector<2x128xf32>
    %215 = vector.extract_strided_slice %214 {offsets = [0, 0], sizes = [2, 96], strides = [1, 1]} : vector<2x128xf32> to vector<2x96xf32>
    %216 = arith.negf %215 : vector<2x96xf32>
    %217 = math.exp %216 : vector<2x96xf32>
    %cst_49 = arith.constant 1.000000e+00 : f32
    %218 = vector.broadcast %cst_49 : f32 to vector<2x96xf32>
    %219 = arith.addf %218, %217 : vector<2x96xf32>
    %220 = arith.divf %218, %219 : vector<2x96xf32>
    %221 = vector.extract_strided_slice %214 {offsets = [0, 96], sizes = [2, 32], strides = [1, 1]} : vector<2x128xf32> to vector<2x32xf32>
    %222 = math.tanh %221 : vector<2x32xf32>
    %223 = vector.extract_strided_slice %220 {offsets = [0, 32], sizes = [2, 32], strides = [1, 1]} : vector<2x96xf32> to vector<2x32xf32>
    %224 = arith.mulf %223, %210 : vector<2x32xf32>
    %225 = vector.extract_strided_slice %220 {offsets = [0, 0], sizes = [2, 32], strides = [1, 1]} : vector<2x96xf32> to vector<2x32xf32>
    %226 = arith.mulf %225, %222 : vector<2x32xf32>
    %227 = arith.addf %224, %226 : vector<2x32xf32>
    %228 = vector.extract_strided_slice %220 {offsets = [0, 64], sizes = [2, 32], strides = [1, 1]} : vector<2x96xf32> to vector<2x32xf32>
    %229 = math.tanh %227 : vector<2x32xf32>
    %230 = arith.mulf %228, %229 : vector<2x32xf32>
    %231 = vector.extract_strided_slice %206 {offsets = [2, 0], sizes = [2, 128], strides = [1, 1]} : vector<16x128xf32> to vector<2x128xf32>
    %232 = arith.truncf %230 : vector<2x32xf32> to vector<2x32xbf16>
    %cst_50 = arith.constant dense<0.000000e+00> : vector<2x128xf32>
    %233 = tpu.matmul %232, %200, %cst_50 {dimension_numbers = #tpu.dot_dimension_numbers<[1], [0], [0], [1], [0, 0, 1, 1], [], []>} : vector<2x32xbf16>, vector<32x128xbf16>, vector<2x128xf32> -> vector<2x128xf32>
    %234 = arith.addf %231, %233 : vector<2x128xf32>
    %235 = vector.extract_strided_slice %234 {offsets = [0, 0], sizes = [2, 96], strides = [1, 1]} : vector<2x128xf32> to vector<2x96xf32>
    %236 = arith.negf %235 : vector<2x96xf32>
    %237 = math.exp %236 : vector<2x96xf32>
    %cst_51 = arith.constant 1.000000e+00 : f32
    %238 = vector.broadcast %cst_51 : f32 to vector<2x96xf32>
    %239 = arith.addf %238, %237 : vector<2x96xf32>
    %240 = arith.divf %238, %239 : vector<2x96xf32>
    %241 = vector.extract_strided_slice %234 {offsets = [0, 96], sizes = [2, 32], strides = [1, 1]} : vector<2x128xf32> to vector<2x32xf32>
    %242 = math.tanh %241 : vector<2x32xf32>
    %243 = vector.extract_strided_slice %240 {offsets = [0, 32], sizes = [2, 32], strides = [1, 1]} : vector<2x96xf32> to vector<2x32xf32>
    %244 = arith.mulf %243, %227 : vector<2x32xf32>
    %245 = vector.extract_strided_slice %240 {offsets = [0, 0], sizes = [2, 32], strides = [1, 1]} : vector<2x96xf32> to vector<2x32xf32>
    %246 = arith.mulf %245, %242 : vector<2x32xf32>
    %247 = arith.addf %244, %246 : vector<2x32xf32>
    %248 = vector.extract_strided_slice %240 {offsets = [0, 64], sizes = [2, 32], strides = [1, 1]} : vector<2x96xf32> to vector<2x32xf32>
    %249 = math.tanh %247 : vector<2x32xf32>
    %250 = arith.mulf %248, %249 : vector<2x32xf32>
    %251 = vector.extract_strided_slice %206 {offsets = [4, 0], sizes = [2, 128], strides = [1, 1]} : vector<16x128xf32> to vector<2x128xf32>
    %252 = arith.truncf %250 : vector<2x32xf32> to vector<2x32xbf16>
    %cst_52 = arith.constant dense<0.000000e+00> : vector<2x128xf32>
    %253 = tpu.matmul %252, %200, %cst_52 {dimension_numbers = #tpu.dot_dimension_numbers<[1], [0], [0], [1], [0, 0, 1, 1], [], []>} : vector<2x32xbf16>, vector<32x128xbf16>, vector<2x128xf32> -> vector<2x128xf32>
    %254 = arith.addf %251, %253 : vector<2x128xf32>
    %255 = vector.extract_strided_slice %254 {offsets = [0, 0], sizes = [2, 96], strides = [1, 1]} : vector<2x128xf32> to vector<2x96xf32>
    %256 = arith.negf %255 : vector<2x96xf32>
    %257 = math.exp %256 : vector<2x96xf32>
    %cst_53 = arith.constant 1.000000e+00 : f32
    %258 = vector.broadcast %cst_53 : f32 to vector<2x96xf32>
    %259 = arith.addf %258, %257 : vector<2x96xf32>
    %260 = arith.divf %258, %259 : vector<2x96xf32>
    %261 = vector.extract_strided_slice %254 {offsets = [0, 96], sizes = [2, 32], strides = [1, 1]} : vector<2x128xf32> to vector<2x32xf32>
    %262 = math.tanh %261 : vector<2x32xf32>
    %263 = vector.extract_strided_slice %260 {offsets = [0, 32], sizes = [2, 32], strides = [1, 1]} : vector<2x96xf32> to vector<2x32xf32>
    %264 = arith.mulf %263, %247 : vector<2x32xf32>
    %265 = vector.extract_strided_slice %260 {offsets = [0, 0], sizes = [2, 32], strides = [1, 1]} : vector<2x96xf32> to vector<2x32xf32>
    %266 = arith.mulf %265, %262 : vector<2x32xf32>
    %267 = arith.addf %264, %266 : vector<2x32xf32>
    %268 = vector.extract_strided_slice %260 {offsets = [0, 64], sizes = [2, 32], strides = [1, 1]} : vector<2x96xf32> to vector<2x32xf32>
    %269 = math.tanh %267 : vector<2x32xf32>
    %270 = arith.mulf %268, %269 : vector<2x32xf32>
    %271 = vector.extract_strided_slice %206 {offsets = [6, 0], sizes = [2, 128], strides = [1, 1]} : vector<16x128xf32> to vector<2x128xf32>
    %272 = arith.truncf %270 : vector<2x32xf32> to vector<2x32xbf16>
    %cst_54 = arith.constant dense<0.000000e+00> : vector<2x128xf32>
    %273 = tpu.matmul %272, %200, %cst_54 {dimension_numbers = #tpu.dot_dimension_numbers<[1], [0], [0], [1], [0, 0, 1, 1], [], []>} : vector<2x32xbf16>, vector<32x128xbf16>, vector<2x128xf32> -> vector<2x128xf32>
    %274 = arith.addf %271, %273 : vector<2x128xf32>
    %275 = vector.extract_strided_slice %274 {offsets = [0, 0], sizes = [2, 96], strides = [1, 1]} : vector<2x128xf32> to vector<2x96xf32>
    %276 = arith.negf %275 : vector<2x96xf32>
    %277 = math.exp %276 : vector<2x96xf32>
    %cst_55 = arith.constant 1.000000e+00 : f32
    %278 = vector.broadcast %cst_55 : f32 to vector<2x96xf32>
    %279 = arith.addf %278, %277 : vector<2x96xf32>
    %280 = arith.divf %278, %279 : vector<2x96xf32>
    %281 = vector.extract_strided_slice %274 {offsets = [0, 96], sizes = [2, 32], strides = [1, 1]} : vector<2x128xf32> to vector<2x32xf32>
    %282 = math.tanh %281 : vector<2x32xf32>
    %283 = vector.extract_strided_slice %280 {offsets = [0, 32], sizes = [2, 32], strides = [1, 1]} : vector<2x96xf32> to vector<2x32xf32>
    %284 = arith.mulf %283, %267 : vector<2x32xf32>
    %285 = vector.extract_strided_slice %280 {offsets = [0, 0], sizes = [2, 32], strides = [1, 1]} : vector<2x96xf32> to vector<2x32xf32>
    %286 = arith.mulf %285, %282 : vector<2x32xf32>
    %287 = arith.addf %284, %286 : vector<2x32xf32>
    %288 = vector.extract_strided_slice %280 {offsets = [0, 64], sizes = [2, 32], strides = [1, 1]} : vector<2x96xf32> to vector<2x32xf32>
    %289 = math.tanh %287 : vector<2x32xf32>
    %290 = arith.mulf %288, %289 : vector<2x32xf32>
    %291 = vector.extract_strided_slice %206 {offsets = [8, 0], sizes = [2, 128], strides = [1, 1]} : vector<16x128xf32> to vector<2x128xf32>
    %292 = arith.truncf %290 : vector<2x32xf32> to vector<2x32xbf16>
    %cst_56 = arith.constant dense<0.000000e+00> : vector<2x128xf32>
    %293 = tpu.matmul %292, %200, %cst_56 {dimension_numbers = #tpu.dot_dimension_numbers<[1], [0], [0], [1], [0, 0, 1, 1], [], []>} : vector<2x32xbf16>, vector<32x128xbf16>, vector<2x128xf32> -> vector<2x128xf32>
    %294 = arith.addf %291, %293 : vector<2x128xf32>
    %295 = vector.extract_strided_slice %294 {offsets = [0, 0], sizes = [2, 96], strides = [1, 1]} : vector<2x128xf32> to vector<2x96xf32>
    %296 = arith.negf %295 : vector<2x96xf32>
    %297 = math.exp %296 : vector<2x96xf32>
    %cst_57 = arith.constant 1.000000e+00 : f32
    %298 = vector.broadcast %cst_57 : f32 to vector<2x96xf32>
    %299 = arith.addf %298, %297 : vector<2x96xf32>
    %300 = arith.divf %298, %299 : vector<2x96xf32>
    %301 = vector.extract_strided_slice %294 {offsets = [0, 96], sizes = [2, 32], strides = [1, 1]} : vector<2x128xf32> to vector<2x32xf32>
    %302 = math.tanh %301 : vector<2x32xf32>
    %303 = vector.extract_strided_slice %300 {offsets = [0, 32], sizes = [2, 32], strides = [1, 1]} : vector<2x96xf32> to vector<2x32xf32>
    %304 = arith.mulf %303, %287 : vector<2x32xf32>
    %305 = vector.extract_strided_slice %300 {offsets = [0, 0], sizes = [2, 32], strides = [1, 1]} : vector<2x96xf32> to vector<2x32xf32>
    %306 = arith.mulf %305, %302 : vector<2x32xf32>
    %307 = arith.addf %304, %306 : vector<2x32xf32>
    %308 = vector.extract_strided_slice %300 {offsets = [0, 64], sizes = [2, 32], strides = [1, 1]} : vector<2x96xf32> to vector<2x32xf32>
    %309 = math.tanh %307 : vector<2x32xf32>
    %310 = arith.mulf %308, %309 : vector<2x32xf32>
    %311 = vector.extract_strided_slice %206 {offsets = [10, 0], sizes = [2, 128], strides = [1, 1]} : vector<16x128xf32> to vector<2x128xf32>
    %312 = arith.truncf %310 : vector<2x32xf32> to vector<2x32xbf16>
    %cst_58 = arith.constant dense<0.000000e+00> : vector<2x128xf32>
    %313 = tpu.matmul %312, %200, %cst_58 {dimension_numbers = #tpu.dot_dimension_numbers<[1], [0], [0], [1], [0, 0, 1, 1], [], []>} : vector<2x32xbf16>, vector<32x128xbf16>, vector<2x128xf32> -> vector<2x128xf32>
    %314 = arith.addf %311, %313 : vector<2x128xf32>
    %315 = vector.extract_strided_slice %314 {offsets = [0, 0], sizes = [2, 96], strides = [1, 1]} : vector<2x128xf32> to vector<2x96xf32>
    %316 = arith.negf %315 : vector<2x96xf32>
    %317 = math.exp %316 : vector<2x96xf32>
    %cst_59 = arith.constant 1.000000e+00 : f32
    %318 = vector.broadcast %cst_59 : f32 to vector<2x96xf32>
    %319 = arith.addf %318, %317 : vector<2x96xf32>
    %320 = arith.divf %318, %319 : vector<2x96xf32>
    %321 = vector.extract_strided_slice %314 {offsets = [0, 96], sizes = [2, 32], strides = [1, 1]} : vector<2x128xf32> to vector<2x32xf32>
    %322 = math.tanh %321 : vector<2x32xf32>
    %323 = vector.extract_strided_slice %320 {offsets = [0, 32], sizes = [2, 32], strides = [1, 1]} : vector<2x96xf32> to vector<2x32xf32>
    %324 = arith.mulf %323, %307 : vector<2x32xf32>
    %325 = vector.extract_strided_slice %320 {offsets = [0, 0], sizes = [2, 32], strides = [1, 1]} : vector<2x96xf32> to vector<2x32xf32>
    %326 = arith.mulf %325, %322 : vector<2x32xf32>
    %327 = arith.addf %324, %326 : vector<2x32xf32>
    %328 = vector.extract_strided_slice %320 {offsets = [0, 64], sizes = [2, 32], strides = [1, 1]} : vector<2x96xf32> to vector<2x32xf32>
    %329 = math.tanh %327 : vector<2x32xf32>
    %330 = arith.mulf %328, %329 : vector<2x32xf32>
    %331 = vector.extract_strided_slice %206 {offsets = [12, 0], sizes = [2, 128], strides = [1, 1]} : vector<16x128xf32> to vector<2x128xf32>
    %332 = arith.truncf %330 : vector<2x32xf32> to vector<2x32xbf16>
    %cst_60 = arith.constant dense<0.000000e+00> : vector<2x128xf32>
    %333 = tpu.matmul %332, %200, %cst_60 {dimension_numbers = #tpu.dot_dimension_numbers<[1], [0], [0], [1], [0, 0, 1, 1], [], []>} : vector<2x32xbf16>, vector<32x128xbf16>, vector<2x128xf32> -> vector<2x128xf32>
    %334 = arith.addf %331, %333 : vector<2x128xf32>
    %335 = vector.extract_strided_slice %334 {offsets = [0, 0], sizes = [2, 96], strides = [1, 1]} : vector<2x128xf32> to vector<2x96xf32>
    %336 = arith.negf %335 : vector<2x96xf32>
    %337 = math.exp %336 : vector<2x96xf32>
    %cst_61 = arith.constant 1.000000e+00 : f32
    %338 = vector.broadcast %cst_61 : f32 to vector<2x96xf32>
    %339 = arith.addf %338, %337 : vector<2x96xf32>
    %340 = arith.divf %338, %339 : vector<2x96xf32>
    %341 = vector.extract_strided_slice %334 {offsets = [0, 96], sizes = [2, 32], strides = [1, 1]} : vector<2x128xf32> to vector<2x32xf32>
    %342 = math.tanh %341 : vector<2x32xf32>
    %343 = vector.extract_strided_slice %340 {offsets = [0, 32], sizes = [2, 32], strides = [1, 1]} : vector<2x96xf32> to vector<2x32xf32>
    %344 = arith.mulf %343, %327 : vector<2x32xf32>
    %345 = vector.extract_strided_slice %340 {offsets = [0, 0], sizes = [2, 32], strides = [1, 1]} : vector<2x96xf32> to vector<2x32xf32>
    %346 = arith.mulf %345, %342 : vector<2x32xf32>
    %347 = arith.addf %344, %346 : vector<2x32xf32>
    %348 = vector.extract_strided_slice %340 {offsets = [0, 64], sizes = [2, 32], strides = [1, 1]} : vector<2x96xf32> to vector<2x32xf32>
    %349 = math.tanh %347 : vector<2x32xf32>
    %350 = arith.mulf %348, %349 : vector<2x32xf32>
    %351 = vector.extract_strided_slice %206 {offsets = [14, 0], sizes = [2, 128], strides = [1, 1]} : vector<16x128xf32> to vector<2x128xf32>
    %352 = arith.truncf %350 : vector<2x32xf32> to vector<2x32xbf16>
    %cst_62 = arith.constant dense<0.000000e+00> : vector<2x128xf32>
    %353 = tpu.matmul %352, %200, %cst_62 {dimension_numbers = #tpu.dot_dimension_numbers<[1], [0], [0], [1], [0, 0, 1, 1], [], []>} : vector<2x32xbf16>, vector<32x128xbf16>, vector<2x128xf32> -> vector<2x128xf32>
    %354 = arith.addf %351, %353 : vector<2x128xf32>
    %355 = vector.extract_strided_slice %354 {offsets = [0, 0], sizes = [2, 96], strides = [1, 1]} : vector<2x128xf32> to vector<2x96xf32>
    %356 = arith.negf %355 : vector<2x96xf32>
    %357 = math.exp %356 : vector<2x96xf32>
    %cst_63 = arith.constant 1.000000e+00 : f32
    %358 = vector.broadcast %cst_63 : f32 to vector<2x96xf32>
    %359 = arith.addf %358, %357 : vector<2x96xf32>
    %360 = arith.divf %358, %359 : vector<2x96xf32>
    %361 = vector.extract_strided_slice %354 {offsets = [0, 96], sizes = [2, 32], strides = [1, 1]} : vector<2x128xf32> to vector<2x32xf32>
    %362 = math.tanh %361 : vector<2x32xf32>
    %363 = vector.extract_strided_slice %360 {offsets = [0, 32], sizes = [2, 32], strides = [1, 1]} : vector<2x96xf32> to vector<2x32xf32>
    %364 = arith.mulf %363, %347 : vector<2x32xf32>
    %365 = vector.extract_strided_slice %360 {offsets = [0, 0], sizes = [2, 32], strides = [1, 1]} : vector<2x96xf32> to vector<2x32xf32>
    %366 = arith.mulf %365, %362 : vector<2x32xf32>
    %367 = arith.addf %364, %366 : vector<2x32xf32>
    %368 = vector.extract_strided_slice %360 {offsets = [0, 64], sizes = [2, 32], strides = [1, 1]} : vector<2x96xf32> to vector<2x32xf32>
    %369 = math.tanh %367 : vector<2x32xf32>
    %370 = arith.mulf %368, %369 : vector<2x32xf32>
    %c0_64 = arith.constant 0 : index
    %c0_65 = arith.constant 0 : index
    %c0_66 = arith.constant 0 : index
    %371 = vector.load %arg24[%c0_64, %c0_65, %c0_66] : memref<2x2x32xf32, #tpu.memory_space<vmem>>, vector<1x2x32xf32>
    %372 = vector.shape_cast %371 : vector<1x2x32xf32> to vector<2x32xf32>
    %373 = vector.shape_cast %198 : vector<2x32xf32> to vector<1x2x32xf32>
    tpu.vector_store %arg24[%c0_64, %c0_65, %c0_66], %373 {strides = array<i32>} : memref<2x2x32xf32, #tpu.memory_space<vmem>>, vector<1x2x32xf32>,
    %c0_67 = arith.constant 0 : index
    %c0_68 = arith.constant 0 : index
    %c0_69 = arith.constant 0 : index
    %374 = vector.load %arg25[%c0_67, %c0_68, %c0_69] : memref<2x2x32xf32, #tpu.memory_space<vmem>>, vector<1x2x32xf32>
    %375 = vector.shape_cast %374 : vector<1x2x32xf32> to vector<2x32xf32>
    %376 = vector.shape_cast %195 : vector<2x32xf32> to vector<1x2x32xf32>
    tpu.vector_store %arg25[%c0_67, %c0_68, %c0_69], %376 {strides = array<i32>} : memref<2x2x32xf32, #tpu.memory_space<vmem>>, vector<1x2x32xf32>,
    %c1_70 = arith.constant 1 : index
    %c0_71 = arith.constant 0 : index
    %c0_72 = arith.constant 0 : index
    %377 = vector.load %arg24[%c1_70, %c0_71, %c0_72] : memref<2x2x32xf32, #tpu.memory_space<vmem>>, vector<1x2x32xf32>
    %378 = vector.shape_cast %377 : vector<1x2x32xf32> to vector<2x32xf32>
    %379 = vector.shape_cast %370 : vector<2x32xf32> to vector<1x2x32xf32>
    tpu.vector_store %arg24[%c1_70, %c0_71, %c0_72], %379 {strides = array<i32>} : memref<2x2x32xf32, #tpu.memory_space<vmem>>, vector<1x2x32xf32>,
    %c1_73 = arith.constant 1 : index
    %c0_74 = arith.constant 0 : index
    %c0_75 = arith.constant 0 : index
    %380 = vector.load %arg25[%c1_73, %c0_74, %c0_75] : memref<2x2x32xf32, #tpu.memory_space<vmem>>, vector<1x2x32xf32>
    %381 = vector.shape_cast %380 : vector<1x2x32xf32> to vector<2x32xf32>
    %382 = vector.shape_cast %367 : vector<2x32xf32> to vector<1x2x32xf32>
    tpu.vector_store %arg25[%c1_73, %c0_74, %c0_75], %382 {strides = array<i32>} : memref<2x2x32xf32, #tpu.memory_space<vmem>>, vector<1x2x32xf32>,
    %c0_76 = arith.constant 0 : index
    %c0_77 = arith.constant 0 : index
    %383 = vector.load %arg11[%c0_76, %c0_77] : memref<32x24xbf16, #tpu.memory_space<vmem>>, vector<32x24xbf16>
    %384 = arith.truncf %370 : vector<2x32xf32> to vector<2x32xbf16>
    %cst_78 = arith.constant dense<0.000000e+00> : vector<2x24xf32>
    %385 = tpu.matmul %384, %383, %cst_78 {dimension_numbers = #tpu.dot_dimension_numbers<[1], [0], [0], [1], [0, 0, 1, 1], [], []>} : vector<2x32xbf16>, vector<32x24xbf16>, vector<2x24xf32> -> vector<2x24xf32>
    %c0_79 = arith.constant 0 : index
    %c0_80 = arith.constant 0 : index
    %386 = vector.load %arg12[%c0_79, %c0_80] : memref<1x24xf32, #tpu.memory_space<vmem>>, vector<1x24xf32>
    %387 = vector.broadcast %386 : vector<1x24xf32> to vector<2x24xf32>
    %388 = arith.addf %385, %387 : vector<2x24xf32>
    %cst_81 = arith.constant 0.000000e+00 : f32
    %389 = vector.broadcast %cst_81 : f32 to vector<2x24xf32>
    %390 = arith.maximumf %388, %389 : vector<2x24xf32>
    %c0_82 = arith.constant 0 : index
    %c0_83 = arith.constant 0 : index
    %391 = vector.load %arg13[%c0_82, %c0_83] : memref<24x16xbf16, #tpu.memory_space<vmem>>, vector<24x16xbf16>
    %392 = arith.truncf %390 : vector<2x24xf32> to vector<2x24xbf16>
    %cst_84 = arith.constant dense<0.000000e+00> : vector<2x16xf32>
    %393 = tpu.matmul %392, %391, %cst_84 {dimension_numbers = #tpu.dot_dimension_numbers<[1], [0], [0], [1], [0, 0, 1, 1], [], []>} : vector<2x24xbf16>, vector<24x16xbf16>, vector<2x16xf32> -> vector<2x16xf32>
    %c0_85 = arith.constant 0 : index
    %c0_86 = arith.constant 0 : index
    %394 = vector.load %arg14[%c0_85, %c0_86] : memref<1x16xf32, #tpu.memory_space<vmem>>, vector<1x16xf32>
    %395 = vector.broadcast %394 : vector<1x16xf32> to vector<2x16xf32>
    %396 = arith.addf %393, %395 : vector<2x16xf32>
    %cst_87 = arith.constant 0.000000e+00 : f32
    %397 = vector.broadcast %cst_87 : f32 to vector<2x16xf32>
    %398 = arith.maximumf %396, %397 : vector<2x16xf32>
    %c0_88 = arith.constant 0 : index
    %c0_89 = arith.constant 0 : index
    %c0_90 = arith.constant 0 : index
    %399 = vector.load %arg17[%c0_88, %c0_89, %c0_90] : memref<2x32x64xbf16, #tpu.memory_space<vmem>>, vector<1x32x64xbf16>
    %400 = vector.shape_cast %399 : vector<1x32x64xbf16> to vector<32x64xbf16>
    %c1_91 = arith.constant 1 : index
    %c0_92 = arith.constant 0 : index
    %c0_93 = arith.constant 0 : index
    %401 = vector.load %arg17[%c1_91, %c0_92, %c0_93] : memref<2x32x64xbf16, #tpu.memory_space<vmem>>, vector<1x32x64xbf16>
    %402 = vector.shape_cast %401 : vector<1x32x64xbf16> to vector<32x64xbf16>
    %c0_94 = arith.constant 0 : index
    %c0_95 = arith.constant 0 : index
    %c0_96 = arith.constant 0 : index
    %403 = vector.load %arg18[%c0_94, %c0_95, %c0_96] : memref<2x1x64xf32, #tpu.memory_space<vmem>>, vector<1x1x64xf32>
    %404 = vector.shape_cast %403 : vector<1x1x64xf32> to vector<1x64xf32>
    %405 = vector.shape_cast %404 : vector<1x64xf32> to vector<1x64xf32>
    %406 = vector.broadcast %405 : vector<1x64xf32> to vector<2x64xf32>
    %c1_97 = arith.constant 1 : index
    %c0_98 = arith.constant 0 : index
    %c0_99 = arith.constant 0 : index
    %407 = vector.load %arg18[%c1_97, %c0_98, %c0_99] : memref<2x1x64xf32, #tpu.memory_space<vmem>>, vector<1x1x64xf32>
    %408 = vector.shape_cast %407 : vector<1x1x64xf32> to vector<1x64xf32>
    %409 = vector.shape_cast %408 : vector<1x64xf32> to vector<1x64xf32>
    %410 = vector.broadcast %409 : vector<1x64xf32> to vector<2x64xf32>
    %c0_100 = arith.constant 0 : index
    %c0_101 = arith.constant 0 : index
    %c0_102 = arith.constant 0 : index
    %411 = vector.load %arg15[%c0_100, %c0_101, %c0_102] : memref<2x2x16xf32, #tpu.memory_space<vmem>>, vector<1x2x16xf32>
    %412 = vector.shape_cast %411 : vector<1x2x16xf32> to vector<2x16xf32>
    %c1_103 = arith.constant 1 : index
    %c0_104 = arith.constant 0 : index
    %c0_105 = arith.constant 0 : index
    %413 = vector.load %arg15[%c1_103, %c0_104, %c0_105] : memref<2x2x16xf32, #tpu.memory_space<vmem>>, vector<1x2x16xf32>
    %414 = vector.shape_cast %413 : vector<1x2x16xf32> to vector<2x16xf32>
    %c0_106 = arith.constant 0 : index
    %c0_107 = arith.constant 0 : index
    %c0_108 = arith.constant 0 : index
    %415 = vector.load %arg16[%c0_106, %c0_107, %c0_108] : memref<2x2x16xf32, #tpu.memory_space<vmem>>, vector<1x2x16xf32>
    %416 = vector.shape_cast %415 : vector<1x2x16xf32> to vector<2x16xf32>
    %c1_109 = arith.constant 1 : index
    %c0_110 = arith.constant 0 : index
    %c0_111 = arith.constant 0 : index
    %417 = vector.load %arg16[%c1_109, %c0_110, %c0_111] : memref<2x2x16xf32, #tpu.memory_space<vmem>>, vector<1x2x16xf32>
    %418 = vector.shape_cast %417 : vector<1x2x16xf32> to vector<2x16xf32>
    %419 = tpu.concatenate %398, %412 in 1 : vector<2x16xf32>, vector<2x16xf32> -> vector<2x32xf32>
    %420 = arith.truncf %419 : vector<2x32xf32> to vector<2x32xbf16>
    %cst_112 = arith.constant dense<0.000000e+00> : vector<2x64xf32>
    %421 = tpu.matmul %420, %400, %cst_112 {dimension_numbers = #tpu.dot_dimension_numbers<[1], [0], [0], [1], [0, 0, 1, 1], [], []>} : vector<2x32xbf16>, vector<32x64xbf16>, vector<2x64xf32> -> vector<2x64xf32>
    %422 = arith.addf %421, %406 : vector<2x64xf32>
    %423 = vector.extract_strided_slice %422 {offsets = [0, 0], sizes = [2, 48], strides = [1, 1]} : vector<2x64xf32> to vector<2x48xf32>
    %424 = arith.negf %423 : vector<2x48xf32>
    %425 = math.exp %424 : vector<2x48xf32>
    %cst_113 = arith.constant 1.000000e+00 : f32
    %426 = vector.broadcast %cst_113 : f32 to vector<2x48xf32>
    %427 = arith.addf %426, %425 : vector<2x48xf32>
    %428 = arith.divf %426, %427 : vector<2x48xf32>
    %429 = vector.extract_strided_slice %422 {offsets = [0, 48], sizes = [2, 16], strides = [1, 1]} : vector<2x64xf32> to vector<2x16xf32>
    %430 = math.tanh %429 : vector<2x16xf32>
    %431 = vector.extract_strided_slice %428 {offsets = [0, 16], sizes = [2, 16], strides = [1, 1]} : vector<2x48xf32> to vector<2x16xf32>
    %432 = arith.mulf %431, %416 : vector<2x16xf32>
    %433 = vector.extract_strided_slice %428 {offsets = [0, 0], sizes = [2, 16], strides = [1, 1]} : vector<2x48xf32> to vector<2x16xf32>
    %434 = arith.mulf %433, %430 : vector<2x16xf32>
    %435 = arith.addf %432, %434 : vector<2x16xf32>
    %436 = vector.extract_strided_slice %428 {offsets = [0, 32], sizes = [2, 16], strides = [1, 1]} : vector<2x48xf32> to vector<2x16xf32>
    %437 = math.tanh %435 : vector<2x16xf32>
    %438 = arith.mulf %436, %437 : vector<2x16xf32>
    %439 = tpu.concatenate %438, %414 in 1 : vector<2x16xf32>, vector<2x16xf32> -> vector<2x32xf32>
    %440 = arith.truncf %439 : vector<2x32xf32> to vector<2x32xbf16>
    %cst_114 = arith.constant dense<0.000000e+00> : vector<2x64xf32>
    %441 = tpu.matmul %440, %402, %cst_114 {dimension_numbers = #tpu.dot_dimension_numbers<[1], [0], [0], [1], [0, 0, 1, 1], [], []>} : vector<2x32xbf16>, vector<32x64xbf16>, vector<2x64xf32> -> vector<2x64xf32>
    %442 = arith.addf %441, %410 : vector<2x64xf32>
    %443 = vector.extract_strided_slice %442 {offsets = [0, 0], sizes = [2, 48], strides = [1, 1]} : vector<2x64xf32> to vector<2x48xf32>
    %444 = arith.negf %443 : vector<2x48xf32>
    %445 = math.exp %444 : vector<2x48xf32>
    %cst_115 = arith.constant 1.000000e+00 : f32
    %446 = vector.broadcast %cst_115 : f32 to vector<2x48xf32>
    %447 = arith.addf %446, %445 : vector<2x48xf32>
    %448 = arith.divf %446, %447 : vector<2x48xf32>
    %449 = vector.extract_strided_slice %442 {offsets = [0, 48], sizes = [2, 16], strides = [1, 1]} : vector<2x64xf32> to vector<2x16xf32>
    %450 = math.tanh %449 : vector<2x16xf32>
    %451 = vector.extract_strided_slice %448 {offsets = [0, 16], sizes = [2, 16], strides = [1, 1]} : vector<2x48xf32> to vector<2x16xf32>
    %452 = arith.mulf %451, %418 : vector<2x16xf32>
    %453 = vector.extract_strided_slice %448 {offsets = [0, 0], sizes = [2, 16], strides = [1, 1]} : vector<2x48xf32> to vector<2x16xf32>
    %454 = arith.mulf %453, %450 : vector<2x16xf32>
    %455 = arith.addf %452, %454 : vector<2x16xf32>
    %456 = vector.extract_strided_slice %448 {offsets = [0, 32], sizes = [2, 16], strides = [1, 1]} : vector<2x48xf32> to vector<2x16xf32>
    %457 = math.tanh %455 : vector<2x16xf32>
    %458 = arith.mulf %456, %457 : vector<2x16xf32>
    %459 = tpu.concatenate %458, %438 in 1 : vector<2x16xf32>, vector<2x16xf32> -> vector<2x32xf32>
    %460 = arith.truncf %459 : vector<2x32xf32> to vector<2x32xbf16>
    %cst_116 = arith.constant dense<0.000000e+00> : vector<2x64xf32>
    %461 = tpu.matmul %460, %400, %cst_116 {dimension_numbers = #tpu.dot_dimension_numbers<[1], [0], [0], [1], [0, 0, 1, 1], [], []>} : vector<2x32xbf16>, vector<32x64xbf16>, vector<2x64xf32> -> vector<2x64xf32>
    %462 = arith.addf %461, %406 : vector<2x64xf32>
    %463 = vector.extract_strided_slice %462 {offsets = [0, 0], sizes = [2, 48], strides = [1, 1]} : vector<2x64xf32> to vector<2x48xf32>
    %464 = arith.negf %463 : vector<2x48xf32>
    %465 = math.exp %464 : vector<2x48xf32>
    %cst_117 = arith.constant 1.000000e+00 : f32
    %466 = vector.broadcast %cst_117 : f32 to vector<2x48xf32>
    %467 = arith.addf %466, %465 : vector<2x48xf32>
    %468 = arith.divf %466, %467 : vector<2x48xf32>
    %469 = vector.extract_strided_slice %462 {offsets = [0, 48], sizes = [2, 16], strides = [1, 1]} : vector<2x64xf32> to vector<2x16xf32>
    %470 = math.tanh %469 : vector<2x16xf32>
    %471 = vector.extract_strided_slice %468 {offsets = [0, 16], sizes = [2, 16], strides = [1, 1]} : vector<2x48xf32> to vector<2x16xf32>
    %472 = arith.mulf %471, %435 : vector<2x16xf32>
    %473 = vector.extract_strided_slice %468 {offsets = [0, 0], sizes = [2, 16], strides = [1, 1]} : vector<2x48xf32> to vector<2x16xf32>
    %474 = arith.mulf %473, %470 : vector<2x16xf32>
    %475 = arith.addf %472, %474 : vector<2x16xf32>
    %476 = vector.extract_strided_slice %468 {offsets = [0, 32], sizes = [2, 16], strides = [1, 1]} : vector<2x48xf32> to vector<2x16xf32>
    %477 = math.tanh %475 : vector<2x16xf32>
    %478 = arith.mulf %476, %477 : vector<2x16xf32>
    %479 = tpu.concatenate %478, %458 in 1 : vector<2x16xf32>, vector<2x16xf32> -> vector<2x32xf32>
    %480 = arith.truncf %479 : vector<2x32xf32> to vector<2x32xbf16>
    %cst_118 = arith.constant dense<0.000000e+00> : vector<2x64xf32>
    %481 = tpu.matmul %480, %402, %cst_118 {dimension_numbers = #tpu.dot_dimension_numbers<[1], [0], [0], [1], [0, 0, 1, 1], [], []>} : vector<2x32xbf16>, vector<32x64xbf16>, vector<2x64xf32> -> vector<2x64xf32>
    %482 = arith.addf %481, %410 : vector<2x64xf32>
    %483 = vector.extract_strided_slice %482 {offsets = [0, 0], sizes = [2, 48], strides = [1, 1]} : vector<2x64xf32> to vector<2x48xf32>
    %484 = arith.negf %483 : vector<2x48xf32>
    %485 = math.exp %484 : vector<2x48xf32>
    %cst_119 = arith.constant 1.000000e+00 : f32
    %486 = vector.broadcast %cst_119 : f32 to vector<2x48xf32>
    %487 = arith.addf %486, %485 : vector<2x48xf32>
    %488 = arith.divf %486, %487 : vector<2x48xf32>
    %489 = vector.extract_strided_slice %482 {offsets = [0, 48], sizes = [2, 16], strides = [1, 1]} : vector<2x64xf32> to vector<2x16xf32>
    %490 = math.tanh %489 : vector<2x16xf32>
    %491 = vector.extract_strided_slice %488 {offsets = [0, 16], sizes = [2, 16], strides = [1, 1]} : vector<2x48xf32> to vector<2x16xf32>
    %492 = arith.mulf %491, %455 : vector<2x16xf32>
    %493 = vector.extract_strided_slice %488 {offsets = [0, 0], sizes = [2, 16], strides = [1, 1]} : vector<2x48xf32> to vector<2x16xf32>
    %494 = arith.mulf %493, %490 : vector<2x16xf32>
    %495 = arith.addf %492, %494 : vector<2x16xf32>
    %496 = vector.extract_strided_slice %488 {offsets = [0, 32], sizes = [2, 16], strides = [1, 1]} : vector<2x48xf32> to vector<2x16xf32>
    %497 = math.tanh %495 : vector<2x16xf32>
    %498 = arith.mulf %496, %497 : vector<2x16xf32>
    %499 = tpu.concatenate %498, %478 in 1 : vector<2x16xf32>, vector<2x16xf32> -> vector<2x32xf32>
    %500 = arith.truncf %499 : vector<2x32xf32> to vector<2x32xbf16>
    %cst_120 = arith.constant dense<0.000000e+00> : vector<2x64xf32>
    %501 = tpu.matmul %500, %400, %cst_120 {dimension_numbers = #tpu.dot_dimension_numbers<[1], [0], [0], [1], [0, 0, 1, 1], [], []>} : vector<2x32xbf16>, vector<32x64xbf16>, vector<2x64xf32> -> vector<2x64xf32>
    %502 = arith.addf %501, %406 : vector<2x64xf32>
    %503 = vector.extract_strided_slice %502 {offsets = [0, 0], sizes = [2, 48], strides = [1, 1]} : vector<2x64xf32> to vector<2x48xf32>
    %504 = arith.negf %503 : vector<2x48xf32>
    %505 = math.exp %504 : vector<2x48xf32>
    %cst_121 = arith.constant 1.000000e+00 : f32
    %506 = vector.broadcast %cst_121 : f32 to vector<2x48xf32>
    %507 = arith.addf %506, %505 : vector<2x48xf32>
    %508 = arith.divf %506, %507 : vector<2x48xf32>
    %509 = vector.extract_strided_slice %502 {offsets = [0, 48], sizes = [2, 16], strides = [1, 1]} : vector<2x64xf32> to vector<2x16xf32>
    %510 = math.tanh %509 : vector<2x16xf32>
    %511 = vector.extract_strided_slice %508 {offsets = [0, 16], sizes = [2, 16], strides = [1, 1]} : vector<2x48xf32> to vector<2x16xf32>
    %512 = arith.mulf %511, %475 : vector<2x16xf32>
    %513 = vector.extract_strided_slice %508 {offsets = [0, 0], sizes = [2, 16], strides = [1, 1]} : vector<2x48xf32> to vector<2x16xf32>
    %514 = arith.mulf %513, %510 : vector<2x16xf32>
    %515 = arith.addf %512, %514 : vector<2x16xf32>
    %516 = vector.extract_strided_slice %508 {offsets = [0, 32], sizes = [2, 16], strides = [1, 1]} : vector<2x48xf32> to vector<2x16xf32>
    %517 = math.tanh %515 : vector<2x16xf32>
    %518 = arith.mulf %516, %517 : vector<2x16xf32>
    %519 = tpu.concatenate %518, %498 in 1 : vector<2x16xf32>, vector<2x16xf32> -> vector<2x32xf32>
    %520 = arith.truncf %519 : vector<2x32xf32> to vector<2x32xbf16>
    %cst_122 = arith.constant dense<0.000000e+00> : vector<2x64xf32>
    %521 = tpu.matmul %520, %402, %cst_122 {dimension_numbers = #tpu.dot_dimension_numbers<[1], [0], [0], [1], [0, 0, 1, 1], [], []>} : vector<2x32xbf16>, vector<32x64xbf16>, vector<2x64xf32> -> vector<2x64xf32>
    %522 = arith.addf %521, %410 : vector<2x64xf32>
    %523 = vector.extract_strided_slice %522 {offsets = [0, 0], sizes = [2, 48], strides = [1, 1]} : vector<2x64xf32> to vector<2x48xf32>
    %524 = arith.negf %523 : vector<2x48xf32>
    %525 = math.exp %524 : vector<2x48xf32>
    %cst_123 = arith.constant 1.000000e+00 : f32
    %526 = vector.broadcast %cst_123 : f32 to vector<2x48xf32>
    %527 = arith.addf %526, %525 : vector<2x48xf32>
    %528 = arith.divf %526, %527 : vector<2x48xf32>
    %529 = vector.extract_strided_slice %522 {offsets = [0, 48], sizes = [2, 16], strides = [1, 1]} : vector<2x64xf32> to vector<2x16xf32>
    %530 = math.tanh %529 : vector<2x16xf32>
    %531 = vector.extract_strided_slice %528 {offsets = [0, 16], sizes = [2, 16], strides = [1, 1]} : vector<2x48xf32> to vector<2x16xf32>
    %532 = arith.mulf %531, %495 : vector<2x16xf32>
    %533 = vector.extract_strided_slice %528 {offsets = [0, 0], sizes = [2, 16], strides = [1, 1]} : vector<2x48xf32> to vector<2x16xf32>
    %534 = arith.mulf %533, %530 : vector<2x16xf32>
    %535 = arith.addf %532, %534 : vector<2x16xf32>
    %536 = vector.extract_strided_slice %528 {offsets = [0, 32], sizes = [2, 16], strides = [1, 1]} : vector<2x48xf32> to vector<2x16xf32>
    %537 = math.tanh %535 : vector<2x16xf32>
    %538 = arith.mulf %536, %537 : vector<2x16xf32>
    %539 = tpu.concatenate %538, %518 in 1 : vector<2x16xf32>, vector<2x16xf32> -> vector<2x32xf32>
    %540 = arith.truncf %539 : vector<2x32xf32> to vector<2x32xbf16>
    %cst_124 = arith.constant dense<0.000000e+00> : vector<2x64xf32>
    %541 = tpu.matmul %540, %400, %cst_124 {dimension_numbers = #tpu.dot_dimension_numbers<[1], [0], [0], [1], [0, 0, 1, 1], [], []>} : vector<2x32xbf16>, vector<32x64xbf16>, vector<2x64xf32> -> vector<2x64xf32>
    %542 = arith.addf %541, %406 : vector<2x64xf32>
    %543 = vector.extract_strided_slice %542 {offsets = [0, 0], sizes = [2, 48], strides = [1, 1]} : vector<2x64xf32> to vector<2x48xf32>
    %544 = arith.negf %543 : vector<2x48xf32>
    %545 = math.exp %544 : vector<2x48xf32>
    %cst_125 = arith.constant 1.000000e+00 : f32
    %546 = vector.broadcast %cst_125 : f32 to vector<2x48xf32>
    %547 = arith.addf %546, %545 : vector<2x48xf32>
    %548 = arith.divf %546, %547 : vector<2x48xf32>
    %549 = vector.extract_strided_slice %542 {offsets = [0, 48], sizes = [2, 16], strides = [1, 1]} : vector<2x64xf32> to vector<2x16xf32>
    %550 = math.tanh %549 : vector<2x16xf32>
    %551 = vector.extract_strided_slice %548 {offsets = [0, 16], sizes = [2, 16], strides = [1, 1]} : vector<2x48xf32> to vector<2x16xf32>
    %552 = arith.mulf %551, %515 : vector<2x16xf32>
    %553 = vector.extract_strided_slice %548 {offsets = [0, 0], sizes = [2, 16], strides = [1, 1]} : vector<2x48xf32> to vector<2x16xf32>
    %554 = arith.mulf %553, %550 : vector<2x16xf32>
    %555 = arith.addf %552, %554 : vector<2x16xf32>
    %556 = vector.extract_strided_slice %548 {offsets = [0, 32], sizes = [2, 16], strides = [1, 1]} : vector<2x48xf32> to vector<2x16xf32>
    %557 = math.tanh %555 : vector<2x16xf32>
    %558 = arith.mulf %556, %557 : vector<2x16xf32>
    %559 = tpu.concatenate %558, %538 in 1 : vector<2x16xf32>, vector<2x16xf32> -> vector<2x32xf32>
    %560 = arith.truncf %559 : vector<2x32xf32> to vector<2x32xbf16>
    %cst_126 = arith.constant dense<0.000000e+00> : vector<2x64xf32>
    %561 = tpu.matmul %560, %402, %cst_126 {dimension_numbers = #tpu.dot_dimension_numbers<[1], [0], [0], [1], [0, 0, 1, 1], [], []>} : vector<2x32xbf16>, vector<32x64xbf16>, vector<2x64xf32> -> vector<2x64xf32>
    %562 = arith.addf %561, %410 : vector<2x64xf32>
    %563 = vector.extract_strided_slice %562 {offsets = [0, 0], sizes = [2, 48], strides = [1, 1]} : vector<2x64xf32> to vector<2x48xf32>
    %564 = arith.negf %563 : vector<2x48xf32>
    %565 = math.exp %564 : vector<2x48xf32>
    %cst_127 = arith.constant 1.000000e+00 : f32
    %566 = vector.broadcast %cst_127 : f32 to vector<2x48xf32>
    %567 = arith.addf %566, %565 : vector<2x48xf32>
    %568 = arith.divf %566, %567 : vector<2x48xf32>
    %569 = vector.extract_strided_slice %562 {offsets = [0, 48], sizes = [2, 16], strides = [1, 1]} : vector<2x64xf32> to vector<2x16xf32>
    %570 = math.tanh %569 : vector<2x16xf32>
    %571 = vector.extract_strided_slice %568 {offsets = [0, 16], sizes = [2, 16], strides = [1, 1]} : vector<2x48xf32> to vector<2x16xf32>
    %572 = arith.mulf %571, %535 : vector<2x16xf32>
    %573 = vector.extract_strided_slice %568 {offsets = [0, 0], sizes = [2, 16], strides = [1, 1]} : vector<2x48xf32> to vector<2x16xf32>
    %574 = arith.mulf %573, %570 : vector<2x16xf32>
    %575 = arith.addf %572, %574 : vector<2x16xf32>
    %576 = vector.extract_strided_slice %568 {offsets = [0, 32], sizes = [2, 16], strides = [1, 1]} : vector<2x48xf32> to vector<2x16xf32>
    %577 = math.tanh %575 : vector<2x16xf32>
    %578 = arith.mulf %576, %577 : vector<2x16xf32>
    %579 = tpu.concatenate %578, %558 in 1 : vector<2x16xf32>, vector<2x16xf32> -> vector<2x32xf32>
    %580 = arith.truncf %579 : vector<2x32xf32> to vector<2x32xbf16>
    %cst_128 = arith.constant dense<0.000000e+00> : vector<2x64xf32>
    %581 = tpu.matmul %580, %400, %cst_128 {dimension_numbers = #tpu.dot_dimension_numbers<[1], [0], [0], [1], [0, 0, 1, 1], [], []>} : vector<2x32xbf16>, vector<32x64xbf16>, vector<2x64xf32> -> vector<2x64xf32>
    %582 = arith.addf %581, %406 : vector<2x64xf32>
    %583 = vector.extract_strided_slice %582 {offsets = [0, 0], sizes = [2, 48], strides = [1, 1]} : vector<2x64xf32> to vector<2x48xf32>
    %584 = arith.negf %583 : vector<2x48xf32>
    %585 = math.exp %584 : vector<2x48xf32>
    %cst_129 = arith.constant 1.000000e+00 : f32
    %586 = vector.broadcast %cst_129 : f32 to vector<2x48xf32>
    %587 = arith.addf %586, %585 : vector<2x48xf32>
    %588 = arith.divf %586, %587 : vector<2x48xf32>
    %589 = vector.extract_strided_slice %582 {offsets = [0, 48], sizes = [2, 16], strides = [1, 1]} : vector<2x64xf32> to vector<2x16xf32>
    %590 = math.tanh %589 : vector<2x16xf32>
    %591 = vector.extract_strided_slice %588 {offsets = [0, 16], sizes = [2, 16], strides = [1, 1]} : vector<2x48xf32> to vector<2x16xf32>
    %592 = arith.mulf %591, %555 : vector<2x16xf32>
    %593 = vector.extract_strided_slice %588 {offsets = [0, 0], sizes = [2, 16], strides = [1, 1]} : vector<2x48xf32> to vector<2x16xf32>
    %594 = arith.mulf %593, %590 : vector<2x16xf32>
    %595 = arith.addf %592, %594 : vector<2x16xf32>
    %596 = vector.extract_strided_slice %588 {offsets = [0, 32], sizes = [2, 16], strides = [1, 1]} : vector<2x48xf32> to vector<2x16xf32>
    %597 = math.tanh %595 : vector<2x16xf32>
    %598 = arith.mulf %596, %597 : vector<2x16xf32>
    %599 = tpu.concatenate %598, %578 in 1 : vector<2x16xf32>, vector<2x16xf32> -> vector<2x32xf32>
    %600 = arith.truncf %599 : vector<2x32xf32> to vector<2x32xbf16>
    %cst_130 = arith.constant dense<0.000000e+00> : vector<2x64xf32>
    %601 = tpu.matmul %600, %402, %cst_130 {dimension_numbers = #tpu.dot_dimension_numbers<[1], [0], [0], [1], [0, 0, 1, 1], [], []>} : vector<2x32xbf16>, vector<32x64xbf16>, vector<2x64xf32> -> vector<2x64xf32>
    %602 = arith.addf %601, %410 : vector<2x64xf32>
    %603 = vector.extract_strided_slice %602 {offsets = [0, 0], sizes = [2, 48], strides = [1, 1]} : vector<2x64xf32> to vector<2x48xf32>
    %604 = arith.negf %603 : vector<2x48xf32>
    %605 = math.exp %604 : vector<2x48xf32>
    %cst_131 = arith.constant 1.000000e+00 : f32
    %606 = vector.broadcast %cst_131 : f32 to vector<2x48xf32>
    %607 = arith.addf %606, %605 : vector<2x48xf32>
    %608 = arith.divf %606, %607 : vector<2x48xf32>
    %609 = vector.extract_strided_slice %602 {offsets = [0, 48], sizes = [2, 16], strides = [1, 1]} : vector<2x64xf32> to vector<2x16xf32>
    %610 = math.tanh %609 : vector<2x16xf32>
    %611 = vector.extract_strided_slice %608 {offsets = [0, 16], sizes = [2, 16], strides = [1, 1]} : vector<2x48xf32> to vector<2x16xf32>
    %612 = arith.mulf %611, %575 : vector<2x16xf32>
    %613 = vector.extract_strided_slice %608 {offsets = [0, 0], sizes = [2, 16], strides = [1, 1]} : vector<2x48xf32> to vector<2x16xf32>
    %614 = arith.mulf %613, %610 : vector<2x16xf32>
    %615 = arith.addf %612, %614 : vector<2x16xf32>
    %616 = vector.extract_strided_slice %608 {offsets = [0, 32], sizes = [2, 16], strides = [1, 1]} : vector<2x48xf32> to vector<2x16xf32>
    %617 = math.tanh %615 : vector<2x16xf32>
    %618 = arith.mulf %616, %617 : vector<2x16xf32>
    %619 = tpu.concatenate %618, %598 in 1 : vector<2x16xf32>, vector<2x16xf32> -> vector<2x32xf32>
    %620 = arith.truncf %619 : vector<2x32xf32> to vector<2x32xbf16>
    %cst_132 = arith.constant dense<0.000000e+00> : vector<2x64xf32>
    %621 = tpu.matmul %620, %400, %cst_132 {dimension_numbers = #tpu.dot_dimension_numbers<[1], [0], [0], [1], [0, 0, 1, 1], [], []>} : vector<2x32xbf16>, vector<32x64xbf16>, vector<2x64xf32> -> vector<2x64xf32>
    %622 = arith.addf %621, %406 : vector<2x64xf32>
    %623 = vector.extract_strided_slice %622 {offsets = [0, 0], sizes = [2, 48], strides = [1, 1]} : vector<2x64xf32> to vector<2x48xf32>
    %624 = arith.negf %623 : vector<2x48xf32>
    %625 = math.exp %624 : vector<2x48xf32>
    %cst_133 = arith.constant 1.000000e+00 : f32
    %626 = vector.broadcast %cst_133 : f32 to vector<2x48xf32>
    %627 = arith.addf %626, %625 : vector<2x48xf32>
    %628 = arith.divf %626, %627 : vector<2x48xf32>
    %629 = vector.extract_strided_slice %622 {offsets = [0, 48], sizes = [2, 16], strides = [1, 1]} : vector<2x64xf32> to vector<2x16xf32>
    %630 = math.tanh %629 : vector<2x16xf32>
    %631 = vector.extract_strided_slice %628 {offsets = [0, 16], sizes = [2, 16], strides = [1, 1]} : vector<2x48xf32> to vector<2x16xf32>
    %632 = arith.mulf %631, %595 : vector<2x16xf32>
    %633 = vector.extract_strided_slice %628 {offsets = [0, 0], sizes = [2, 16], strides = [1, 1]} : vector<2x48xf32> to vector<2x16xf32>
    %634 = arith.mulf %633, %630 : vector<2x16xf32>
    %635 = arith.addf %632, %634 : vector<2x16xf32>
    %636 = vector.extract_strided_slice %628 {offsets = [0, 32], sizes = [2, 16], strides = [1, 1]} : vector<2x48xf32> to vector<2x16xf32>
    %637 = math.tanh %635 : vector<2x16xf32>
    %638 = arith.mulf %636, %637 : vector<2x16xf32>
    %639 = tpu.concatenate %638, %618 in 1 : vector<2x16xf32>, vector<2x16xf32> -> vector<2x32xf32>
    %640 = arith.truncf %639 : vector<2x32xf32> to vector<2x32xbf16>
    %cst_134 = arith.constant dense<0.000000e+00> : vector<2x64xf32>
    %641 = tpu.matmul %640, %402, %cst_134 {dimension_numbers = #tpu.dot_dimension_numbers<[1], [0], [0], [1], [0, 0, 1, 1], [], []>} : vector<2x32xbf16>, vector<32x64xbf16>, vector<2x64xf32> -> vector<2x64xf32>
    %642 = arith.addf %641, %410 : vector<2x64xf32>
    %643 = vector.extract_strided_slice %642 {offsets = [0, 0], sizes = [2, 48], strides = [1, 1]} : vector<2x64xf32> to vector<2x48xf32>
    %644 = arith.negf %643 : vector<2x48xf32>
    %645 = math.exp %644 : vector<2x48xf32>
    %cst_135 = arith.constant 1.000000e+00 : f32
    %646 = vector.broadcast %cst_135 : f32 to vector<2x48xf32>
    %647 = arith.addf %646, %645 : vector<2x48xf32>
    %648 = arith.divf %646, %647 : vector<2x48xf32>
    %649 = vector.extract_strided_slice %642 {offsets = [0, 48], sizes = [2, 16], strides = [1, 1]} : vector<2x64xf32> to vector<2x16xf32>
    %650 = math.tanh %649 : vector<2x16xf32>
    %651 = vector.extract_strided_slice %648 {offsets = [0, 16], sizes = [2, 16], strides = [1, 1]} : vector<2x48xf32> to vector<2x16xf32>
    %652 = arith.mulf %651, %615 : vector<2x16xf32>
    %653 = vector.extract_strided_slice %648 {offsets = [0, 0], sizes = [2, 16], strides = [1, 1]} : vector<2x48xf32> to vector<2x16xf32>
    %654 = arith.mulf %653, %650 : vector<2x16xf32>
    %655 = arith.addf %652, %654 : vector<2x16xf32>
    %656 = vector.extract_strided_slice %648 {offsets = [0, 32], sizes = [2, 16], strides = [1, 1]} : vector<2x48xf32> to vector<2x16xf32>
    %657 = math.tanh %655 : vector<2x16xf32>
    %658 = arith.mulf %656, %657 : vector<2x16xf32>
    %659 = tpu.concatenate %658, %638 in 1 : vector<2x16xf32>, vector<2x16xf32> -> vector<2x32xf32>
    %660 = arith.truncf %659 : vector<2x32xf32> to vector<2x32xbf16>
    %cst_136 = arith.constant dense<0.000000e+00> : vector<2x64xf32>
    %661 = tpu.matmul %660, %400, %cst_136 {dimension_numbers = #tpu.dot_dimension_numbers<[1], [0], [0], [1], [0, 0, 1, 1], [], []>} : vector<2x32xbf16>, vector<32x64xbf16>, vector<2x64xf32> -> vector<2x64xf32>
    %662 = arith.addf %661, %406 : vector<2x64xf32>
    %663 = vector.extract_strided_slice %662 {offsets = [0, 0], sizes = [2, 48], strides = [1, 1]} : vector<2x64xf32> to vector<2x48xf32>
    %664 = arith.negf %663 : vector<2x48xf32>
    %665 = math.exp %664 : vector<2x48xf32>
    %cst_137 = arith.constant 1.000000e+00 : f32
    %666 = vector.broadcast %cst_137 : f32 to vector<2x48xf32>
    %667 = arith.addf %666, %665 : vector<2x48xf32>
    %668 = arith.divf %666, %667 : vector<2x48xf32>
    %669 = vector.extract_strided_slice %662 {offsets = [0, 48], sizes = [2, 16], strides = [1, 1]} : vector<2x64xf32> to vector<2x16xf32>
    %670 = math.tanh %669 : vector<2x16xf32>
    %671 = vector.extract_strided_slice %668 {offsets = [0, 16], sizes = [2, 16], strides = [1, 1]} : vector<2x48xf32> to vector<2x16xf32>
    %672 = arith.mulf %671, %635 : vector<2x16xf32>
    %673 = vector.extract_strided_slice %668 {offsets = [0, 0], sizes = [2, 16], strides = [1, 1]} : vector<2x48xf32> to vector<2x16xf32>
    %674 = arith.mulf %673, %670 : vector<2x16xf32>
    %675 = arith.addf %672, %674 : vector<2x16xf32>
    %676 = vector.extract_strided_slice %668 {offsets = [0, 32], sizes = [2, 16], strides = [1, 1]} : vector<2x48xf32> to vector<2x16xf32>
    %677 = math.tanh %675 : vector<2x16xf32>
    %678 = arith.mulf %676, %677 : vector<2x16xf32>
    %679 = tpu.concatenate %678, %658 in 1 : vector<2x16xf32>, vector<2x16xf32> -> vector<2x32xf32>
    %680 = arith.truncf %679 : vector<2x32xf32> to vector<2x32xbf16>
    %cst_138 = arith.constant dense<0.000000e+00> : vector<2x64xf32>
    %681 = tpu.matmul %680, %402, %cst_138 {dimension_numbers = #tpu.dot_dimension_numbers<[1], [0], [0], [1], [0, 0, 1, 1], [], []>} : vector<2x32xbf16>, vector<32x64xbf16>, vector<2x64xf32> -> vector<2x64xf32>
    %682 = arith.addf %681, %410 : vector<2x64xf32>
    %683 = vector.extract_strided_slice %682 {offsets = [0, 0], sizes = [2, 48], strides = [1, 1]} : vector<2x64xf32> to vector<2x48xf32>
    %684 = arith.negf %683 : vector<2x48xf32>
    %685 = math.exp %684 : vector<2x48xf32>
    %cst_139 = arith.constant 1.000000e+00 : f32
    %686 = vector.broadcast %cst_139 : f32 to vector<2x48xf32>
    %687 = arith.addf %686, %685 : vector<2x48xf32>
    %688 = arith.divf %686, %687 : vector<2x48xf32>
    %689 = vector.extract_strided_slice %682 {offsets = [0, 48], sizes = [2, 16], strides = [1, 1]} : vector<2x64xf32> to vector<2x16xf32>
    %690 = math.tanh %689 : vector<2x16xf32>
    %691 = vector.extract_strided_slice %688 {offsets = [0, 16], sizes = [2, 16], strides = [1, 1]} : vector<2x48xf32> to vector<2x16xf32>
    %692 = arith.mulf %691, %655 : vector<2x16xf32>
    %693 = vector.extract_strided_slice %688 {offsets = [0, 0], sizes = [2, 16], strides = [1, 1]} : vector<2x48xf32> to vector<2x16xf32>
    %694 = arith.mulf %693, %690 : vector<2x16xf32>
    %695 = arith.addf %692, %694 : vector<2x16xf32>
    %696 = vector.extract_strided_slice %688 {offsets = [0, 32], sizes = [2, 16], strides = [1, 1]} : vector<2x48xf32> to vector<2x16xf32>
    %697 = math.tanh %695 : vector<2x16xf32>
    %698 = arith.mulf %696, %697 : vector<2x16xf32>
    %699 = tpu.concatenate %698, %678 in 1 : vector<2x16xf32>, vector<2x16xf32> -> vector<2x32xf32>
    %700 = arith.truncf %699 : vector<2x32xf32> to vector<2x32xbf16>
    %cst_140 = arith.constant dense<0.000000e+00> : vector<2x64xf32>
    %701 = tpu.matmul %700, %400, %cst_140 {dimension_numbers = #tpu.dot_dimension_numbers<[1], [0], [0], [1], [0, 0, 1, 1], [], []>} : vector<2x32xbf16>, vector<32x64xbf16>, vector<2x64xf32> -> vector<2x64xf32>
    %702 = arith.addf %701, %406 : vector<2x64xf32>
    %703 = vector.extract_strided_slice %702 {offsets = [0, 0], sizes = [2, 48], strides = [1, 1]} : vector<2x64xf32> to vector<2x48xf32>
    %704 = arith.negf %703 : vector<2x48xf32>
    %705 = math.exp %704 : vector<2x48xf32>
    %cst_141 = arith.constant 1.000000e+00 : f32
    %706 = vector.broadcast %cst_141 : f32 to vector<2x48xf32>
    %707 = arith.addf %706, %705 : vector<2x48xf32>
    %708 = arith.divf %706, %707 : vector<2x48xf32>
    %709 = vector.extract_strided_slice %702 {offsets = [0, 48], sizes = [2, 16], strides = [1, 1]} : vector<2x64xf32> to vector<2x16xf32>
    %710 = math.tanh %709 : vector<2x16xf32>
    %711 = vector.extract_strided_slice %708 {offsets = [0, 16], sizes = [2, 16], strides = [1, 1]} : vector<2x48xf32> to vector<2x16xf32>
    %712 = arith.mulf %711, %675 : vector<2x16xf32>
    %713 = vector.extract_strided_slice %708 {offsets = [0, 0], sizes = [2, 16], strides = [1, 1]} : vector<2x48xf32> to vector<2x16xf32>
    %714 = arith.mulf %713, %710 : vector<2x16xf32>
    %715 = arith.addf %712, %714 : vector<2x16xf32>
    %716 = vector.extract_strided_slice %708 {offsets = [0, 32], sizes = [2, 16], strides = [1, 1]} : vector<2x48xf32> to vector<2x16xf32>
    %717 = math.tanh %715 : vector<2x16xf32>
    %718 = arith.mulf %716, %717 : vector<2x16xf32>
    %719 = tpu.concatenate %718, %698 in 1 : vector<2x16xf32>, vector<2x16xf32> -> vector<2x32xf32>
    %720 = arith.truncf %719 : vector<2x32xf32> to vector<2x32xbf16>
    %cst_142 = arith.constant dense<0.000000e+00> : vector<2x64xf32>
    %721 = tpu.matmul %720, %402, %cst_142 {dimension_numbers = #tpu.dot_dimension_numbers<[1], [0], [0], [1], [0, 0, 1, 1], [], []>} : vector<2x32xbf16>, vector<32x64xbf16>, vector<2x64xf32> -> vector<2x64xf32>
    %722 = arith.addf %721, %410 : vector<2x64xf32>
    %723 = vector.extract_strided_slice %722 {offsets = [0, 0], sizes = [2, 48], strides = [1, 1]} : vector<2x64xf32> to vector<2x48xf32>
    %724 = arith.negf %723 : vector<2x48xf32>
    %725 = math.exp %724 : vector<2x48xf32>
    %cst_143 = arith.constant 1.000000e+00 : f32
    %726 = vector.broadcast %cst_143 : f32 to vector<2x48xf32>
    %727 = arith.addf %726, %725 : vector<2x48xf32>
    %728 = arith.divf %726, %727 : vector<2x48xf32>
    %729 = vector.extract_strided_slice %722 {offsets = [0, 48], sizes = [2, 16], strides = [1, 1]} : vector<2x64xf32> to vector<2x16xf32>
    %730 = math.tanh %729 : vector<2x16xf32>
    %731 = vector.extract_strided_slice %728 {offsets = [0, 16], sizes = [2, 16], strides = [1, 1]} : vector<2x48xf32> to vector<2x16xf32>
    %732 = arith.mulf %731, %695 : vector<2x16xf32>
    %733 = vector.extract_strided_slice %728 {offsets = [0, 0], sizes = [2, 16], strides = [1, 1]} : vector<2x48xf32> to vector<2x16xf32>
    %734 = arith.mulf %733, %730 : vector<2x16xf32>
    %735 = arith.addf %732, %734 : vector<2x16xf32>
    %736 = vector.extract_strided_slice %728 {offsets = [0, 32], sizes = [2, 16], strides = [1, 1]} : vector<2x48xf32> to vector<2x16xf32>
    %737 = math.tanh %735 : vector<2x16xf32>
    %738 = arith.mulf %736, %737 : vector<2x16xf32>
    %c0_144 = arith.constant 0 : index
    %c0_145 = arith.constant 0 : index
    %c0_146 = arith.constant 0 : index
    %739 = vector.load %arg26[%c0_144, %c0_145, %c0_146] : memref<2x2x16xf32, #tpu.memory_space<vmem>>, vector<1x2x16xf32>
    %740 = vector.shape_cast %739 : vector<1x2x16xf32> to vector<2x16xf32>
    %741 = vector.shape_cast %718 : vector<2x16xf32> to vector<1x2x16xf32>
    tpu.vector_store %arg26[%c0_144, %c0_145, %c0_146], %741 {strides = array<i32>} : memref<2x2x16xf32, #tpu.memory_space<vmem>>, vector<1x2x16xf32>,
    %c0_147 = arith.constant 0 : index
    %c0_148 = arith.constant 0 : index
    %c0_149 = arith.constant 0 : index
    %742 = vector.load %arg27[%c0_147, %c0_148, %c0_149] : memref<2x2x16xf32, #tpu.memory_space<vmem>>, vector<1x2x16xf32>
    %743 = vector.shape_cast %742 : vector<1x2x16xf32> to vector<2x16xf32>
    %744 = vector.shape_cast %715 : vector<2x16xf32> to vector<1x2x16xf32>
    tpu.vector_store %arg27[%c0_147, %c0_148, %c0_149], %744 {strides = array<i32>} : memref<2x2x16xf32, #tpu.memory_space<vmem>>, vector<1x2x16xf32>,
    %c1_150 = arith.constant 1 : index
    %c0_151 = arith.constant 0 : index
    %c0_152 = arith.constant 0 : index
    %745 = vector.load %arg26[%c1_150, %c0_151, %c0_152] : memref<2x2x16xf32, #tpu.memory_space<vmem>>, vector<1x2x16xf32>
    %746 = vector.shape_cast %745 : vector<1x2x16xf32> to vector<2x16xf32>
    %747 = vector.shape_cast %738 : vector<2x16xf32> to vector<1x2x16xf32>
    tpu.vector_store %arg26[%c1_150, %c0_151, %c0_152], %747 {strides = array<i32>} : memref<2x2x16xf32, #tpu.memory_space<vmem>>, vector<1x2x16xf32>,
    %c1_153 = arith.constant 1 : index
    %c0_154 = arith.constant 0 : index
    %c0_155 = arith.constant 0 : index
    %748 = vector.load %arg27[%c1_153, %c0_154, %c0_155] : memref<2x2x16xf32, #tpu.memory_space<vmem>>, vector<1x2x16xf32>
    %749 = vector.shape_cast %748 : vector<1x2x16xf32> to vector<2x16xf32>
    %750 = vector.shape_cast %735 : vector<2x16xf32> to vector<1x2x16xf32>
    tpu.vector_store %arg27[%c1_153, %c0_154, %c0_155], %750 {strides = array<i32>} : memref<2x2x16xf32, #tpu.memory_space<vmem>>, vector<1x2x16xf32>,
    %751 = tpu.concatenate %458, %498, %538, %578, %618, %658, %698, %738 in 0 : vector<2x16xf32>, vector<2x16xf32>, vector<2x16xf32>, vector<2x16xf32>, vector<2x16xf32>, vector<2x16xf32>, vector<2x16xf32>, vector<2x16xf32> -> vector<16x16xf32>
    %752 = vector.extract_strided_slice %751 {offsets = [0, 8], sizes = [16, 8], strides = [1, 1]} : vector<16x16xf32> to vector<16x8xf32>
    %c0_156 = arith.constant 0 : index
    %c0_157 = arith.constant 0 : index
    %753 = vector.load %arg23[%c0_156, %c0_157] : memref<16x8xf32, #tpu.memory_space<vmem>>, vector<16x8xf32>
    tpu.vector_store %arg23[%c0_156, %c0_157], %752 {strides = array<i32>} : memref<16x8xf32, #tpu.memory_space<vmem>>, vector<16x8xf32>,
    %754 = vector.extract_strided_slice %751 {offsets = [0, 0], sizes = [16, 8], strides = [1, 1]} : vector<16x16xf32> to vector<16x8xf32>
    %c0_158 = arith.constant 0 : index
    %c0_159 = arith.constant 0 : index
    %755 = vector.load %arg19[%c0_158, %c0_159] : memref<8x16xbf16, #tpu.memory_space<vmem>>, vector<8x16xbf16>
    %756 = arith.truncf %754 : vector<16x8xf32> to vector<16x8xbf16>
    %cst_160 = arith.constant dense<0.000000e+00> : vector<16x16xf32>
    %757 = tpu.matmul %756, %755, %cst_160 {dimension_numbers = #tpu.dot_dimension_numbers<[1], [0], [0], [1], [0, 0, 1, 1], [], []>} : vector<16x8xbf16>, vector<8x16xbf16>, vector<16x16xf32> -> vector<16x16xf32>
    %c0_161 = arith.constant 0 : index
    %c0_162 = arith.constant 0 : index
    %758 = vector.load %arg20[%c0_161, %c0_162] : memref<1x16xf32, #tpu.memory_space<vmem>>, vector<1x16xf32>
    %759 = vector.broadcast %758 : vector<1x16xf32> to vector<16x16xf32>
    %760 = arith.addf %757, %759 : vector<16x16xf32>
    %c0_163 = arith.constant 0 : index
    %c0_164 = arith.constant 0 : index
    %761 = vector.load %arg21[%c0_163, %c0_164] : memref<16x16xf32, #tpu.memory_space<vmem>>, vector<16x16xf32>
    tpu.vector_store %arg21[%c0_163, %c0_164], %760 {strides = array<i32>} : memref<16x16xf32, #tpu.memory_space<vmem>>, vector<16x16xf32>,
    %cst_165 = arith.constant dense<0xFF800000> : vector<16xf32>
    %762 = vector.multi_reduction <maximumf>, %760, %cst_165 [1] : vector<16x16xf32> to vector<16xf32>
    %763 = vector.shape_cast %762 : vector<16xf32> to vector<16x1xf32>
    %764 = tpu.iota {dimensions = array<i32: 1>} : vector<16x16xi32>
    %765 = vector.broadcast %763 : vector<16x1xf32> to vector<16x16xf32>
    %766 = arith.cmpf oeq, %760, %765 : vector<16x16xf32>
    %c16_i32 = arith.constant 16 : i32
    %767 = vector.broadcast %c16_i32 : i32 to vector<16x16xi32>
    %768 = arith.select %766, %764, %767 : vector<16x16xi1>, vector<16x16xi32>
    %cst_166 = arith.constant dense<2147483647> : vector<16xi32>
    %769 = vector.multi_reduction <minsi>, %768, %cst_166 [1] : vector<16x16xi32> to vector<16xi32>
    %770 = vector.shape_cast %769 : vector<16xi32> to vector<16x1xi32>
    %c0_167 = arith.constant 0 : index
    %c0_168 = arith.constant 0 : index
    %771 = vector.load %arg22[%c0_167, %c0_168] : memref<16x1xi32, #tpu.memory_space<vmem>>, vector<16x1xi32>
    tpu.vector_store %arg22[%c0_167, %c0_168], %770 {strides = array<i32>} : memref<16x1xi32, #tpu.memory_space<vmem>>, vector<16x1xi32>,
    return
  }
}

</mosaic_0001>

<bundles_post_ra>
// kernel: forward.1
= control target key start
LH: loop header
LB: loop body
LE: loop exit
PB: predicated region body
PF: predicated region fallthrough
CT: control target
= control target key end

     0   :  { %s5216_s0 = inlined_call_operand.vmem [shape: s32[16,3], index: 0, kind: input, shape index: {}]   ;;  %s5217_s1 = inlined_call_operand.vmem [shape: f32[16,8], index: 1, kind: input, shape index: {}]   ;;  %s5218_s2 = inlined_call_operand.vmem [shape: bf16[16,8], index: 2, kind: input, shape index: {}]   ;;  %s5219_s3 = inlined_call_operand.vmem [shape: f32[2,2,32], index: 3, kind: input, shape index: {}]   ;;  %s5220_s4 = inlined_call_operand.vmem [shape: f32[2,2,32], index: 4, kind: input, shape index: {}]   ;;  %s5221_s5 = inlined_call_operand.vmem [shape: bf16[16,128], index: 5, kind: input, shape index: {}]   ;;  %s5222_s6 = inlined_call_operand.vmem [shape: bf16[32,128], index: 6, kind: input, shape index: {}]   ;;  %s5223_s7 = inlined_call_operand.vmem [shape: f32[1,128], index: 7, kind: input, shape index: {}]   ;;  %s5224_s8 = inlined_call_operand.vmem [shape: bf16[32,128], index: 8, kind: input, shape index: {}]   ;;  %s5225_s9 = inlined_call_operand.vmem [shape: bf16[32,128], index: 9, kind: input, shape index: {}]   ;;  %s5226_s10 = inlined_call_operand.vmem [shape: f32[1,128], index: 10, kind: input, shape index: {}]   ;;  %s5227_s11 = inlined_call_operand.vmem [shape: bf16[32,24], index: 11, kind: input, shape index: {}]   ;;  %s5228_s12 = inlined_call_operand.vmem [shape: f32[1,24], index: 12, kind: input, shape index: {}]   ;;  %s5229_s13 = inlined_call_operand.vmem [shape: bf16[24,16], index: 13, kind: input, shape index: {}]   ;;  %s5230_s14 = inlined_call_operand.vmem [shape: f32[1,16], index: 14, kind: input, shape index: {}]   ;;  %s5231_s15 = inlined_call_operand.vmem [shape: f32[2,2,16], index: 15, kind: input, shape index: {}]   ;;  %s5232_s16 = inlined_call_operand.vmem [shape: f32[2,2,16], index: 16, kind: input, shape index: {}]   ;;  %s5233_s17 = inlined_call_operand.vmem [shape: bf16[2,32,64], index: 17, kind: input, shape index: {}]   ;;  %s5234_s18 = inlined_call_operand.vmem [shape: f32[2,1,64], index: 18, kind: input, shape index: {}]   ;;  %s5235_s19 = inlined_call_operand.vmem [shape: bf16[8,16], index: 19, kind: input, shape index: {}]   ;;  %s5236_s20 = inlined_call_operand.vmem [shape: f32[1,16], index: 20, kind: input, shape index: {}]   ;;  %s5237_s21 = inlined_call_operand.vmem [shape: f32[16,16], index: 21, kind: output, shape index: {0}]   ;;  %s5238_s22 = inlined_call_operand.vmem [shape: s32[16,1], index: 22, kind: output, shape index: {1}]   ;;  %s5239_s23 = inlined_call_operand.vmem [shape: f32[16,8], index: 23, kind: output, shape index: {2}]   ;;  %s5240_s24 = inlined_call_operand.hbm [shape: f32[2,2,32], index: 24, kind: output, shape index: {3}]   ;;  %s5241_s25 = inlined_call_operand.hbm [shape: f32[2,2,32], index: 25, kind: output, shape index: {4}]   ;;  %s5242_s26 = inlined_call_operand.hbm [shape: f32[2,2,16], index: 26, kind: output, shape index: {5}]   ;;  %s5243_s27 = inlined_call_operand.hbm [shape: f32[2,2,16], index: 27, kind: output, shape index: {6}]  }
   0x1   :  { %5252 = sst [smem:[#allocation12_spill]] %s5216_s0 }
   0x2   :  { %5253 = sst [smem:[#allocation13_spill]] %s5217_s1 }
   0x3   :  { %5254 = sst [smem:[#allocation14_spill]] %s5218_s2 }
   0x4   :  { %5255 = sst [smem:[#allocation15_spill]] %s5219_s3 }
   0x5   :  { %5256 = sst [smem:[#allocation16_spill]] %s5220_s4 }
   0x6   :  { %5257 = sst [smem:[#allocation17_spill]] %s5221_s5 }
   0x7   :  { %5258 = sst [smem:[#allocation18_spill]] %s5222_s6 }
   0x8   :  { %5259 = sst [smem:[#allocation19_spill]] %s5223_s7 }
   0x9   :  { %5260 = sst [smem:[#allocation20_spill]] %s5224_s8 }
   0xa   :  { %5261 = sst [smem:[#allocation21_spill]] %s5225_s9 }
   0xb   :  { %5262 = sst [smem:[#allocation22_spill]] %s5226_s10 }
   0xc   :  { %5263 = sst [smem:[#allocation23_spill]] %s5227_s11 }
   0xd   :  { %33 = vsyncpa [#allocation3], 0 }
   0xe   :  { %34 = vsyncpa [#allocation5], 0  ;;  %s5264_s8 = sld [smem:[#allocation12_spill]]  ;;  %v4192_v1 = vmov 1   ;;  %v4193_v2 = vmov 0   ;;  %v4194_v4 = vmov 0.0  }
   0xf   :  { %3816 = vset.pattern.permute.xlu1 %v4192_v1  ;;  %3815 = vset.pattern.permute.xlu0 %v4193_v2  ;;  %v4195_v5 = vmov 2   ;;  %s5265_s0 = sld [smem:[#allocation14_spill]] }
  0x10   :  { %3499 = vmatprep.subr.bf16.mxu0 %v4194_v4  ;;  %3505 = vmatprep.subr.bf16.mxu1 %v4194_v4 }
  0x14   :  { %v79_v0 = vld [vmem:[%s5264_s8] sm:$0xff]  ;;  %v80_v3 = vld [vmem:[%s5264_s8 + $0x8] sm:$0xff] }
  0x15   :  { %98 = vperm.xlu1 %3816, %v79_v0   ;;  %84 = vperm.xlu0 %3815, %v79_v0   ;;  %v3824_v6 = vld [vmem:[%s5265_s0] sm:$0xff]  }
  0x19   :  { %101 = vperm.xlu1 %3816, %v80_v3   ;;  %87 = vperm.xlu0 %3815, %v80_v3  }
  0x1d   :  { %3818 = vset.pattern.permute.xlu1 %v4195_v5  ;;  %3817 = vset.pattern.permute.xlu0 %v4195_v5 }
  0x1e   :  { %115 = vperm.xlu1 %3818, %v80_v3   ;;  %112 = vperm.xlu0 %3817, %v79_v0  }
  0x1f   :  { %35 = vsyncpa [#allocation8], 0  ;;  %3500 = vmatpush3.bf16.msra.mxu0 %v3824_v6  ;;  %vm4196_vm0 = vmmov 0   ;;  %s5266_s1 = sld [smem:[#allocation13_spill]]  ;;  %s4197_s2 = smov 8   ;;  %v81_v10 = vlaneseq  ;;  %vm134_vm7 = vcmask 130048  }
  0x20   :  { %3511 = vmatprep.subr.bf16.mxu0 %v4194_v4  ;;  %3501 = vmatprep.mubr.msk.bf16.mxu0 %vm4196_vm0, %v4194_v4  ;;  %s5267_s4 = sld [smem:[#allocation18_spill]]  ;;  %s5268_s28 = sld [smem:[#allocation17_spill]]  ;;  %vm273_vm8 = vcmask 261120   ;;  %vm191_vm9 = vcmask 64512   ;;  %vm894_vm10 = vcmask 1041408   ;;  %vm896_vm11 = vcmask 1043456  }
  0x21   :  { %3507 = vmatprep.mubr.msk.bf16.mxu1 %vm4196_vm0, %v4194_v4  ;;  %v4372_v11 = vand.u32 127, %v81_v10  ;;  %s5269_s29 = sld [smem:[#allocation15_spill]]  ;;  %s5270_s11 = sld [smem:[#allocation16_spill]]  ;;  %vm898_vm12 = vcmask 1045504   ;;  %vm1730_vm13 = vcmask 195584   ;;  %vm3054_vm14 = vcmask 123904  }
  0x22   :  { %s4199_s8 = smov 64   ;;  %s5272_s5 = sld [smem:[#allocation20_spill]] }
  0x23   :  { %s5273_s10 = sld [smem:[#allocation21_spill]]  ;;  %s4203_s6 = smov 112  }
  0x25   :  { %v181_v7 = vld [vmem:[%s5266_s1] sm:$0xff]  ;;  %v182_v8 = vld [vmem:[%s5266_s1 + $0x8] sm:$0xff]  ;;  %s5275_s1 = sld [smem:[#allocation23_spill]] }
  0x26   :  { %v3819_v9 = vpack.i.bf16 %v182_v8, %v181_v7  ;;  %v4392_v29 = vld [vmem:[%s5267_s4] sm:$0xff]   ;;  %v4399_v30 = vld [vmem:[%s5267_s4 + $0x8] sm:$0xff]   ;;  %s5271_s4 = sld [smem:[#allocation19_spill]] }
  0x27   :  { %v3827_v31 = vld [vmem:[%s5268_s28] sm:$0xff]   ;;  %s5274_s28 = sld [smem:[#allocation22_spill]] }
  0x28   :  { %3820 = vrot.lane.b32.xlu1 %v3819_v9, %s4197_s2  ;;  %v258_v32 = vld [vmem:[%s5269_s29] sm:$0x3]  ;;  %3506 = vmatpush3.bf16.msra.mxu1 %v3827_v31  ;;  %s4198_s2 = smov 32  }
  0x29   :  { %v260_v33 = vpack.c.bf16 %v258_v32, %v258_v32  ;;  %3519 = vmatprep.subr.bf16.mxu1 %v4194_v4  ;;  %v259_v34 = vld [vmem:[%s5270_s11] sm:$0x3] }
  0x2c   :  { %326 = vrot.lane.b32.xlu1 %v259_v34, %s4198_s2  ;;  %v3288_v51 = vld [vmem:[%s5271_s4] ss:$0 sm:$0xff] }
  0x94   :  { %v99_v12 = vpop.permute.xlu1 %98  ;;  %v85_v13 = vpop.permute.xlu0 %84 }
  0x95   :  { %vm103_vm1 = vcmp.eq.s32.totalorder %v99_v12, %v4372_v11  ;;  %vm89_vm2 = vcmp.eq.s32.totalorder %v85_v13, %v4372_v11 }
  0x96   :  { %v3282_v16 = vsel %vm103_vm1, 1.0, %v4194_v4  ;;  %v3280_v17 = vsel %vm89_vm2, 1.0, %v4194_v4  ;;  %vm1619_vm1 = vcmask 261126  }
  0x97   :  { %v109_v22 = vadd.f32 %v3282_v16, %v3280_v17 }
  0x98   :  { %v102_v14 = vpop.permute.xlu1 %101  ;;  %v88_v15 = vpop.permute.xlu0 %87 }
  0x99   :  { %vm104_vm3 = vcmp.eq.s32.totalorder %v102_v14, %v4372_v11  ;;  %vm90_vm4 = vcmp.eq.s32.totalorder %v88_v15, %v4372_v11 }
  0x9a   :  { %v3283_v18 = vsel %vm104_vm3, 1.0, %v4194_v4  ;;  %v3281_v19 = vsel %vm90_vm4, 1.0, %v4194_v4 }
  0x9b   :  { %v110_v23 = vadd.f32 %v3283_v18, %v3281_v19 }
  0x9d   :  { %v116_v20 = vpop.permute.xlu1 %115  ;;  %v113_v21 = vpop.permute.xlu0 %112 }
  0x9e   :  { %vm118_vm5 = vcmp.eq.s32.totalorder %v116_v20, %v4372_v11  ;;  %vm117_vm6 = vcmp.eq.s32.totalorder %v113_v21, %v4372_v11 }
  0x9f   :  { %v3285_v24 = vsel %vm118_vm5, 1.0, %v4194_v4  ;;  %v3284_v25 = vsel %vm117_vm6, 1.0, %v4194_v4 }
  0xa0   :  { %v124_v26 = vadd.f32 %v3285_v24, %v110_v23  ;;  %v123_v27 = vadd.f32 %v3284_v25, %v109_v22 }
  0xa1   :  { %v3821_v35 = vpop.permute.xlu1 %3820 }
  0xa2   :  { %v127_v28 = vpack.c.bf16 %v124_v26, %v123_v27  ;;  %v3823_v37 = vunpack.i.h.bf16 %v3821_v35  ;;  %v3822_v38 = vunpack.i.l.bf16 %v3821_v35 }
  0xa4   :  { %3502 = vmatmul.mubr.msk.bf16.vlgmr.msra.gmra.mrb[0].mxu0 %vm134_vm7, %v127_v28 }
  0xa5   :  { %3515 = vmatprep.mubr.msk.bf16.mxu0 %vm4196_vm0, %v4194_v4  ;;  %3512 = vmatpush3.bf16.msra.mxu0 %v4392_v29  ;;  %v327_v2 = vpop.permute.xlu1 %326 }
  0xa6   :  { %3513 = vmatprep.subr.bf16.mxu0 %v4194_v4 }
  0xa9   :  { %3514 = vmatpush3.bf16.msra.mxu0 %v4399_v30 }
  0xaa   :  { %3527 = vmatprep.subr.bf16.mxu0 %v4194_v4 }
  0xac   :  { %3516 = vmatmul.mubr.msk.bf16.vlgmr.msra.gmra.mrb[4].mxu0 %vm273_vm8, %v260_v33 }
  0xad   :  { %3528 = vmatpush3.bf16.msra.mxu0 %v4392_v29  ;;  %3531 = vmatprep.mubr.msk.bf16.mxu0 %vm4196_vm0, %v4194_v4 }
  0xae   :  { %3529 = vmatprep.subr.bf16.mxu0 %v4194_v4 }
  0xb1   :  { %3530 = vmatpush3.bf16.msra.mxu0 %v4399_v30 }
  0xb2   :  { %3543 = vmatprep.subr.bf16.mxu0 %v4194_v4 }
 0x177   :  { %v172_v36 = vpop.f32.mrb[0].mxu0 }
 0x178   :  { %v179_v39 = vmul.f32 0.33333334, %v172_v36  ;;  %v3503_v40 = vpop.f32.mrb[1].mxu0 }
 0x179   :  { %v175_v41 = vpop.f32.mrb[2].mxu0 }
 0x17a   :  { %v180_v42 = vmul.f32 0.33333334, %v175_v41  ;;  %v3504_v43 = vpop.f32.mrb[3].mxu0  ;;  %v192_v44 = vsel %vm191_vm9, %v179_v39, %v3822_v38 }
 0x17c   :  { %v193_v45 = vsel %vm191_vm9, %v180_v42, %v3823_v37 }
 0x17d   :  { %v200_v46 = vpack.c.bf16 %v193_v45, %v192_v44 }
 0x17f   :  { %3508 = vmatmul.mubr.msk.bf16.vlgmr.msra.gmra.mrb[0].mxu1 %vm134_vm7, %v200_v46  ;;  %v311_v47 = vpop.f32.mrb[4].mxu0 }
 0x180   :  { %3520 = vmatpush3.bf16.msra.mxu1 %v4392_v29  ;;  %3523 = vmatprep.mubr.msk.bf16.mxu1 %vm4196_vm0, %v4194_v4  ;;  %v3517_v48 = vpop.f32.mrb[5].mxu0 }
 0x181   :  { %3521 = vmatprep.subr.bf16.mxu1 %v4194_v4  ;;  %v314_v49 = vpop.f32.mrb[6].mxu0 }
 0x182   :  { %v3518_v50 = vpop.f32.mrb[7].mxu0 }
 0x184   :  { %3522 = vmatpush3.bf16.msra.mxu1 %v4399_v30 }
 0x185   :  { %3535 = vmatprep.subr.bf16.mxu1 %v4194_v4 }
 0x252   :  { %v251_v52 = vpop.f32.mrb[0].mxu1 }
 0x253   :  { %v4433_v53 = vadd.f32 %v3288_v51, %v251_v52  ;;  %v3509_v54 = vpop.f32.mrb[1].mxu1 }
 0x254   :  { %v254_v55 = vpop.f32.mrb[2].mxu1 }
 0x255   :  { %v317_v56 = vadd.f32 %v311_v47, %v4433_v53  ;;  %v4436_v57 = vadd.f32 %v3288_v51, %v254_v55  ;;  %v3510_v58 = vpop.f32.mrb[3].mxu1 }
 0x257   :  { %3840 = vtanh.f32 %v317_v56  ;;  %v3294_v60 = vmul.f32 -1.442695, %v317_v56 }
 0x259   :  { %3842 = vpow2.f32 %v3294_v60 }
 0x261   :  { %v3841_v59 = vpop.eup %3840 }
 0x262   :  { %331 = vrot.lane.b32.xlu0 %v3841_v59, %s4198_s2 }
 0x263   :  { %v3843_v61 = vpop.eup %3842 }
 0x264   :  { %v321_v62 = vadd.f32 1.0, %v3843_v61 }
 0x266   :  { %3844 = vrcp.f32 %v321_v62 }
 0x270   :  { %v3845_v63 = vpop.eup %3844 }
 0x271   :  { %v329_v3 = vmul.f32 %v3845_v63, %v327_v2 }
 0x2d4   :  { %v332_v0 = vpop.permute.xlu0 %331 }
 0x2d5   :  { %v334_v1 = vmul.f32 %v3845_v63, %v332_v0 }
 0x2d7   :  { %336 = vrot.lane.b32.xlu0 %v334_v1, %s4198_s2 }
 0x349   :  { %v337_v5 = vpop.permute.xlu0 %336 }
 0x34a   :  { %v339_v6 = vadd.f32 %v337_v5, %v329_v3 }
 0x34c   :  { %3846 = vtanh.f32 %v339_v6  ;;  %v405_v26 = vrot.slane %v339_v6, 6 }
 0x356   :  { %v3847_v7 = vpop.eup %3846 }
 0x357   :  { %342 = vrot.lane.b32.xlu1 %v3847_v7, %s4198_s2 }
 0x3c9   :  { %v343_v8 = vpop.permute.xlu1 %342 }
 0x3ca   :  { %v4441_v9 = vmul.f32 %v3845_v63, %v343_v8 }
 0x3cc   :  { %v346_v10 = vpack.c.bf16 %v4441_v9, %v4441_v9 }
 0x3ce   :  { %348 = vrot.lane.b32.xlu0 %v346_v10, %s4199_s8 }
 0x440   :  { %v349_v12 = vpop.permute.xlu0 %348 }
 0x441   :  { %3524 = vmatmul.mubr.msk.bf16.vlgmr.msra.gmra.mrb[4].mxu1 %vm273_vm8, %v349_v12 }
 0x442   :  { %3536 = vmatpush3.bf16.msra.mxu1 %v4392_v29  ;;  %3539 = vmatprep.mubr.msk.bf16.mxu1 %vm4196_vm0, %v4194_v4 }
 0x443   :  { %3537 = vmatprep.subr.bf16.mxu1 %v4194_v4 }
 0x446   :  { %3538 = vmatpush3.bf16.msra.mxu1 %v4399_v30 }
 0x447   :  { %3551 = vmatprep.subr.bf16.mxu1 %v4194_v4 }
 0x514   :  { %v387_v13 = vpop.f32.mrb[4].mxu1 }
 0x515   :  { %v394_v14 = vrot.slane %v387_v13, 6  ;;  %v3525_v15 = vpop.f32.mrb[5].mxu1 }
 0x516   :  { %v390_v16 = vpop.f32.mrb[6].mxu1 }
 0x517   :  { %v396_v17 = vadd.f32 %v394_v14, %v4433_v53  ;;  %v3526_v18 = vpop.f32.mrb[7].mxu1 }
 0x519   :  { %3848 = vtanh.f32 %v396_v17  ;;  %v3296_v20 = vmul.f32 -1.442695, %v396_v17 }
 0x51b   :  { %3850 = vpow2.f32 %v3296_v20 }
 0x523   :  { %v3849_v19 = vpop.eup %3848 }
 0x524   :  { %409 = vrot.lane.b32.xlu1 %v3849_v19, %s4198_s2 }
 0x525   :  { %v3851_v21 = vpop.eup %3850 }
 0x526   :  { %v400_v22 = vadd.f32 1.0, %v3851_v21 }
 0x528   :  { %3852 = vrcp.f32 %v400_v22 }
 0x532   :  { %v3853_v23 = vpop.eup %3852 }
 0x533   :  { %v407_v27 = vmul.f32 %v3853_v23, %v405_v26 }
 0x596   :  { %v410_v24 = vpop.permute.xlu1 %409 }
 0x597   :  { %v412_v25 = vmul.f32 %v3853_v23, %v410_v24 }
 0x599   :  { %414 = vrot.lane.b32.xlu0 %v412_v25, %s4198_s2 }
 0x60b   :  { %v415_v28 = vpop.permute.xlu0 %414 }
 0x60c   :  { %v417_v31 = vadd.f32 %v415_v28, %v407_v27 }
 0x60e   :  { %3854 = vtanh.f32 %v417_v31  ;;  %v484_v51 = vrot.slane %v417_v31, 6 }
 0x618   :  { %v3855_v32 = vpop.eup %3854 }
 0x619   :  { %420 = vrot.lane.b32.xlu1 %v3855_v32, %s4198_s2 }
 0x68b   :  { %v421_v33 = vpop.permute.xlu1 %420 }
 0x68c   :  { %v423_v34 = vmul.f32 %v3853_v23, %v421_v33 }
 0x68e   :  { %v424_v35 = vpack.c.bf16 %v423_v34, %v423_v34  ;;  %v895_v60 = vsel %vm894_vm10, %v4441_v9, %v423_v34 }
 0x690   :  { %v426_v36 = vrot.slane %v424_v35, 1 }
 0x692   :  { %427 = vrot.lane.b32.xlu0 %v426_v36, %s4199_s8 }
 0x704   :  { %v428_v37 = vpop.permute.xlu0 %427 }
 0x705   :  { %3532 = vmatmul.mubr.msk.bf16.vlgmr.msra.gmra.mrb[8].mxu0 %vm273_vm8, %v428_v37 }
 0x706   :  { %3544 = vmatpush3.bf16.msra.mxu0 %v4392_v29  ;;  %3547 = vmatprep.mubr.msk.bf16.mxu0 %vm4196_vm0, %v4194_v4 }
 0x707   :  { %3545 = vmatprep.subr.bf16.mxu0 %v4194_v4 }
 0x70a   :  { %3546 = vmatpush3.bf16.msra.mxu0 %v4399_v30 }
 0x70b   :  { %3559 = vmatprep.subr.bf16.mxu0 %v4194_v4 }
 0x7d8   :  { %v466_v38 = vpop.f32.mrb[8].mxu0 }
 0x7d9   :  { %v473_v39 = vrot.slane %v466_v38, 4  ;;  %v3533_v40 = vpop.f32.mrb[9].mxu0 }
 0x7da   :  { %v469_v41 = vpop.f32.mrb[10].mxu0 }
 0x7db   :  { %v475_v42 = vadd.f32 %v473_v39, %v4433_v53  ;;  %v3534_v43 = vpop.f32.mrb[11].mxu0 }
 0x7dd   :  { %3856 = vtanh.f32 %v475_v42  ;;  %v3298_v45 = vmul.f32 -1.442695, %v475_v42 }
 0x7df   :  { %3858 = vpow2.f32 %v3298_v45 }
 0x7e7   :  { %v3857_v44 = vpop.eup %3856 }
 0x7e8   :  { %488 = vrot.lane.b32.xlu1 %v3857_v44, %s4198_s2 }
 0x7e9   :  { %v3859_v46 = vpop.eup %3858 }
 0x7ea   :  { %v479_v47 = vadd.f32 1.0, %v3859_v46 }
 0x7ec   :  { %3860 = vrcp.f32 %v479_v47 }
 0x7f6   :  { %v3861_v48 = vpop.eup %3860 }
 0x7f7   :  { %v486_v52 = vmul.f32 %v3861_v48, %v484_v51 }
 0x85a   :  { %v489_v49 = vpop.permute.xlu1 %488 }
 0x85b   :  { %v491_v50 = vmul.f32 %v3861_v48, %v489_v49 }
 0x85d   :  { %493 = vrot.lane.b32.xlu0 %v491_v50, %s4198_s2 }
 0x8cf   :  { %v494_v54 = vpop.permute.xlu0 %493 }
 0x8d0   :  { %v496_v55 = vadd.f32 %v494_v54, %v486_v52 }
 0x8d2   :  { %3862 = vtanh.f32 %v496_v55  ;;  %v563_v16 = vrot.slane %v496_v55, 6 }
 0x8dc   :  { %v3863_v56 = vpop.eup %3862 }
 0x8dd   :  { %499 = vrot.lane.b32.xlu1 %v3863_v56, %s4198_s2 }
 0x94f   :  { %v500_v58 = vpop.permute.xlu1 %499 }
 0x950   :  { %v502_v59 = vmul.f32 %v3861_v48, %v500_v58 }
 0x952   :  { %v503_v61 = vpack.c.bf16 %v502_v59, %v502_v59  ;;  %v897_v62 = vsel %vm896_vm11, %v895_v60, %v502_v59 }
 0x954   :  { %v505_v63 = vrot.slane %v503_v61, 2 }
 0x956   :  { %506 = vrot.lane.b32.xlu0 %v505_v63, %s4199_s8 }
 0x9c8   :  { %v507_v0 = vpop.permute.xlu0 %506 }
 0x9c9   :  { %3540 = vmatmul.mubr.msk.bf16.vlgmr.msra.gmra.mrb[8].mxu1 %vm273_vm8, %v507_v0 }
 0x9ca   :  { %3552 = vmatpush3.bf16.msra.mxu1 %v4392_v29  ;;  %3555 = vmatprep.mubr.msk.bf16.mxu1 %vm4196_vm0, %v4194_v4 }
 0x9cb   :  { %3553 = vmatprep.subr.bf16.mxu1 %v4194_v4 }
 0x9ce   :  { %3554 = vmatpush3.bf16.msra.mxu1 %v4399_v30 }
 0x9cf   :  { %3567 = vmatprep.subr.bf16.mxu1 %v4194_v4 }
 0xa9c   :  { %v545_v1 = vpop.f32.mrb[8].mxu1 }
 0xa9d   :  { %v552_v2 = vrot.slane %v545_v1, 2  ;;  %v3541_v3 = vpop.f32.mrb[9].mxu1 }
 0xa9e   :  { %v548_v5 = vpop.f32.mrb[10].mxu1 }
 0xa9f   :  { %v554_v6 = vadd.f32 %v552_v2, %v4433_v53  ;;  %v3542_v7 = vpop.f32.mrb[11].mxu1 }
 0xaa1   :  { %3864 = vtanh.f32 %v554_v6  ;;  %v3300_v9 = vmul.f32 -1.442695, %v554_v6 }
 0xaa3   :  { %3866 = vpow2.f32 %v3300_v9 }
 0xaab   :  { %v3865_v8 = vpop.eup %3864 }
 0xaac   :  { %567 = vrot.lane.b32.xlu1 %v3865_v8, %s4198_s2 }
 0xaad   :  { %v3867_v10 = vpop.eup %3866 }
 0xaae   :  { %v558_v12 = vadd.f32 1.0, %v3867_v10 }
 0xab0   :  { %3868 = vrcp.f32 %v558_v12 }
 0xaba   :  { %v3869_v13 = vpop.eup %3868 }
 0xabb   :  { %v565_v17 = vmul.f32 %v3869_v13, %v563_v16 }
 0xb1e   :  { %v568_v14 = vpop.permute.xlu1 %567 }
 0xb1f   :  { %v570_v15 = vmul.f32 %v3869_v13, %v568_v14 }
 0xb21   :  { %572 = vrot.lane.b32.xlu0 %v570_v15, %s4198_s2 }
 0xb93   :  { %v573_v18 = vpop.permute.xlu0 %572 }
 0xb94   :  { %v575_v19 = vadd.f32 %v573_v18, %v565_v17 }
 0xb96   :  { %3870 = vtanh.f32 %v575_v19  ;;  %v639_v40 = vrot.slane %v575_v19, 6 }
 0xba0   :  { %v3871_v53 = vpop.eup %3870 }
 0xba1   :  { %578 = vrot.lane.b32.xlu1 %v3871_v53, %s4198_s2 }
 0xc13   :  { %v579_v20 = vpop.permute.xlu1 %578 }
 0xc14   :  { %v581_v21 = vmul.f32 %v3869_v13, %v579_v20 }
 0xc16   :  { %v582_v22 = vpack.c.bf16 %v581_v21, %v581_v21  ;;  %v4485_v23 = vsel %vm898_vm12, %v897_v62, %v581_v21 }
 0xc18   :  { %v584_v24 = vrot.slane %v582_v22, 3 }
 0xc1a   :  { %585 = vrot.lane.b32.xlu0 %v584_v24, %s4199_s8 }
 0xc8c   :  { %v586_v25 = vpop.permute.xlu0 %585 }
 0xc8d   :  { %3548 = vmatmul.mubr.msk.bf16.vlgmr.msra.gmra.mrb[12].mxu0 %vm273_vm8, %v586_v25 }
 0xc8e   :  { %3560 = vmatpush3.bf16.msra.mxu0 %v4392_v29  ;;  %3563 = vmatprep.mubr.msk.bf16.mxu0 %vm4196_vm0, %v4194_v4 }
 0xc8f   :  { %3561 = vmatprep.subr.bf16.mxu0 %v4194_v4 }
 0xc92   :  { %3562 = vmatpush3.bf16.msra.mxu0 %v4399_v30 }
 0xc93   :  { %3575 = vmatprep.subr.bf16.mxu0 %v4194_v4 }
 0xd60   :  { %v624_v26 = vpop.f32.mrb[12].mxu0 }
 0xd61   :  { %v630_v27 = vadd.f32 %v624_v26, %v4436_v57  ;;  %v3549_v28 = vpop.f32.mrb[13].mxu0 }
 0xd62   :  { %v627_v31 = vpop.f32.mrb[14].mxu0 }
 0xd63   :  { %3872 = vtanh.f32 %v630_v27  ;;  %v3550_v32 = vpop.f32.mrb[15].mxu0  ;;  %v3302_v34 = vmul.f32 -1.442695, %v630_v27 }
 0xd65   :  { %3874 = vpow2.f32 %v3302_v34 }
 0xd6d   :  { %v3873_v33 = vpop.eup %3872 }
 0xd6e   :  { %643 = vrot.lane.b32.xlu1 %v3873_v33, %s4198_s2 }
 0xd6f   :  { %v3875_v35 = vpop.eup %3874 }
 0xd70   :  { %v634_v36 = vadd.f32 1.0, %v3875_v35 }
 0xd72   :  { %3876 = vrcp.f32 %v634_v36 }
 0xd7c   :  { %v3877_v37 = vpop.eup %3876 }
 0xd7d   :  { %v641_v41 = vmul.f32 %v3877_v37, %v639_v40 }
 0xde0   :  { %v644_v38 = vpop.permute.xlu1 %643 }
 0xde1   :  { %v646_v39 = vmul.f32 %v3877_v37, %v644_v38 }
 0xde3   :  { %648 = vrot.lane.b32.xlu0 %v646_v39, %s4198_s2 }
 0xe55   :  { %v649_v42 = vpop.permute.xlu0 %648 }
 0xe56   :  { %v651_v43 = vadd.f32 %v649_v42, %v641_v41 }
 0xe58   :  { %3878 = vtanh.f32 %v651_v43  ;;  %v717_v62 = vrot.slane %v651_v43, 6 }
 0xe62   :  { %v3879_v44 = vpop.eup %3878 }
 0xe63   :  { %654 = vrot.lane.b32.xlu1 %v3879_v44, %s4198_s2 }
 0xed5   :  { %v655_v45 = vpop.permute.xlu1 %654 }
 0xed6   :  { %v4499_v46 = vmul.f32 %v3877_v37, %v655_v45 }
 0xed8   :  { %v658_v47 = vpack.c.bf16 %v4499_v46, %v4499_v46 }
 0xeda   :  { %660 = vrot.lane.b32.xlu0 %v658_v47, %s4199_s8 }
 0xf4c   :  { %v661_v48 = vpop.permute.xlu0 %660 }
 0xf4d   :  { %3556 = vmatmul.mubr.msk.bf16.vlgmr.msra.gmra.mrb[12].mxu1 %vm273_vm8, %v661_v48 }
 0xf4e   :  { %3568 = vmatpush3.bf16.msra.mxu1 %v4392_v29  ;;  %3571 = vmatprep.mubr.msk.bf16.mxu1 %vm4196_vm0, %v4194_v4 }
 0xf4f   :  { %3569 = vmatprep.subr.bf16.mxu1 %v4194_v4 }
 0xf52   :  { %3570 = vmatpush3.bf16.msra.mxu1 %v4399_v30 }
 0xf53   :  { %3583 = vmatprep.subr.bf16.mxu1 %v4194_v4 }
0x1020   :  { %v699_v49 = vpop.f32.mrb[12].mxu1 }
0x1021   :  { %v706_v50 = vrot.slane %v699_v49, 6  ;;  %v3557_v51 = vpop.f32.mrb[13].mxu1 }
0x1022   :  { %v702_v52 = vpop.f32.mrb[14].mxu1 }
0x1023   :  { %v708_v54 = vadd.f32 %v706_v50, %v4436_v57  ;;  %v3558_v55 = vpop.f32.mrb[15].mxu1 }
0x1024   :  { %v4542_v55 = vld [vmem:[%s5273_s10] sm:$0xff]  }
0x1025   :  { %3880 = vtanh.f32 %v708_v54  ;;  %v3304_v29 = vmul.f32 -1.442695, %v708_v54 }
0x1027   :  { %3882 = vpow2.f32 %v3304_v29  ;;  %v4551_v29 = vld [vmem:[%s5273_s10 + $0x8] sm:$0xff]  }
0x102f   :  { %v3881_v56 = vpop.eup %3880 }
0x1030   :  { %721 = vrot.lane.b32.xlu1 %v3881_v56, %s4198_s2  ;;  %v3830_v56 = vld [vmem:[%s5272_s5 + $0x8] sm:$0xff]  }
0x1031   :  { %v3883_v58 = vpop.eup %3882 }
0x1032   :  { %v712_v59 = vadd.f32 1.0, %v3883_v58  ;;  %v3313_v58 = vld [vmem:[%s5269_s29 + $0x2] sm:$0x3]  ;;  %s4201_s29 = smov 80  }
0x1034   :  { %3884 = vrcp.f32 %v712_v59  ;;  %v982_v59 = vpack.c.bf16 %v3313_v58, %v3313_v58 }
0x103e   :  { %v3885_v60 = vpop.eup %3884 }
0x103f   :  { %v719_v63 = vmul.f32 %v3885_v60, %v717_v62 }
0x10a2   :  { %v722_v30 = vpop.permute.xlu1 %721 }
0x10a3   :  { %v724_v61 = vmul.f32 %v3885_v60, %v722_v30 }
0x10a5   :  { %726 = vrot.lane.b32.xlu0 %v724_v61, %s4198_s2 }
0x1117   :  { %v727_v0 = vpop.permute.xlu0 %726 }
0x1118   :  { %v729_v1 = vadd.f32 %v727_v0, %v719_v63  ;;  %v3314_v0 = vld [vmem:[%s5270_s11 + $0x2] sm:$0x3] }
0x111a   :  { %3886 = vtanh.f32 %v729_v1  ;;  %v796_v22 = vrot.slane %v729_v1, 6 }
0x1124   :  { %v3887_v2 = vpop.eup %3886 }
0x1125   :  { %732 = vrot.lane.b32.xlu1 %v3887_v2, %s4198_s2 }
0x1197   :  { %v733_v3 = vpop.permute.xlu1 %732 }
0x1198   :  { %v735_v5 = vmul.f32 %v3885_v60, %v733_v3 }
0x119a   :  { %v736_v6 = vpack.c.bf16 %v735_v5, %v735_v5  ;;  %v900_v32 = vsel %vm894_vm10, %v4499_v46, %v735_v5 }
0x119c   :  { %v738_v7 = vrot.slane %v736_v6, 1 }
0x119e   :  { %739 = vrot.lane.b32.xlu0 %v738_v7, %s4199_s8 }
0x1210   :  { %v740_v8 = vpop.permute.xlu0 %739 }
0x1211   :  { %3564 = vmatmul.mubr.msk.bf16.vlgmr.msra.gmra.mrb[16].mxu0 %vm273_vm8, %v740_v8 }
0x1212   :  { %3579 = vmatprep.mubr.msk.bf16.mxu0 %vm4196_vm0, %v4194_v4 }
0x12e4   :  { %v778_v9 = vpop.f32.mrb[16].mxu0 }
0x12e5   :  { %v785_v10 = vrot.slane %v778_v9, 4  ;;  %v3565_v12 = vpop.f32.mrb[17].mxu0 }
0x12e6   :  { %v781_v13 = vpop.f32.mrb[18].mxu0 }
0x12e7   :  { %v787_v14 = vadd.f32 %v785_v10, %v4436_v57  ;;  %v3566_v15 = vpop.f32.mrb[19].mxu0 }
0x12e9   :  { %3888 = vtanh.f32 %v787_v14  ;;  %v3306_v17 = vmul.f32 -1.442695, %v787_v14 }
0x12eb   :  { %3890 = vpow2.f32 %v3306_v17 }
0x12f3   :  { %v3889_v16 = vpop.eup %3888 }
0x12f4   :  { %800 = vrot.lane.b32.xlu1 %v3889_v16, %s4198_s2 }
0x12f5   :  { %v3891_v18 = vpop.eup %3890 }
0x12f6   :  { %v791_v19 = vadd.f32 1.0, %v3891_v18 }
0x12f8   :  { %3892 = vrcp.f32 %v791_v19 }
0x1302   :  { %v3893_v53 = vpop.eup %3892 }
0x1303   :  { %v798_v24 = vmul.f32 %v3893_v53, %v796_v22 }
0x1366   :  { %v801_v20 = vpop.permute.xlu1 %800 }
0x1367   :  { %v803_v21 = vmul.f32 %v3893_v53, %v801_v20 }
0x1369   :  { %805 = vrot.lane.b32.xlu0 %v803_v21, %s4198_s2 }
0x13db   :  { %v806_v25 = vpop.permute.xlu0 %805 }
0x13dc   :  { %v808_v26 = vadd.f32 %v806_v25, %v798_v24 }
0x13de   :  { %3894 = vtanh.f32 %v808_v26  ;;  %v875_v50 = vrot.slane %v808_v26, 6 }
0x13e8   :  { %v3895_v27 = vpop.eup %3894 }
0x13e9   :  { %811 = vrot.lane.b32.xlu1 %v3895_v27, %s4198_s2 }
0x145b   :  { %v812_v28 = vpop.permute.xlu1 %811 }
0x145c   :  { %v814_v31 = vmul.f32 %v3893_v53, %v812_v28 }
0x145e   :  { %v815_v33 = vpack.c.bf16 %v814_v31, %v814_v31  ;;  %v901_v34 = vsel %vm896_vm11, %v900_v32, %v814_v31 }
0x1460   :  { %v817_v35 = vrot.slane %v815_v33, 2 }
0x1462   :  { %818 = vrot.lane.b32.xlu0 %v817_v35, %s4199_s8 }
0x14d4   :  { %v819_v36 = vpop.permute.xlu0 %818 }
0x14d5   :  { %3572 = vmatmul.mubr.msk.bf16.vlgmr.msra.gmra.mrb[16].mxu1 %vm273_vm8, %v819_v36 }
0x14d6   :  { %3587 = vmatprep.mubr.msk.bf16.mxu1 %vm4196_vm0, %v4194_v4  ;;  %3584 = vmatpush3.bf16.msra.mxu1 %v4542_v55 }
0x14d7   :  { %3585 = vmatprep.subr.bf16.mxu1 %v4194_v4 }
0x14da   :  { %3586 = vmatpush3.bf16.msra.mxu1 %v4551_v29 }
0x14db   :  { %3599 = vmatprep.subr.bf16.mxu1 %v4194_v4 }
0x14dd   :  { %3588 = vmatmul.mubr.msk.bf16.vlgmr.msra.gmra.mrb[20].mxu1 %vm273_vm8, %v982_v59 }
0x14de   :  { %3600 = vmatpush3.bf16.msra.mxu1 %v4542_v55  ;;  %3603 = vmatprep.mubr.msk.bf16.mxu1 %vm4196_vm0, %v4194_v4 }
0x14df   :  { %3601 = vmatprep.subr.bf16.mxu1 %v4194_v4 }
0x14e2   :  { %3602 = vmatpush3.bf16.msra.mxu1 %v4551_v29 }
0x14e3   :  { %3615 = vmatprep.subr.bf16.mxu1 %v4194_v4 }
0x15a8   :  { %v857_v37 = vpop.f32.mrb[16].mxu1 }
0x15a9   :  { %v864_v38 = vrot.slane %v857_v37, 2  ;;  %v3573_v39 = vpop.f32.mrb[17].mxu1 }
0x15aa   :  { %v860_v40 = vpop.f32.mrb[18].mxu1 }
0x15ab   :  { %v866_v41 = vadd.f32 %v864_v38, %v4436_v57  ;;  %v3574_v42 = vpop.f32.mrb[19].mxu1  ;;  %v3828_v57 = vld [vmem:[%s5272_s5] sm:$0xff]   ;;  %s4200_s5 = smov 16  }
0x15ac   :  { %3576 = vmatpush3.bf16.msra.mxu0 %v3828_v57 }
0x15ad   :  { %3896 = vtanh.f32 %v866_v41  ;;  %v3308_v44 = vmul.f32 -1.442695, %v866_v41  ;;  %3577 = vmatprep.subr.bf16.mxu0 %v4194_v4 }
0x15af   :  { %3898 = vpow2.f32 %v3308_v44 }
0x15b0   :  { %3578 = vmatpush3.bf16.msra.mxu0 %v3830_v56  ;;  %v1032_v1 = vpop.f32.mrb[20].mxu1 }
0x15b1   :  { %3591 = vmatprep.subr.bf16.mxu0 %v4194_v4  ;;  %v3589_v2 = vpop.f32.mrb[21].mxu1 }
0x15b2   :  { %v1035_v3 = vpop.f32.mrb[22].mxu1 }
0x15b3   :  { %v3590_v5 = vpop.f32.mrb[23].mxu1 }
0x15b7   :  { %v3897_v43 = vpop.eup %3896 }
0x15b8   :  { %879 = vrot.lane.b32.xlu1 %v3897_v43, %s4198_s2 }
0x15b9   :  { %v3899_v45 = vpop.eup %3898 }
0x15ba   :  { %v870_v46 = vadd.f32 1.0, %v3899_v45 }
0x15bc   :  { %3900 = vrcp.f32 %v870_v46 }
0x15c6   :  { %v3901_v47 = vpop.eup %3900 }
0x15c7   :  { %v877_v51 = vmul.f32 %v3901_v47, %v875_v50 }
0x162a   :  { %v880_v48 = vpop.permute.xlu1 %879 }
0x162b   :  { %v882_v49 = vmul.f32 %v3901_v47, %v880_v48 }
0x162d   :  { %884 = vrot.lane.b32.xlu0 %v882_v49, %s4198_s2 }
0x169f   :  { %v885_v52 = vpop.permute.xlu0 %884 }
0x16a0   :  { %v4533_v54 = vadd.f32 %v885_v52, %v877_v51 }
0x16a2   :  { %3902 = vtanh.f32 %v4533_v54 }
0x16ac   :  { %v3903_v60 = vpop.eup %3902 }
0x16ad   :  { %890 = vrot.lane.b32.xlu1 %v3903_v60, %s4198_s2 }
0x171f   :  { %v891_v30 = vpop.permute.xlu1 %890 }
0x1720   :  { %v4569_v61 = vmul.f32 %v3901_v47, %v891_v30 }
0x1722   :  { %v902_v62 = vsel %vm898_vm12, %v901_v34, %v4569_v61 }
0x1723   :  { %v911_v63 = vpack.c.bf16 %v902_v62, %v4485_v23  ;;  %v3309_v23 = vld [vmem:[%s5274_s28] ss:$0 sm:$0xff] }
0x1725   :  { %920 = vrot.lane.b32.xlu0 %v911_v63, %s4199_s8 }
0x1729   :  { %1047 = vrot.lane.b32.xlu0 %v3314_v0, %s4198_s2 }
0x1797   :  { %v921_v6 = vpop.permute.xlu0 %920 }
0x1798   :  { %3580 = vmatmul.mubr.msk.bf16.vlgmr.msra.gmra.mrb[20].mxu0 %vm273_vm8, %v921_v6 }
0x1799   :  { %3592 = vmatpush3.bf16.msra.mxu0 %v4542_v55  ;;  %3595 = vmatprep.mubr.msk.bf16.mxu0 %vm4196_vm0, %v4194_v4 }
0x179a   :  { %3593 = vmatprep.subr.bf16.mxu0 %v4194_v4 }
0x179b   :  { %v1048_v21 = vpop.permute.xlu0 %1047 }
0x179d   :  { %3594 = vmatpush3.bf16.msra.mxu0 %v4551_v29 }
0x179e   :  { %3607 = vmatprep.subr.bf16.mxu0 %v4194_v4 }
0x186b   :  { %v971_v7 = vpop.f32.mrb[20].mxu0 }
0x186c   :  { %v4589_v8 = vadd.f32 %v3309_v23, %v971_v7  ;;  %v3581_v9 = vpop.f32.mrb[21].mxu0 }
0x186d   :  { %v974_v10 = vpop.f32.mrb[22].mxu0 }
0x186e   :  { %v1038_v12 = vadd.f32 %v1032_v1, %v4589_v8  ;;  %v4592_v13 = vadd.f32 %v3309_v23, %v974_v10  ;;  %v3582_v14 = vpop.f32.mrb[23].mxu0 }
0x1870   :  { %3904 = vtanh.f32 %v1038_v12  ;;  %v3318_v16 = vmul.f32 -1.442695, %v1038_v12 }
0x1872   :  { %3906 = vpow2.f32 %v3318_v16 }
0x187a   :  { %v3905_v15 = vpop.eup %3904 }
0x187b   :  { %1052 = vrot.lane.b32.xlu1 %v3905_v15, %s4198_s2 }
0x187c   :  { %v3907_v17 = vpop.eup %3906 }
0x187d   :  { %v1042_v18 = vadd.f32 1.0, %v3907_v17 }
0x187f   :  { %3908 = vrcp.f32 %v1042_v18 }
0x1889   :  { %v3909_v19 = vpop.eup %3908 }
0x188a   :  { %v1050_v22 = vmul.f32 %v3909_v19, %v1048_v21 }
0x18ed   :  { %v1053_v53 = vpop.permute.xlu1 %1052 }
0x18ee   :  { %v1055_v20 = vmul.f32 %v3909_v19, %v1053_v53 }
0x18f0   :  { %1057 = vrot.lane.b32.xlu1 %v1055_v20, %s4198_s2 }
0x1962   :  { %v1058_v24 = vpop.permute.xlu1 %1057 }
0x1963   :  { %v1060_v25 = vadd.f32 %v1058_v24, %v1050_v22 }
0x1965   :  { %3910 = vtanh.f32 %v1060_v25  ;;  %v1126_v46 = vrot.slane %v1060_v25, 6 }
0x196f   :  { %v3911_v26 = vpop.eup %3910 }
0x1970   :  { %1063 = vrot.lane.b32.xlu0 %v3911_v26, %s4198_s2 }
0x19e2   :  { %v1064_v27 = vpop.permute.xlu0 %1063 }
0x19e3   :  { %v1066_v28 = vmul.f32 %v3909_v19, %v1064_v27 }
0x19e5   :  { %v1067_v31 = vpack.c.bf16 %v1066_v28, %v1066_v28 }
0x19e7   :  { %1069 = vrot.lane.b32.xlu1 %v1067_v31, %s4199_s8 }
0x1a59   :  { %v1070_v32 = vpop.permute.xlu1 %1069 }
0x1a5a   :  { %3596 = vmatmul.mubr.msk.bf16.vlgmr.msra.gmra.mrb[24].mxu0 %vm273_vm8, %v1070_v32 }
0x1a5b   :  { %3608 = vmatpush3.bf16.msra.mxu0 %v4542_v55  ;;  %3611 = vmatprep.mubr.msk.bf16.mxu0 %vm4196_vm0, %v4194_v4 }
0x1a5c   :  { %3609 = vmatprep.subr.bf16.mxu0 %v4194_v4 }
0x1a5f   :  { %3610 = vmatpush3.bf16.msra.mxu0 %v4551_v29 }
0x1a60   :  { %3623 = vmatprep.subr.bf16.mxu0 %v4194_v4 }
0x1b2d   :  { %v1108_v33 = vpop.f32.mrb[24].mxu0 }
0x1b2e   :  { %v1115_v34 = vrot.slane %v1108_v33, 6  ;;  %v3597_v35 = vpop.f32.mrb[25].mxu0 }
0x1b2f   :  { %v1111_v36 = vpop.f32.mrb[26].mxu0 }
0x1b30   :  { %v1117_v37 = vadd.f32 %v1115_v34, %v4589_v8  ;;  %v3598_v38 = vpop.f32.mrb[27].mxu0 }
0x1b32   :  { %3912 = vtanh.f32 %v1117_v37  ;;  %v3320_v40 = vmul.f32 -1.442695, %v1117_v37 }
0x1b34   :  { %3914 = vpow2.f32 %v3320_v40 }
0x1b3c   :  { %v3913_v39 = vpop.eup %3912 }
0x1b3d   :  { %1130 = vrot.lane.b32.xlu0 %v3913_v39, %s4198_s2 }
0x1b3e   :  { %v3915_v41 = vpop.eup %3914 }
0x1b3f   :  { %v1121_v42 = vadd.f32 1.0, %v3915_v41 }
0x1b41   :  { %3916 = vrcp.f32 %v1121_v42 }
0x1b4b   :  { %v3917_v43 = vpop.eup %3916 }
0x1b4c   :  { %v1128_v47 = vmul.f32 %v3917_v43, %v1126_v46 }
0x1baf   :  { %v1131_v44 = vpop.permute.xlu0 %1130 }
0x1bb0   :  { %v1133_v45 = vmul.f32 %v3917_v43, %v1131_v44 }
0x1bb2   :  { %1135 = vrot.lane.b32.xlu1 %v1133_v45, %s4198_s2 }
0x1c24   :  { %v1136_v48 = vpop.permute.xlu1 %1135 }
0x1c25   :  { %v1138_v49 = vadd.f32 %v1136_v48, %v1128_v47 }
0x1c27   :  { %3918 = vtanh.f32 %v1138_v49  ;;  %v1205_v9 = vrot.slane %v1138_v49, 6 }
0x1c31   :  { %v3919_v50 = vpop.eup %3918 }
0x1c32   :  { %1141 = vrot.lane.b32.xlu0 %v3919_v50, %s4198_s2 }
0x1ca4   :  { %v1142_v51 = vpop.permute.xlu0 %1141 }
0x1ca5   :  { %v1144_v52 = vmul.f32 %v3917_v43, %v1142_v51 }
0x1ca7   :  { %v1145_v57 = vpack.c.bf16 %v1144_v52, %v1144_v52 }
0x1ca9   :  { %v1147_v56 = vrot.slane %v1145_v57, 1 }
0x1cab   :  { %1148 = vrot.lane.b32.xlu1 %v1147_v56, %s4199_s8 }
0x1d1d   :  { %v1149_v58 = vpop.permute.xlu1 %1148 }
0x1d1e   :  { %3604 = vmatmul.mubr.msk.bf16.vlgmr.msra.gmra.mrb[24].mxu1 %vm273_vm8, %v1149_v58 }
0x1d1f   :  { %3616 = vmatpush3.bf16.msra.mxu1 %v4542_v55  ;;  %3619 = vmatprep.mubr.msk.bf16.mxu1 %vm4196_vm0, %v4194_v4 }
0x1d20   :  { %3617 = vmatprep.subr.bf16.mxu1 %v4194_v4 }
0x1d23   :  { %3618 = vmatpush3.bf16.msra.mxu1 %v4551_v29 }
0x1d24   :  { %3631 = vmatprep.subr.bf16.mxu1 %v4194_v4 }
0x1df1   :  { %v1187_v59 = vpop.f32.mrb[24].mxu1 }
0x1df2   :  { %v1194_v60 = vrot.slane %v1187_v59, 4  ;;  %v3605_v30 = vpop.f32.mrb[25].mxu1 }
0x1df3   :  { %v1190_v62 = vpop.f32.mrb[26].mxu1 }
0x1df4   :  { %v1196_v63 = vadd.f32 %v1194_v60, %v4589_v8  ;;  %v3606_v0 = vpop.f32.mrb[27].mxu1 }
0x1df6   :  { %3920 = vtanh.f32 %v1196_v63  ;;  %v3322_v2 = vmul.f32 -1.442695, %v1196_v63 }
0x1df8   :  { %3922 = vpow2.f32 %v3322_v2 }
0x1e00   :  { %v3921_v1 = vpop.eup %3920 }
0x1e01   :  { %1209 = vrot.lane.b32.xlu0 %v3921_v1, %s4198_s2 }
0x1e02   :  { %v3923_v3 = vpop.eup %3922 }
0x1e03   :  { %v1200_v5 = vadd.f32 1.0, %v3923_v3 }
0x1e05   :  { %3924 = vrcp.f32 %v1200_v5 }
0x1e0f   :  { %v3925_v6 = vpop.eup %3924 }
0x1e10   :  { %v1207_v10 = vmul.f32 %v3925_v6, %v1205_v9 }
0x1e73   :  { %v1210_v23 = vpop.permute.xlu0 %1209 }
0x1e74   :  { %v1212_v7 = vmul.f32 %v3925_v6, %v1210_v23 }
0x1e76   :  { %1214 = vrot.lane.b32.xlu1 %v1212_v7, %s4198_s2 }
0x1ee8   :  { %v1215_v12 = vpop.permute.xlu1 %1214 }
0x1ee9   :  { %v1217_v14 = vadd.f32 %v1215_v12, %v1207_v10 }
0x1eeb   :  { %3926 = vtanh.f32 %v1217_v14  ;;  %v1284_v36 = vrot.slane %v1217_v14, 6 }
0x1ef5   :  { %v3927_v15 = vpop.eup %3926 }
0x1ef6   :  { %1220 = vrot.lane.b32.xlu0 %v3927_v15, %s4198_s2 }
0x1f68   :  { %v1221_v16 = vpop.permute.xlu0 %1220 }
0x1f69   :  { %v1223_v17 = vmul.f32 %v3925_v6, %v1221_v16 }
0x1f6b   :  { %v1224_v18 = vpack.c.bf16 %v1223_v17, %v1223_v17 }
0x1f6d   :  { %v1226_v19 = vrot.slane %v1224_v18, 2 }
0x1f6f   :  { %1227 = vrot.lane.b32.xlu1 %v1226_v19, %s4199_s8 }
0x1fe1   :  { %v1228_v53 = vpop.permute.xlu1 %1227 }
0x1fe2   :  { %3612 = vmatmul.mubr.msk.bf16.vlgmr.msra.gmra.mrb[28].mxu0 %vm273_vm8, %v1228_v53 }
0x1fe3   :  { %3624 = vmatpush3.bf16.msra.mxu0 %v4542_v55  ;;  %3627 = vmatprep.mubr.msk.bf16.mxu0 %vm4196_vm0, %v4194_v4 }
0x1fe4   :  { %3625 = vmatprep.subr.bf16.mxu0 %v4194_v4 }
0x1fe7   :  { %3626 = vmatpush3.bf16.msra.mxu0 %v4551_v29 }
0x1fe8   :  { %3639 = vmatprep.subr.bf16.mxu0 %v4194_v4 }
0x20b5   :  { %v1266_v20 = vpop.f32.mrb[28].mxu0 }
0x20b6   :  { %v1273_v21 = vrot.slane %v1266_v20, 2  ;;  %v3613_v22 = vpop.f32.mrb[29].mxu0 }
0x20b7   :  { %v1269_v24 = vpop.f32.mrb[30].mxu0 }
0x20b8   :  { %v1275_v25 = vadd.f32 %v1273_v21, %v4589_v8  ;;  %v3614_v26 = vpop.f32.mrb[31].mxu0 }
0x20ba   :  { %3928 = vtanh.f32 %v1275_v25  ;;  %v3324_v28 = vmul.f32 -1.442695, %v1275_v25 }
0x20bc   :  { %3930 = vpow2.f32 %v3324_v28 }
0x20c4   :  { %v3929_v27 = vpop.eup %3928 }
0x20c5   :  { %1288 = vrot.lane.b32.xlu0 %v3929_v27, %s4198_s2 }
0x20c6   :  { %v3931_v31 = vpop.eup %3930 }
0x20c7   :  { %v1279_v32 = vadd.f32 1.0, %v3931_v31 }
0x20c9   :  { %3932 = vrcp.f32 %v1279_v32 }
0x20d3   :  { %v3933_v33 = vpop.eup %3932 }
0x20d4   :  { %v1286_v37 = vmul.f32 %v3933_v33, %v1284_v36 }
0x2137   :  { %v1289_v34 = vpop.permute.xlu0 %1288 }
0x2138   :  { %v1291_v35 = vmul.f32 %v3933_v33, %v1289_v34 }
0x213a   :  { %1293 = vrot.lane.b32.xlu1 %v1291_v35, %s4198_s2 }
0x21ac   :  { %v1294_v38 = vpop.permute.xlu1 %1293 }
0x21ad   :  { %v1296_v39 = vadd.f32 %v1294_v38, %v1286_v37 }
0x21af   :  { %3934 = vtanh.f32 %v1296_v39  ;;  %v1360_v60 = vrot.slane %v1296_v39, 6 }
0x21b9   :  { %v3935_v8 = vpop.eup %3934 }
0x21ba   :  { %1299 = vrot.lane.b32.xlu0 %v3935_v8, %s4198_s2 }
0x222c   :  { %v1300_v40 = vpop.permute.xlu0 %1299 }
0x222d   :  { %v1302_v41 = vmul.f32 %v3933_v33, %v1300_v40 }
0x222f   :  { %v1303_v42 = vpack.c.bf16 %v1302_v41, %v1302_v41 }
0x2231   :  { %v1305_v43 = vrot.slane %v1303_v42, 3 }
0x2233   :  { %1306 = vrot.lane.b32.xlu1 %v1305_v43, %s4199_s8 }
0x22a5   :  { %v1307_v44 = vpop.permute.xlu1 %1306 }
0x22a6   :  { %3620 = vmatmul.mubr.msk.bf16.vlgmr.msra.gmra.mrb[28].mxu1 %vm273_vm8, %v1307_v44 }
0x22a7   :  { %3632 = vmatpush3.bf16.msra.mxu1 %v4542_v55  ;;  %3635 = vmatprep.mubr.msk.bf16.mxu1 %vm4196_vm0, %v4194_v4 }
0x22a8   :  { %3633 = vmatprep.subr.bf16.mxu1 %v4194_v4 }
0x22ab   :  { %3634 = vmatpush3.bf16.msra.mxu1 %v4551_v29 }
0x22ac   :  { %3647 = vmatprep.subr.bf16.mxu1 %v4194_v4 }
0x2379   :  { %v1345_v45 = vpop.f32.mrb[28].mxu1 }
0x237a   :  { %v1351_v46 = vadd.f32 %v1345_v45, %v4592_v13  ;;  %v3621_v47 = vpop.f32.mrb[29].mxu1 }
0x237b   :  { %v1348_v48 = vpop.f32.mrb[30].mxu1 }
0x237c   :  { %3936 = vtanh.f32 %v1351_v46  ;;  %v3622_v49 = vpop.f32.mrb[31].mxu1  ;;  %v3326_v51 = vmul.f32 -1.442695, %v1351_v46 }
0x237e   :  { %3938 = vpow2.f32 %v3326_v51 }
0x2386   :  { %v3937_v50 = vpop.eup %3936 }
0x2387   :  { %1364 = vrot.lane.b32.xlu0 %v3937_v50, %s4198_s2 }
0x2388   :  { %v3939_v52 = vpop.eup %3938 }
0x2389   :  { %v1355_v57 = vadd.f32 1.0, %v3939_v52 }
0x238b   :  { %3940 = vrcp.f32 %v1355_v57 }
0x2395   :  { %v3941_v56 = vpop.eup %3940 }
0x2396   :  { %v1362_v30 = vmul.f32 %v3941_v56, %v1360_v60 }
0x23f9   :  { %v1365_v58 = vpop.permute.xlu0 %1364 }
0x23fa   :  { %v1367_v59 = vmul.f32 %v3941_v56, %v1365_v58 }
0x23fc   :  { %1369 = vrot.lane.b32.xlu1 %v1367_v59, %s4198_s2 }
0x246e   :  { %v1370_v62 = vpop.permute.xlu1 %1369 }
0x246f   :  { %v1372_v63 = vadd.f32 %v1370_v62, %v1362_v30 }
0x2471   :  { %3942 = vtanh.f32 %v1372_v63  ;;  %v1438_v19 = vrot.slane %v1372_v63, 6 }
0x247b   :  { %v3943_v0 = vpop.eup %3942 }
0x247c   :  { %1375 = vrot.lane.b32.xlu0 %v3943_v0, %s4198_s2 }
0x24ee   :  { %v1376_v1 = vpop.permute.xlu0 %1375 }
0x24ef   :  { %v1378_v2 = vmul.f32 %v3941_v56, %v1376_v1 }
0x24f1   :  { %v1379_v3 = vpack.c.bf16 %v1378_v2, %v1378_v2 }
0x24f3   :  { %1381 = vrot.lane.b32.xlu1 %v1379_v3, %s4199_s8 }
0x2565   :  { %v1382_v5 = vpop.permute.xlu1 %1381 }
0x2566   :  { %3628 = vmatmul.mubr.msk.bf16.vlgmr.msra.gmra.mrb[32].mxu0 %vm273_vm8, %v1382_v5 }
0x2567   :  { %3640 = vmatpush3.bf16.msra.mxu0 %v4542_v55  ;;  %3643 = vmatprep.mubr.msk.bf16.mxu0 %vm4196_vm0, %v4194_v4 }
0x2568   :  { %3641 = vmatprep.subr.bf16.mxu0 %v4194_v4 }
0x256b   :  { %3642 = vmatpush3.bf16.msra.mxu0 %v4551_v29 }
0x256c   :  { %3655 = vmatprep.subr.bf16.mxu0 %v4194_v4 }
0x2639   :  { %v1420_v6 = vpop.f32.mrb[32].mxu0 }
0x263a   :  { %v1427_v23 = vrot.slane %v1420_v6, 6  ;;  %v3629_v7 = vpop.f32.mrb[33].mxu0 }
0x263b   :  { %v1423_v9 = vpop.f32.mrb[34].mxu0 }
0x263c   :  { %v1429_v10 = vadd.f32 %v1427_v23, %v4592_v13  ;;  %v3630_v12 = vpop.f32.mrb[35].mxu0 }
0x263e   :  { %3944 = vtanh.f32 %v1429_v10  ;;  %v3328_v55 = vmul.f32 -1.442695, %v1429_v10  ;;  %v3833_v10 = vld [vmem:[%s5275_s1 + $0x8] sm:$0xff]  }
0x2640   :  { %3946 = vpow2.f32 %v3328_v55 }
0x2648   :  { %v3945_v14 = vpop.eup %3944 }
0x2649   :  { %1442 = vrot.lane.b32.xlu0 %v3945_v14, %s4198_s2  ;;  %v3834_v14 = vld [vmem:[%s5229_s13] sm:$0xff]  }
0x264a   :  { %v3947_v15 = vpop.eup %3946 }
0x264b   :  { %v1433_v16 = vadd.f32 1.0, %v3947_v15 }
0x264d   :  { %3948 = vrcp.f32 %v1433_v16 }
0x2657   :  { %v3949_v17 = vpop.eup %3948 }
0x2658   :  { %v1440_v53 = vmul.f32 %v3949_v17, %v1438_v19 }
0x26bb   :  { %v1443_v29 = vpop.permute.xlu0 %1442 }
0x26bc   :  { %v1445_v18 = vmul.f32 %v3949_v17, %v1443_v29 }
0x26be   :  { %1447 = vrot.lane.b32.xlu1 %v1445_v18, %s4198_s2  ;;  %v3835_v18 = vld [vmem:[%s5229_s13 + $0x8] ss:$0 sps:$4 sm:$0xff]  }
0x26bf   :  { %v1735_v19 = vsel %vm896_vm11, %v3835_v18, 0 }
0x2730   :  { %v1448_v20 = vpop.permute.xlu1 %1447 }
0x2731   :  { %v1450_v21 = vadd.f32 %v1448_v20, %v1440_v53  ;;  %v1802_v53 = vld [vmem:[%s5231_s15] sm:$0x3] }
0x2732   :  { %v3333_v20 = vld [vmem:[%s5228_s12] ss:$0 sm:$0xff] }
0x2733   :  { %3950 = vtanh.f32 %v1450_v21  ;;  %v1517_v43 = vrot.slane %v1450_v21, 6 }
0x273d   :  { %v3951_v22 = vpop.eup %3950 }
0x273e   :  { %1453 = vrot.lane.b32.xlu0 %v3951_v22, %s4198_s2 }
0x27b0   :  { %v1454_v24 = vpop.permute.xlu0 %1453 }
0x27b1   :  { %v1456_v25 = vmul.f32 %v3949_v17, %v1454_v24 }
0x27b3   :  { %v1457_v26 = vpack.c.bf16 %v1456_v25, %v1456_v25 }
0x27b5   :  { %v1459_v27 = vrot.slane %v1457_v26, 1 }
0x27b7   :  { %1460 = vrot.lane.b32.xlu1 %v1459_v27, %s4199_s8 }
0x2829   :  { %v1461_v28 = vpop.permute.xlu1 %1460 }
0x282a   :  { %3636 = vmatmul.mubr.msk.bf16.vlgmr.msra.gmra.mrb[32].mxu1 %vm273_vm8, %v1461_v28 }
0x282b   :  { %3651 = vmatprep.mubr.msk.bf16.mxu1 %vm4196_vm0, %v4194_v4 }
0x28fd   :  { %v1499_v31 = vpop.f32.mrb[32].mxu1 }
0x28fe   :  { %v1506_v32 = vrot.slane %v1499_v31, 4  ;;  %v3637_v33 = vpop.f32.mrb[33].mxu1  ;;  %v4713_v31 = vld [vmem:[%s5233_s17] sm:$0xff]  }
0x28ff   :  { %v1502_v34 = vpop.f32.mrb[34].mxu1  ;;  %v1805_v33 = vld [vmem:[%s5232_s16] sm:$0x3] }
0x2900   :  { %v1508_v35 = vadd.f32 %v1506_v32, %v4592_v13  ;;  %v3638_v36 = vpop.f32.mrb[35].mxu1  ;;  %v4720_v32 = vld [vmem:[%s5233_s17 + $0x8] sm:$0xff]   ;;  %v3337_v34 = vld [vmem:[%s5230_s14] ss:$0 sm:$0xff] }
0x2902   :  { %3952 = vtanh.f32 %v1508_v35  ;;  %v3330_v38 = vmul.f32 -1.442695, %v1508_v35 }
0x2904   :  { %3954 = vpow2.f32 %v3330_v38 }
0x290c   :  { %v3953_v37 = vpop.eup %3952 }
0x290d   :  { %1521 = vrot.lane.b32.xlu0 %v3953_v37, %s4198_s2 }
0x290e   :  { %v3955_v39 = vpop.eup %3954 }
0x290f   :  { %v1512_v8 = vadd.f32 1.0, %v3955_v39 }
0x2911   :  { %3956 = vrcp.f32 %v1512_v8 }
0x291b   :  { %v3957_v40 = vpop.eup %3956 }
0x291c   :  { %v1519_v44 = vmul.f32 %v3957_v40, %v1517_v43  ;;  %v4742_v43 = vld [vmem:[%s5234_s18] ss:$0 sm:$0xff] }
0x297f   :  { %v1522_v41 = vpop.permute.xlu0 %1521 }
0x2980   :  { %v1524_v42 = vmul.f32 %v3957_v40, %v1522_v41 }
0x2982   :  { %1526 = vrot.lane.b32.xlu1 %v1524_v42, %s4198_s2 }
0x29f4   :  { %v1527_v45 = vpop.permute.xlu1 %1526 }
0x29f5   :  { %v1529_v46 = vadd.f32 %v1527_v45, %v1519_v44 }
0x29f7   :  { %3958 = vtanh.f32 %v1529_v46  ;;  %v1596_v6 = vrot.slane %v1529_v46, 6 }
0x2a01   :  { %v3959_v47 = vpop.eup %3958 }
0x2a02   :  { %1532 = vrot.lane.b32.xlu0 %v3959_v47, %s4198_s2 }
0x2a74   :  { %v1533_v48 = vpop.permute.xlu0 %1532 }
0x2a75   :  { %v1535_v49 = vmul.f32 %v3957_v40, %v1533_v48 }
0x2a77   :  { %v1536_v50 = vpack.c.bf16 %v1535_v49, %v1535_v49 }
0x2a79   :  { %v1538_v51 = vrot.slane %v1536_v50, 2 }
0x2a7b   :  { %1539 = vrot.lane.b32.xlu1 %v1538_v51, %s4199_s8 }
0x2aed   :  { %v1540_v52 = vpop.permute.xlu1 %1539 }
0x2aee   :  { %3644 = vmatmul.mubr.msk.bf16.vlgmr.msra.gmra.mrb[36].mxu0 %vm273_vm8, %v1540_v52 }
0x2aef   :  { %3659 = vmatprep.mubr.msk.bf16.mxu0 %vm4196_vm0, %v4194_v4  ;;  %3656 = vmatpush3.bf16.msra.mxu0 %v3834_v14 }
0x2af0   :  { %3657 = vmatprep.subr.bf16.mxu0 %v4194_v4 }
0x2af3   :  { %3658 = vmatpush3.bf16.msra.mxu0 %v1735_v19 }
0x2af4   :  { %3671 = vmatprep.subr.bf16.mxu0 %v4194_v4 }
0x2bc1   :  { %v1578_v57 = vpop.f32.mrb[36].mxu0 }
0x2bc2   :  { %v1585_v56 = vrot.slane %v1578_v57, 2  ;;  %v3645_v58 = vpop.f32.mrb[37].mxu0 }
0x2bc3   :  { %v1581_v59 = vpop.f32.mrb[38].mxu0 }
0x2bc4   :  { %v1587_v60 = vadd.f32 %v1585_v56, %v4592_v13  ;;  %v3646_v30 = vpop.f32.mrb[39].mxu0  ;;  %v3832_v13 = vld [vmem:[%s5275_s1] sm:$0xff]  }
0x2bc5   :  { %3648 = vmatpush3.bf16.msra.mxu1 %v3832_v13 }
0x2bc6   :  { %3960 = vtanh.f32 %v1587_v60  ;;  %v3332_v63 = vmul.f32 -1.442695, %v1587_v60  ;;  %3649 = vmatprep.subr.bf16.mxu1 %v4194_v4 }
0x2bc8   :  { %3962 = vpow2.f32 %v3332_v63  ;;  %v4753_v63 = vld [vmem:[%s5233_s17 + $0x10] sm:$0xff]  }
0x2bc9   :  { %3650 = vmatpush3.bf16.msra.mxu1 %v3833_v10 }
0x2bca   :  { %3663 = vmatprep.subr.bf16.mxu1 %v4194_v4 }
0x2bd0   :  { %v3961_v62 = vpop.eup %3960 }
0x2bd1   :  { %1600 = vrot.lane.b32.xlu0 %v3961_v62, %s4198_s2 }
0x2bd2   :  { %v3963_v0 = vpop.eup %3962 }
0x2bd3   :  { %v1591_v1 = vadd.f32 1.0, %v3963_v0  ;;  %v4759_v0 = vld [vmem:[%s5233_s17 + $0x18] sm:$0xff]   ;;  %s4202_s17 = smov 96  }
0x2bd5   :  { %3964 = vrcp.f32 %v1591_v1 }
0x2bdf   :  { %v3965_v2 = vpop.eup %3964 }
0x2be0   :  { %v1598_v23 = vmul.f32 %v3965_v2, %v1596_v6 }
0x2c43   :  { %v1601_v3 = vpop.permute.xlu0 %1600 }
0x2c44   :  { %v1603_v5 = vmul.f32 %v3965_v2, %v1601_v3  ;;  %v3349_v3 = vld [vmem:[%s5232_s16 + $0x2] sm:$0x3] }
0x2c46   :  { %1605 = vrot.lane.b32.xlu1 %v1603_v5, %s4198_s2 }
0x2cb8   :  { %v1606_v7 = vpop.permute.xlu1 %1605 }
0x2cb9   :  { %v4672_v9 = vadd.f32 %v1606_v7, %v1598_v23 }
0x2cbb   :  { %3966 = vtanh.f32 %v4672_v9 }
0x2cc5   :  { %v3967_v12 = vpop.eup %3966 }
0x2cc6   :  { %1611 = vrot.lane.b32.xlu0 %v3967_v12, %s4198_s2  ;;  %v4785_v12 = vld [vmem:[%s5234_s18 + $0x1] ss:$0 sm:$0xff] }
0x2cca   :  { %1809 = vrot.lane.b32.xlu0 %v1802_v53, %s4200_s5 }
0x2cce   :  { %1877 = vrot.lane.b32.xlu0 %v1805_v33, %s4200_s5 }
0x2d38   :  { %v1612_v55 = vpop.permute.xlu0 %1611 }
0x2d39   :  { %v4688_v15 = vmul.f32 %v3965_v2, %v1612_v55  ;;  %v3348_v2 = vld [vmem:[%s5231_s15 + $0x2] sm:$0x3] }
0x2d3b   :  { %v1642_v16 = vpack.c.bf16 %v4688_v15, %v4688_v15 }
0x2d3c   :  { %v1810_v39 = vpop.permute.xlu0 %1809 }
0x2d3d   :  { %v1651_v17 = vrot.slane %v1642_v16, 3 }
0x2d3f   :  { %1652 = vrot.lane.b32.xlu1 %v1651_v17, %s4199_s8 }
0x2d40   :  { %v1878_v59 = vpop.permute.xlu0 %1877 }
0x2db1   :  { %v1653_v29 = vpop.permute.xlu1 %1652 }
0x2db2   :  { %3652 = vmatmul.mubr.msk.bf16.vlgmr.msra.gmra.mrb[36].mxu1 %vm273_vm8, %v1653_v29 }
0x2db3   :  { %3667 = vmatprep.mubr.msk.bf16.mxu1 %vm4196_vm0, %v4194_v4  ;;  %3664 = vmatpush3.bf16.msra.mxu1 %v4713_v31 }
0x2db4   :  { %3665 = vmatprep.subr.bf16.mxu1 %v4194_v4 }
0x2db7   :  { %3666 = vmatpush3.bf16.msra.mxu1 %v4720_v32 }
0x2db8   :  { %3679 = vmatprep.subr.bf16.mxu1 %v4194_v4 }
0x2e85   :  { %v1703_v21 = vpop.f32.mrb[36].mxu1 }
0x2e86   :  { %v1704_v22 = vadd.f32 %v3333_v20, %v1703_v21  ;;  %v3653_v24 = vpop.f32.mrb[37].mxu1 }
0x2e87   :  { %v1706_v25 = vpop.f32.mrb[38].mxu1 }
0x2e88   :  { %v1709_v26 = vmax.f32 %v1704_v22, 0.0  ;;  %v3654_v27 = vpop.f32.mrb[39].mxu1 }
0x2e8a   :  { %v1713_v28 = vpack.c.bf16 %v1709_v26, %v1709_v26 }
0x2e8c   :  { %3660 = vmatmul.mubr.msk.bf16.vlgmr.msra.gmra.mrb[40].mxu0 %vm1730_vm13, %v1713_v28 }
0x2e8d   :  { %3675 = vmatprep.mubr.msk.bf16.mxu0 %vm4196_vm0, %v4194_v4  ;;  %3672 = vmatpush3.bf16.msra.mxu0 %v4753_v63 }
0x2e8e   :  { %3673 = vmatprep.subr.bf16.mxu0 %v4194_v4 }
0x2e91   :  { %3674 = vmatpush3.bf16.msra.mxu0 %v4759_v0 }
0x2e92   :  { %3687 = vmatprep.subr.bf16.mxu0 %v4194_v4 }
0x2f5f   :  { %v1771_v35 = vpop.f32.mrb[40].mxu0 }
0x2f60   :  { %v1772_v36 = vadd.f32 %v3337_v34, %v1771_v35  ;;  %v3661_v37 = vpop.f32.mrb[41].mxu0 }
0x2f61   :  { %v1774_v38 = vpop.f32.mrb[42].mxu0 }
0x2f62   :  { %v1777_v8 = vmax.f32 %v1772_v36, 0.0  ;;  %v3662_v40 = vpop.f32.mrb[43].mxu0 }
0x2f64   :  { %v1812_v41 = vsel %vm134_vm7, %v1777_v8, %v1810_v39 }
0x2f65   :  { %v1813_v42 = vpack.c.bf16 %v1812_v41, %v1812_v41 }
0x2f67   :  { %3668 = vmatmul.mubr.msk.bf16.vlgmr.msra.gmra.mrb[40].mxu1 %vm273_vm8, %v1813_v42 }
0x2f68   :  { %3680 = vmatpush3.bf16.msra.mxu1 %v4713_v31  ;;  %3683 = vmatprep.mubr.msk.bf16.mxu1 %vm4196_vm0, %v4194_v4 }
0x2f69   :  { %3681 = vmatprep.subr.bf16.mxu1 %v4194_v4 }
0x2f6c   :  { %3682 = vmatpush3.bf16.msra.mxu1 %v4720_v32 }
0x2f6d   :  { %3695 = vmatprep.subr.bf16.mxu1 %v4194_v4 }
0x303a   :  { %v1863_v44 = vpop.f32.mrb[40].mxu1 }
0x303b   :  { %v1864_v45 = vadd.f32 %v4742_v43, %v1863_v44  ;;  %v3669_v46 = vpop.f32.mrb[41].mxu1 }
0x303c   :  { %v1866_v47 = vpop.f32.mrb[42].mxu1 }
0x303d   :  { %3968 = vtanh.f32 %v1864_v45  ;;  %v3670_v48 = vpop.f32.mrb[43].mxu1  ;;  %v3353_v50 = vmul.f32 -1.442695, %v1864_v45 }
0x303f   :  { %3970 = vpow2.f32 %v3353_v50 }
0x3047   :  { %v3969_v49 = vpop.eup %3968 }
0x3048   :  { %1882 = vrot.lane.b32.xlu1 %v3969_v49, %s4201_s29 }
0x3049   :  { %v3971_v51 = vpop.eup %3970 }
0x304a   :  { %v1872_v52 = vadd.f32 1.0, %v3971_v51 }
0x304c   :  { %3972 = vrcp.f32 %v1872_v52 }
0x3056   :  { %v3973_v57 = vpop.eup %3972 }
0x3057   :  { %v1880_v60 = vmul.f32 %v3973_v57, %v1878_v59 }
0x30ba   :  { %v1883_v56 = vpop.permute.xlu1 %1882 }
0x30bb   :  { %v1885_v58 = vmul.f32 %v3973_v57, %v1883_v56 }
0x30bd   :  { %1887 = vrot.lane.b32.xlu1 %v1885_v58, %s4200_s5 }
0x312f   :  { %v1888_v30 = vpop.permute.xlu1 %1887 }
0x3130   :  { %v4747_v62 = vadd.f32 %v1888_v30, %v1880_v60 }
0x3132   :  { %3974 = vtanh.f32 %v4747_v62 }
0x313c   :  { %v3975_v1 = vpop.eup %3974 }
0x313d   :  { %1893 = vrot.lane.b32.xlu0 %v3975_v1, %s4200_s5 }
0x3141   :  { %1902 = vrot.lane.b32.xlu0 %v3348_v2, %s4200_s5 }
0x3145   :  { %1970 = vrot.lane.b32.xlu0 %v3349_v3, %s4200_s5 }
0x31af   :  { %v1894_v5 = vpop.permute.xlu0 %1893 }
0x31b0   :  { %v1896_v6 = vmul.f32 %v3973_v57, %v1894_v5 }
0x31b2   :  { %1898 = vrot.lane.b32.xlu1 %v1896_v6, %s4202_s17 }
0x31b3   :  { %v1903_v23 = vpop.permute.xlu0 %1902 }
0x31b7   :  { %v1971_v25 = vpop.permute.xlu0 %1970 }
0x3224   :  { %v1899_v7 = vpop.permute.xlu1 %1898 }
0x3225   :  { %v1905_v13 = vsel %vm134_vm7, %v1899_v7, %v1903_v23 }
0x3226   :  { %v1906_v10 = vpack.c.bf16 %v1905_v13, %v1905_v13 }
0x3228   :  { %3676 = vmatmul.mubr.msk.bf16.vlgmr.msra.gmra.mrb[44].mxu0 %vm273_vm8, %v1906_v10 }
0x3229   :  { %3688 = vmatpush3.bf16.msra.mxu0 %v4753_v63  ;;  %3691 = vmatprep.mubr.msk.bf16.mxu0 %vm4196_vm0, %v4194_v4 }
0x322a   :  { %3689 = vmatprep.subr.bf16.mxu0 %v4194_v4 }
0x322d   :  { %3690 = vmatpush3.bf16.msra.mxu0 %v4759_v0 }
0x322e   :  { %3703 = vmatprep.subr.bf16.mxu0 %v4194_v4 }
0x32fb   :  { %v1956_v14 = vpop.f32.mrb[44].mxu0 }
0x32fc   :  { %v1957_v55 = vadd.f32 %v4785_v12, %v1956_v14  ;;  %v3677_v16 = vpop.f32.mrb[45].mxu0 }
0x32fd   :  { %v1959_v17 = vpop.f32.mrb[46].mxu0 }
0x32fe   :  { %3976 = vtanh.f32 %v1957_v55  ;;  %v3678_v29 = vpop.f32.mrb[47].mxu0  ;;  %v3357_v19 = vmul.f32 -1.442695, %v1957_v55 }
0x3300   :  { %3978 = vpow2.f32 %v3357_v19 }
0x3308   :  { %v3977_v18 = vpop.eup %3976 }
0x3309   :  { %1975 = vrot.lane.b32.xlu1 %v3977_v18, %s4201_s29 }
0x330a   :  { %v3979_v53 = vpop.eup %3978 }
0x330b   :  { %v1965_v20 = vadd.f32 1.0, %v3979_v53 }
0x330d   :  { %3980 = vrcp.f32 %v1965_v20 }
0x3317   :  { %v3981_v21 = vpop.eup %3980 }
0x3318   :  { %v1973_v26 = vmul.f32 %v3981_v21, %v1971_v25 }
0x337b   :  { %v1976_v22 = vpop.permute.xlu1 %1975 }
0x337c   :  { %v1978_v24 = vmul.f32 %v3981_v21, %v1976_v22 }
0x337e   :  { %1980 = vrot.lane.b32.xlu1 %v1978_v24, %s4200_s5 }
0x33f0   :  { %v1981_v27 = vpop.permute.xlu1 %1980 }
0x33f1   :  { %v4790_v28 = vadd.f32 %v1981_v27, %v1973_v26 }
0x33f3   :  { %3982 = vtanh.f32 %v4790_v28 }
0x33fd   :  { %v3983_v33 = vpop.eup %3982 }
0x33fe   :  { %1986 = vrot.lane.b32.xlu0 %v3983_v33, %s4200_s5 }
0x3402   :  { %1994 = vrot.lane.b32.xlu0 %v1896_v6, %s4203_s6 }
0x3470   :  { %v1987_v34 = vpop.permute.xlu0 %1986 }
0x3471   :  { %v4795_v35 = vmul.f32 %v3981_v21, %v1987_v34 }
0x3473   :  { %1991 = vrot.lane.b32.xlu1 %v4795_v35, %s4202_s17 }
0x3474   :  { %v1995_v36 = vpop.permute.xlu0 %1994 }
0x34e5   :  { %v1992_v37 = vpop.permute.xlu1 %1991 }
0x34e6   :  { %v1997_v38 = vsel %vm134_vm7, %v1992_v37, %v1995_v36 }
0x34e7   :  { %v1998_v39 = vpack.c.bf16 %v1997_v38, %v1997_v38 }
0x34e9   :  { %3684 = vmatmul.mubr.msk.bf16.vlgmr.msra.gmra.mrb[44].mxu1 %vm273_vm8, %v1998_v39 }
0x34ea   :  { %3696 = vmatpush3.bf16.msra.mxu1 %v4713_v31  ;;  %3699 = vmatprep.mubr.msk.bf16.mxu1 %vm4196_vm0, %v4194_v4 }
0x34eb   :  { %3697 = vmatprep.subr.bf16.mxu1 %v4194_v4 }
0x34ee   :  { %3698 = vmatpush3.bf16.msra.mxu1 %v4720_v32 }
0x34ef   :  { %3711 = vmatprep.subr.bf16.mxu1 %v4194_v4 }
0x35bc   :  { %v2036_v8 = vpop.f32.mrb[44].mxu1 }
0x35bd   :  { %v2037_v40 = vadd.f32 %v4742_v43, %v2036_v8  ;;  %v3685_v41 = vpop.f32.mrb[45].mxu1 }
0x35be   :  { %v2039_v42 = vpop.f32.mrb[46].mxu1 }
0x35bf   :  { %3984 = vtanh.f32 %v2037_v40  ;;  %v3686_v44 = vpop.f32.mrb[47].mxu1  ;;  %v3359_v46 = vmul.f32 -1.442695, %v2037_v40 }
0x35c1   :  { %3986 = vpow2.f32 %v3359_v46 }
0x35c9   :  { %v3985_v45 = vpop.eup %3984 }
0x35ca   :  { %2051 = vrot.lane.b32.xlu1 %v3985_v45, %s4201_s29 }
0x35cb   :  { %v3987_v47 = vpop.eup %3986 }
0x35cc   :  { %v2045_v48 = vadd.f32 1.0, %v3987_v47 }
0x35ce   :  { %3988 = vrcp.f32 %v2045_v48 }
0x35d8   :  { %v3989_v49 = vpop.eup %3988 }
0x35d9   :  { %v2049_v52 = vmul.f32 %v3989_v49, %v4747_v62 }
0x363c   :  { %v2052_v50 = vpop.permute.xlu1 %2051 }
0x363d   :  { %v2054_v51 = vmul.f32 %v3989_v49, %v2052_v50 }
0x363f   :  { %2056 = vrot.lane.b32.xlu0 %v2054_v51, %s4200_s5 }
0x36b1   :  { %v2057_v57 = vpop.permute.xlu0 %2056 }
0x36b2   :  { %v4811_v56 = vadd.f32 %v2057_v57, %v2049_v52 }
0x36b4   :  { %3990 = vtanh.f32 %v4811_v56 }
0x36be   :  { %v3991_v58 = vpop.eup %3990 }
0x36bf   :  { %2062 = vrot.lane.b32.xlu1 %v3991_v58, %s4200_s5 }
0x36c3   :  { %2070 = vrot.lane.b32.xlu1 %v4795_v35, %s4203_s6 }
0x3731   :  { %v2063_v59 = vpop.permute.xlu1 %2062 }
0x3732   :  { %v2065_v60 = vmul.f32 %v3989_v49, %v2063_v59 }
0x3734   :  { %2067 = vrot.lane.b32.xlu0 %v2065_v60, %s4202_s17 }
0x3735   :  { %v2071_v30 = vpop.permute.xlu1 %2070 }
0x37a6   :  { %v2068_v1 = vpop.permute.xlu0 %2067 }
0x37a7   :  { %v2073_v2 = vsel %vm134_vm7, %v2068_v1, %v2071_v30 }
0x37a8   :  { %v2074_v62 = vpack.c.bf16 %v2073_v2, %v2073_v2 }
0x37aa   :  { %3692 = vmatmul.mubr.msk.bf16.vlgmr.msra.gmra.mrb[48].mxu0 %vm273_vm8, %v2074_v62 }
0x37ab   :  { %3704 = vmatpush3.bf16.msra.mxu0 %v4753_v63  ;;  %3707 = vmatprep.mubr.msk.bf16.mxu0 %vm4196_vm0, %v4194_v4 }
0x37ac   :  { %3705 = vmatprep.subr.bf16.mxu0 %v4194_v4 }
0x37af   :  { %3706 = vmatpush3.bf16.msra.mxu0 %v4759_v0 }
0x37b0   :  { %3719 = vmatprep.subr.bf16.mxu0 %v4194_v4 }
0x387d   :  { %v2112_v3 = vpop.f32.mrb[48].mxu0 }
0x387e   :  { %v2113_v5 = vadd.f32 %v4785_v12, %v2112_v3  ;;  %v3693_v6 = vpop.f32.mrb[49].mxu0 }
0x387f   :  { %v2115_v23 = vpop.f32.mrb[50].mxu0 }
0x3880   :  { %3992 = vtanh.f32 %v2113_v5  ;;  %v3694_v7 = vpop.f32.mrb[51].mxu0  ;;  %v3361_v10 = vmul.f32 -1.442695, %v2113_v5 }
0x3882   :  { %3994 = vpow2.f32 %v3361_v10 }
0x388a   :  { %v3993_v13 = vpop.eup %3992 }
0x388b   :  { %2127 = vrot.lane.b32.xlu0 %v3993_v13, %s4201_s29 }
0x388c   :  { %v3995_v14 = vpop.eup %3994 }
0x388d   :  { %v2121_v55 = vadd.f32 1.0, %v3995_v14 }
0x388f   :  { %3996 = vrcp.f32 %v2121_v55 }
0x3899   :  { %v3997_v16 = vpop.eup %3996 }
0x389a   :  { %v2125_v18 = vmul.f32 %v3997_v16, %v4790_v28 }
0x38fd   :  { %v2128_v17 = vpop.permute.xlu0 %2127 }
0x38fe   :  { %v2130_v29 = vmul.f32 %v3997_v16, %v2128_v17 }
0x3900   :  { %2132 = vrot.lane.b32.xlu1 %v2130_v29, %s4200_s5 }
0x3972   :  { %v2133_v19 = vpop.permute.xlu1 %2132 }
0x3973   :  { %v4830_v53 = vadd.f32 %v2133_v19, %v2125_v18 }
0x3975   :  { %3998 = vtanh.f32 %v4830_v53 }
0x397f   :  { %v3999_v20 = vpop.eup %3998 }
0x3980   :  { %2138 = vrot.lane.b32.xlu0 %v3999_v20, %s4200_s5 }
0x3984   :  { %2146 = vrot.lane.b32.xlu0 %v2065_v60, %s4203_s6 }
0x39f2   :  { %v2139_v21 = vpop.permute.xlu0 %2138 }
0x39f3   :  { %v4835_v22 = vmul.f32 %v3997_v16, %v2139_v21 }
0x39f5   :  { %2143 = vrot.lane.b32.xlu1 %v4835_v22, %s4202_s17 }
0x39f6   :  { %v2147_v24 = vpop.permute.xlu0 %2146 }
0x3a67   :  { %v2144_v25 = vpop.permute.xlu1 %2143 }
0x3a68   :  { %v2149_v26 = vsel %vm134_vm7, %v2144_v25, %v2147_v24 }
0x3a69   :  { %v2150_v27 = vpack.c.bf16 %v2149_v26, %v2149_v26 }
0x3a6b   :  { %3700 = vmatmul.mubr.msk.bf16.vlgmr.msra.gmra.mrb[48].mxu1 %vm273_vm8, %v2150_v27 }
0x3a6c   :  { %3712 = vmatpush3.bf16.msra.mxu1 %v4713_v31  ;;  %3715 = vmatprep.mubr.msk.bf16.mxu1 %vm4196_vm0, %v4194_v4 }
0x3a6d   :  { %3713 = vmatprep.subr.bf16.mxu1 %v4194_v4 }
0x3a70   :  { %3714 = vmatpush3.bf16.msra.mxu1 %v4720_v32 }
0x3a71   :  { %3727 = vmatprep.subr.bf16.mxu1 %v4194_v4 }
0x3b3e   :  { %v2188_v28 = vpop.f32.mrb[48].mxu1 }
0x3b3f   :  { %v2189_v33 = vadd.f32 %v4742_v43, %v2188_v28  ;;  %v3701_v34 = vpop.f32.mrb[49].mxu1 }
0x3b40   :  { %v2191_v36 = vpop.f32.mrb[50].mxu1 }
0x3b41   :  { %4000 = vtanh.f32 %v2189_v33  ;;  %v3702_v37 = vpop.f32.mrb[51].mxu1  ;;  %v3363_v39 = vmul.f32 -1.442695, %v2189_v33 }
0x3b43   :  { %4002 = vpow2.f32 %v3363_v39 }
0x3b4b   :  { %v4001_v38 = vpop.eup %4000 }
0x3b4c   :  { %2203 = vrot.lane.b32.xlu1 %v4001_v38, %s4201_s29 }
0x3b4d   :  { %v4003_v8 = vpop.eup %4002 }
0x3b4e   :  { %v2197_v40 = vadd.f32 1.0, %v4003_v8 }
0x3b50   :  { %4004 = vrcp.f32 %v2197_v40 }
0x3b5a   :  { %v4005_v41 = vpop.eup %4004 }
0x3b5b   :  { %v2201_v45 = vmul.f32 %v4005_v41, %v4811_v56 }
0x3bbe   :  { %v2204_v42 = vpop.permute.xlu1 %2203 }
0x3bbf   :  { %v2206_v44 = vmul.f32 %v4005_v41, %v2204_v42 }
0x3bc1   :  { %2208 = vrot.lane.b32.xlu0 %v2206_v44, %s4200_s5 }
0x3c33   :  { %v2209_v46 = vpop.permute.xlu0 %2208 }
0x3c34   :  { %v4851_v47 = vadd.f32 %v2209_v46, %v2201_v45 }
0x3c36   :  { %4006 = vtanh.f32 %v4851_v47 }
0x3c40   :  { %v4007_v48 = vpop.eup %4006 }
0x3c41   :  { %2214 = vrot.lane.b32.xlu1 %v4007_v48, %s4200_s5 }
0x3c45   :  { %2222 = vrot.lane.b32.xlu1 %v4835_v22, %s4203_s6 }
0x3cb3   :  { %v2215_v49 = vpop.permute.xlu1 %2214 }
0x3cb4   :  { %v2217_v50 = vmul.f32 %v4005_v41, %v2215_v49 }
0x3cb6   :  { %2219 = vrot.lane.b32.xlu0 %v2217_v50, %s4202_s17 }
0x3cb7   :  { %v2223_v51 = vpop.permute.xlu1 %2222 }
0x3d28   :  { %v2220_v52 = vpop.permute.xlu0 %2219 }
0x3d29   :  { %v2225_v57 = vsel %vm134_vm7, %v2220_v52, %v2223_v51 }
0x3d2a   :  { %v2226_v56 = vpack.c.bf16 %v2225_v57, %v2225_v57 }
0x3d2c   :  { %3708 = vmatmul.mubr.msk.bf16.vlgmr.msra.gmra.mrb[52].mxu0 %vm273_vm8, %v2226_v56 }
0x3d2d   :  { %3720 = vmatpush3.bf16.msra.mxu0 %v4753_v63  ;;  %3723 = vmatprep.mubr.msk.bf16.mxu0 %vm4196_vm0, %v4194_v4 }
0x3d2e   :  { %3721 = vmatprep.subr.bf16.mxu0 %v4194_v4 }
0x3d31   :  { %3722 = vmatpush3.bf16.msra.mxu0 %v4759_v0 }
0x3d32   :  { %3735 = vmatprep.subr.bf16.mxu0 %v4194_v4 }
0x3dff   :  { %v2264_v58 = vpop.f32.mrb[52].mxu0 }
0x3e00   :  { %v2265_v59 = vadd.f32 %v4785_v12, %v2264_v58  ;;  %v3709_v60 = vpop.f32.mrb[53].mxu0 }
0x3e01   :  { %v2267_v30 = vpop.f32.mrb[54].mxu0 }
0x3e02   :  { %4008 = vtanh.f32 %v2265_v59  ;;  %v3710_v1 = vpop.f32.mrb[55].mxu0  ;;  %v3365_v62 = vmul.f32 -1.442695, %v2265_v59 }
0x3e04   :  { %4010 = vpow2.f32 %v3365_v62 }
0x3e0c   :  { %v4009_v2 = vpop.eup %4008 }
0x3e0d   :  { %2279 = vrot.lane.b32.xlu0 %v4009_v2, %s4201_s29 }
0x3e0e   :  { %v4011_v3 = vpop.eup %4010 }
0x3e0f   :  { %v2273_v5 = vadd.f32 1.0, %v4011_v3 }
0x3e11   :  { %4012 = vrcp.f32 %v2273_v5 }
0x3e1b   :  { %v4013_v6 = vpop.eup %4012 }
0x3e1c   :  { %v2277_v13 = vmul.f32 %v4013_v6, %v4830_v53 }
0x3e7f   :  { %v2280_v23 = vpop.permute.xlu0 %2279 }
0x3e80   :  { %v2282_v7 = vmul.f32 %v4013_v6, %v2280_v23 }
0x3e82   :  { %2284 = vrot.lane.b32.xlu1 %v2282_v7, %s4200_s5 }
0x3ef4   :  { %v2285_v10 = vpop.permute.xlu1 %2284 }
0x3ef5   :  { %v4870_v14 = vadd.f32 %v2285_v10, %v2277_v13 }
0x3ef7   :  { %4014 = vtanh.f32 %v4870_v14 }
0x3f01   :  { %v4015_v55 = vpop.eup %4014 }
0x3f02   :  { %2290 = vrot.lane.b32.xlu0 %v4015_v55, %s4200_s5 }
0x3f06   :  { %2298 = vrot.lane.b32.xlu0 %v2217_v50, %s4203_s6 }
0x3f74   :  { %v2291_v16 = vpop.permute.xlu0 %2290 }
0x3f75   :  { %v4875_v17 = vmul.f32 %v4013_v6, %v2291_v16 }
0x3f77   :  { %2295 = vrot.lane.b32.xlu1 %v4875_v17, %s4202_s17 }
0x3f78   :  { %v2299_v29 = vpop.permute.xlu0 %2298 }
0x3fe9   :  { %v2296_v18 = vpop.permute.xlu1 %2295 }
0x3fea   :  { %v2301_v19 = vsel %vm134_vm7, %v2296_v18, %v2299_v29 }
0x3feb   :  { %v2302_v53 = vpack.c.bf16 %v2301_v19, %v2301_v19 }
0x3fed   :  { %3716 = vmatmul.mubr.msk.bf16.vlgmr.msra.gmra.mrb[52].mxu1 %vm273_vm8, %v2302_v53 }
0x3fee   :  { %3728 = vmatpush3.bf16.msra.mxu1 %v4713_v31  ;;  %3731 = vmatprep.mubr.msk.bf16.mxu1 %vm4196_vm0, %v4194_v4 }
0x3fef   :  { %3729 = vmatprep.subr.bf16.mxu1 %v4194_v4 }
0x3ff2   :  { %3730 = vmatpush3.bf16.msra.mxu1 %v4720_v32 }
0x3ff3   :  { %3743 = vmatprep.subr.bf16.mxu1 %v4194_v4 }
0x40c0   :  { %v2340_v20 = vpop.f32.mrb[52].mxu1 }
0x40c1   :  { %v2341_v21 = vadd.f32 %v4742_v43, %v2340_v20  ;;  %v3717_v24 = vpop.f32.mrb[53].mxu1 }
0x40c2   :  { %v2343_v25 = vpop.f32.mrb[54].mxu1 }
0x40c3   :  { %4016 = vtanh.f32 %v2341_v21  ;;  %v3718_v26 = vpop.f32.mrb[55].mxu1  ;;  %v3367_v28 = vmul.f32 -1.442695, %v2341_v21 }
0x40c5   :  { %4018 = vpow2.f32 %v3367_v28 }
0x40cd   :  { %v4017_v27 = vpop.eup %4016 }
0x40ce   :  { %2355 = vrot.lane.b32.xlu1 %v4017_v27, %s4201_s29 }
0x40cf   :  { %v4019_v33 = vpop.eup %4018 }
0x40d0   :  { %v2349_v34 = vadd.f32 1.0, %v4019_v33 }
0x40d2   :  { %4020 = vrcp.f32 %v2349_v34 }
0x40dc   :  { %v4021_v36 = vpop.eup %4020 }
0x40dd   :  { %v2353_v39 = vmul.f32 %v4021_v36, %v4851_v47 }
0x4140   :  { %v2356_v37 = vpop.permute.xlu1 %2355 }
0x4141   :  { %v2358_v38 = vmul.f32 %v4021_v36, %v2356_v37 }
0x4143   :  { %2360 = vrot.lane.b32.xlu0 %v2358_v38, %s4200_s5 }
0x41b5   :  { %v2361_v8 = vpop.permute.xlu0 %2360 }
0x41b6   :  { %v4891_v40 = vadd.f32 %v2361_v8, %v2353_v39 }
0x41b8   :  { %4022 = vtanh.f32 %v4891_v40 }
0x41c2   :  { %v4023_v41 = vpop.eup %4022 }
0x41c3   :  { %2366 = vrot.lane.b32.xlu1 %v4023_v41, %s4200_s5 }
0x41c7   :  { %2374 = vrot.lane.b32.xlu1 %v4875_v17, %s4203_s6 }
0x4235   :  { %v2367_v42 = vpop.permute.xlu1 %2366 }
0x4236   :  { %v2369_v44 = vmul.f32 %v4021_v36, %v2367_v42 }
0x4238   :  { %2371 = vrot.lane.b32.xlu0 %v2369_v44, %s4202_s17 }
0x4239   :  { %v2375_v45 = vpop.permute.xlu1 %2374 }
0x42aa   :  { %v2372_v46 = vpop.permute.xlu0 %2371 }
0x42ab   :  { %v2377_v48 = vsel %vm134_vm7, %v2372_v46, %v2375_v45 }
0x42ac   :  { %v2378_v47 = vpack.c.bf16 %v2377_v48, %v2377_v48 }
0x42ae   :  { %3724 = vmatmul.mubr.msk.bf16.vlgmr.msra.gmra.mrb[56].mxu0 %vm273_vm8, %v2378_v47 }
0x42af   :  { %3736 = vmatpush3.bf16.msra.mxu0 %v4753_v63  ;;  %3739 = vmatprep.mubr.msk.bf16.mxu0 %vm4196_vm0, %v4194_v4 }
0x42b0   :  { %3737 = vmatprep.subr.bf16.mxu0 %v4194_v4 }
0x42b3   :  { %3738 = vmatpush3.bf16.msra.mxu0 %v4759_v0 }
0x42b4   :  { %3751 = vmatprep.subr.bf16.mxu0 %v4194_v4 }
0x4381   :  { %v2416_v49 = vpop.f32.mrb[56].mxu0 }
0x4382   :  { %v2417_v50 = vadd.f32 %v4785_v12, %v2416_v49  ;;  %v3725_v51 = vpop.f32.mrb[57].mxu0 }
0x4383   :  { %v2419_v52 = vpop.f32.mrb[58].mxu0 }
0x4384   :  { %4024 = vtanh.f32 %v2417_v50  ;;  %v3726_v57 = vpop.f32.mrb[59].mxu0  ;;  %v3369_v58 = vmul.f32 -1.442695, %v2417_v50 }
0x4386   :  { %4026 = vpow2.f32 %v3369_v58 }
0x438e   :  { %v4025_v56 = vpop.eup %4024 }
0x438f   :  { %2431 = vrot.lane.b32.xlu0 %v4025_v56, %s4201_s29 }
0x4390   :  { %v4027_v59 = vpop.eup %4026 }
0x4391   :  { %v2425_v60 = vadd.f32 1.0, %v4027_v59 }
0x4393   :  { %4028 = vrcp.f32 %v2425_v60 }
0x439d   :  { %v4029_v30 = vpop.eup %4028 }
0x439e   :  { %v2429_v62 = vmul.f32 %v4029_v30, %v4870_v14 }
0x4401   :  { %v2432_v1 = vpop.permute.xlu0 %2431 }
0x4402   :  { %v2434_v2 = vmul.f32 %v4029_v30, %v2432_v1 }
0x4404   :  { %2436 = vrot.lane.b32.xlu1 %v2434_v2, %s4200_s5 }
0x4476   :  { %v2437_v3 = vpop.permute.xlu1 %2436 }
0x4477   :  { %v4910_v5 = vadd.f32 %v2437_v3, %v2429_v62 }
0x4479   :  { %4030 = vtanh.f32 %v4910_v5 }
0x4483   :  { %v4031_v6 = vpop.eup %4030 }
0x4484   :  { %2442 = vrot.lane.b32.xlu0 %v4031_v6, %s4200_s5 }
0x4488   :  { %2450 = vrot.lane.b32.xlu0 %v2369_v44, %s4203_s6 }
0x44f6   :  { %v2443_v23 = vpop.permute.xlu0 %2442 }
0x44f7   :  { %v4915_v7 = vmul.f32 %v4029_v30, %v2443_v23 }
0x44f9   :  { %2447 = vrot.lane.b32.xlu1 %v4915_v7, %s4202_s17 }
0x44fa   :  { %v2451_v13 = vpop.permute.xlu0 %2450 }
0x456b   :  { %v2448_v10 = vpop.permute.xlu1 %2447 }
0x456c   :  { %v2453_v14 = vsel %vm134_vm7, %v2448_v10, %v2451_v13 }
0x456d   :  { %v2454_v55 = vpack.c.bf16 %v2453_v14, %v2453_v14 }
0x456f   :  { %3732 = vmatmul.mubr.msk.bf16.vlgmr.msra.gmra.mrb[56].mxu1 %vm273_vm8, %v2454_v55 }
0x4570   :  { %3744 = vmatpush3.bf16.msra.mxu1 %v4713_v31  ;;  %3747 = vmatprep.mubr.msk.bf16.mxu1 %vm4196_vm0, %v4194_v4 }
0x4571   :  { %3745 = vmatprep.subr.bf16.mxu1 %v4194_v4 }
0x4574   :  { %3746 = vmatpush3.bf16.msra.mxu1 %v4720_v32 }
0x4575   :  { %3759 = vmatprep.subr.bf16.mxu1 %v4194_v4 }
0x4642   :  { %v2492_v16 = vpop.f32.mrb[56].mxu1 }
0x4643   :  { %v2493_v29 = vadd.f32 %v4742_v43, %v2492_v16  ;;  %v3733_v18 = vpop.f32.mrb[57].mxu1 }
0x4644   :  { %v2495_v19 = vpop.f32.mrb[58].mxu1 }
0x4645   :  { %4032 = vtanh.f32 %v2493_v29  ;;  %v3734_v53 = vpop.f32.mrb[59].mxu1  ;;  %v3371_v21 = vmul.f32 -1.442695, %v2493_v29 }
0x4647   :  { %4034 = vpow2.f32 %v3371_v21 }
0x464f   :  { %v4033_v20 = vpop.eup %4032 }
0x4650   :  { %2507 = vrot.lane.b32.xlu1 %v4033_v20, %s4201_s29 }
0x4651   :  { %v4035_v24 = vpop.eup %4034 }
0x4652   :  { %v2501_v25 = vadd.f32 1.0, %v4035_v24 }
0x4654   :  { %4036 = vrcp.f32 %v2501_v25 }
0x465e   :  { %v4037_v26 = vpop.eup %4036 }
0x465f   :  { %v2505_v33 = vmul.f32 %v4037_v26, %v4891_v40 }
0x46c2   :  { %v2508_v27 = vpop.permute.xlu1 %2507 }
0x46c3   :  { %v2510_v28 = vmul.f32 %v4037_v26, %v2508_v27 }
0x46c5   :  { %2512 = vrot.lane.b32.xlu0 %v2510_v28, %s4200_s5 }
0x4737   :  { %v2513_v34 = vpop.permute.xlu0 %2512 }
0x4738   :  { %v4931_v36 = vadd.f32 %v2513_v34, %v2505_v33 }
0x473a   :  { %4038 = vtanh.f32 %v4931_v36 }
0x4744   :  { %v4039_v37 = vpop.eup %4038 }
0x4745   :  { %2518 = vrot.lane.b32.xlu1 %v4039_v37, %s4200_s5 }
0x4749   :  { %2526 = vrot.lane.b32.xlu1 %v4915_v7, %s4203_s6 }
0x47b7   :  { %v2519_v38 = vpop.permute.xlu1 %2518 }
0x47b8   :  { %v2521_v39 = vmul.f32 %v4037_v26, %v2519_v38 }
0x47ba   :  { %2523 = vrot.lane.b32.xlu0 %v2521_v39, %s4202_s17 }
0x47bb   :  { %v2527_v8 = vpop.permute.xlu1 %2526 }
0x482c   :  { %v2524_v41 = vpop.permute.xlu0 %2523 }
0x482d   :  { %v2529_v42 = vsel %vm134_vm7, %v2524_v41, %v2527_v8 }
0x482e   :  { %v2530_v40 = vpack.c.bf16 %v2529_v42, %v2529_v42 }
0x4830   :  { %3740 = vmatmul.mubr.msk.bf16.vlgmr.msra.gmra.mrb[60].mxu0 %vm273_vm8, %v2530_v40 }
0x4831   :  { %3752 = vmatpush3.bf16.msra.mxu0 %v4753_v63  ;;  %3755 = vmatprep.mubr.msk.bf16.mxu0 %vm4196_vm0, %v4194_v4 }
0x4832   :  { %3753 = vmatprep.subr.bf16.mxu0 %v4194_v4 }
0x4835   :  { %3754 = vmatpush3.bf16.msra.mxu0 %v4759_v0 }
0x4836   :  { %3767 = vmatprep.subr.bf16.mxu0 %v4194_v4 }
0x4903   :  { %v2568_v44 = vpop.f32.mrb[60].mxu0 }
0x4904   :  { %v2569_v45 = vadd.f32 %v4785_v12, %v2568_v44  ;;  %v3741_v46 = vpop.f32.mrb[61].mxu0 }
0x4905   :  { %v2571_v48 = vpop.f32.mrb[62].mxu0 }
0x4906   :  { %4040 = vtanh.f32 %v2569_v45  ;;  %v3742_v47 = vpop.f32.mrb[63].mxu0  ;;  %v3373_v50 = vmul.f32 -1.442695, %v2569_v45 }
0x4908   :  { %4042 = vpow2.f32 %v3373_v50 }
0x4910   :  { %v4041_v49 = vpop.eup %4040 }
0x4911   :  { %2583 = vrot.lane.b32.xlu0 %v4041_v49, %s4201_s29 }
0x4912   :  { %v4043_v51 = vpop.eup %4042 }
0x4913   :  { %v2577_v52 = vadd.f32 1.0, %v4043_v51 }
0x4915   :  { %4044 = vrcp.f32 %v2577_v52 }
0x491f   :  { %v4045_v57 = vpop.eup %4044 }
0x4920   :  { %v2581_v59 = vmul.f32 %v4045_v57, %v4910_v5 }
0x4983   :  { %v2584_v56 = vpop.permute.xlu0 %2583 }
0x4984   :  { %v2586_v58 = vmul.f32 %v4045_v57, %v2584_v56 }
0x4986   :  { %2588 = vrot.lane.b32.xlu1 %v2586_v58, %s4200_s5 }
0x49f8   :  { %v2589_v60 = vpop.permute.xlu1 %2588 }
0x49f9   :  { %v4950_v30 = vadd.f32 %v2589_v60, %v2581_v59 }
0x49fb   :  { %4046 = vtanh.f32 %v4950_v30 }
0x4a05   :  { %v4047_v1 = vpop.eup %4046 }
0x4a06   :  { %2594 = vrot.lane.b32.xlu0 %v4047_v1, %s4200_s5 }
0x4a0a   :  { %2602 = vrot.lane.b32.xlu0 %v2521_v39, %s4203_s6 }
0x4a78   :  { %v2595_v2 = vpop.permute.xlu0 %2594 }
0x4a79   :  { %v4955_v62 = vmul.f32 %v4045_v57, %v2595_v2 }
0x4a7b   :  { %2599 = vrot.lane.b32.xlu1 %v4955_v62, %s4202_s17 }
0x4a7c   :  { %v2603_v3 = vpop.permute.xlu0 %2602 }
0x4aed   :  { %v2600_v6 = vpop.permute.xlu1 %2599 }
0x4aee   :  { %v2605_v5 = vsel %vm134_vm7, %v2600_v6, %v2603_v3 }
0x4aef   :  { %v2606_v23 = vpack.c.bf16 %v2605_v5, %v2605_v5 }
0x4af1   :  { %3748 = vmatmul.mubr.msk.bf16.vlgmr.msra.gmra.mrb[60].mxu1 %vm273_vm8, %v2606_v23 }
0x4af2   :  { %3760 = vmatpush3.bf16.msra.mxu1 %v4713_v31  ;;  %3763 = vmatprep.mubr.msk.bf16.mxu1 %vm4196_vm0, %v4194_v4 }
0x4af3   :  { %3761 = vmatprep.subr.bf16.mxu1 %v4194_v4 }
0x4af6   :  { %3762 = vmatpush3.bf16.msra.mxu1 %v4720_v32 }
0x4af7   :  { %3775 = vmatprep.subr.bf16.mxu1 %v4194_v4 }
0x4bc4   :  { %v2644_v13 = vpop.f32.mrb[60].mxu1 }
0x4bc5   :  { %v2645_v10 = vadd.f32 %v4742_v43, %v2644_v13  ;;  %v3749_v14 = vpop.f32.mrb[61].mxu1 }
0x4bc6   :  { %v2647_v55 = vpop.f32.mrb[62].mxu1 }
0x4bc7   :  { %4048 = vtanh.f32 %v2645_v10  ;;  %v3750_v16 = vpop.f32.mrb[63].mxu1  ;;  %v3375_v18 = vmul.f32 -1.442695, %v2645_v10 }
0x4bc9   :  { %4050 = vpow2.f32 %v3375_v18 }
0x4bd1   :  { %v4049_v29 = vpop.eup %4048 }
0x4bd2   :  { %2659 = vrot.lane.b32.xlu1 %v4049_v29, %s4201_s29 }
0x4bd3   :  { %v4051_v19 = vpop.eup %4050 }
0x4bd4   :  { %v2653_v53 = vadd.f32 1.0, %v4051_v19 }
0x4bd6   :  { %4052 = vrcp.f32 %v2653_v53 }
0x4be0   :  { %v4053_v20 = vpop.eup %4052 }
0x4be1   :  { %v2657_v25 = vmul.f32 %v4053_v20, %v4931_v36 }
0x4c44   :  { %v2660_v21 = vpop.permute.xlu1 %2659 }
0x4c45   :  { %v2662_v24 = vmul.f32 %v4053_v20, %v2660_v21 }
0x4c47   :  { %2664 = vrot.lane.b32.xlu0 %v2662_v24, %s4200_s5 }
0x4cb9   :  { %v2665_v26 = vpop.permute.xlu0 %2664 }
0x4cba   :  { %v4971_v27 = vadd.f32 %v2665_v26, %v2657_v25 }
0x4cbc   :  { %4054 = vtanh.f32 %v4971_v27 }
0x4cc6   :  { %v4055_v28 = vpop.eup %4054 }
0x4cc7   :  { %2670 = vrot.lane.b32.xlu1 %v4055_v28, %s4200_s5 }
0x4ccb   :  { %2678 = vrot.lane.b32.xlu1 %v4955_v62, %s4203_s6 }
0x4d39   :  { %v2671_v33 = vpop.permute.xlu1 %2670 }
0x4d3a   :  { %v2673_v34 = vmul.f32 %v4053_v20, %v2671_v33 }
0x4d3c   :  { %2675 = vrot.lane.b32.xlu0 %v2673_v34, %s4202_s17 }
0x4d3d   :  { %v2679_v37 = vpop.permute.xlu1 %2678 }
0x4dae   :  { %v2676_v38 = vpop.permute.xlu0 %2675 }
0x4daf   :  { %v2681_v39 = vsel %vm134_vm7, %v2676_v38, %v2679_v37 }
0x4db0   :  { %v2682_v36 = vpack.c.bf16 %v2681_v39, %v2681_v39 }
0x4db2   :  { %3756 = vmatmul.mubr.msk.bf16.vlgmr.msra.gmra.mrb[64].mxu0 %vm273_vm8, %v2682_v36 }
0x4db3   :  { %3768 = vmatpush3.bf16.msra.mxu0 %v4753_v63  ;;  %3771 = vmatprep.mubr.msk.bf16.mxu0 %vm4196_vm0, %v4194_v4 }
0x4db4   :  { %3769 = vmatprep.subr.bf16.mxu0 %v4194_v4 }
0x4db7   :  { %3770 = vmatpush3.bf16.msra.mxu0 %v4759_v0 }
0x4db8   :  { %3783 = vmatprep.subr.bf16.mxu0 %v4194_v4 }
0x4e85   :  { %v2720_v8 = vpop.f32.mrb[64].mxu0 }
0x4e86   :  { %v2721_v41 = vadd.f32 %v4785_v12, %v2720_v8  ;;  %v3757_v42 = vpop.f32.mrb[65].mxu0 }
0x4e87   :  { %v2723_v40 = vpop.f32.mrb[66].mxu0 }
0x4e88   :  { %4056 = vtanh.f32 %v2721_v41  ;;  %v3758_v44 = vpop.f32.mrb[67].mxu0  ;;  %v3377_v46 = vmul.f32 -1.442695, %v2721_v41 }
0x4e8a   :  { %4058 = vpow2.f32 %v3377_v46 }
0x4e92   :  { %v4057_v45 = vpop.eup %4056 }
0x4e93   :  { %2735 = vrot.lane.b32.xlu0 %v4057_v45, %s4201_s29 }
0x4e94   :  { %v4059_v48 = vpop.eup %4058 }
0x4e95   :  { %v2729_v47 = vadd.f32 1.0, %v4059_v48 }
0x4e97   :  { %4060 = vrcp.f32 %v2729_v47 }
0x4ea1   :  { %v4061_v49 = vpop.eup %4060 }
0x4ea2   :  { %v2733_v52 = vmul.f32 %v4061_v49, %v4950_v30 }
0x4f05   :  { %v2736_v50 = vpop.permute.xlu0 %2735 }
0x4f06   :  { %v2738_v51 = vmul.f32 %v4061_v49, %v2736_v50 }
0x4f08   :  { %2740 = vrot.lane.b32.xlu1 %v2738_v51, %s4200_s5 }
0x4f7a   :  { %v2741_v57 = vpop.permute.xlu1 %2740 }
0x4f7b   :  { %v4990_v56 = vadd.f32 %v2741_v57, %v2733_v52 }
0x4f7d   :  { %4062 = vtanh.f32 %v4990_v56 }
0x4f87   :  { %v4063_v58 = vpop.eup %4062 }
0x4f88   :  { %2746 = vrot.lane.b32.xlu0 %v4063_v58, %s4200_s5 }
0x4f8c   :  { %2754 = vrot.lane.b32.xlu0 %v2673_v34, %s4203_s6 }
0x4ffa   :  { %v2747_v59 = vpop.permute.xlu0 %2746 }
0x4ffb   :  { %v4995_v60 = vmul.f32 %v4061_v49, %v2747_v59 }
0x4ffd   :  { %2751 = vrot.lane.b32.xlu1 %v4995_v60, %s4202_s17 }
0x4ffe   :  { %v2755_v1 = vpop.permute.xlu0 %2754 }
0x506f   :  { %v2752_v2 = vpop.permute.xlu1 %2751 }
0x5070   :  { %v2757_v30 = vsel %vm134_vm7, %v2752_v2, %v2755_v1 }
0x5071   :  { %v2758_v3 = vpack.c.bf16 %v2757_v30, %v2757_v30 }
0x5073   :  { %3764 = vmatmul.mubr.msk.bf16.vlgmr.msra.gmra.mrb[64].mxu1 %vm273_vm8, %v2758_v3 }
0x5074   :  { %3776 = vmatpush3.bf16.msra.mxu1 %v4713_v31  ;;  %3779 = vmatprep.mubr.msk.bf16.mxu1 %vm4196_vm0, %v4194_v4 }
0x5075   :  { %3777 = vmatprep.subr.bf16.mxu1 %v4194_v4 }
0x5078   :  { %3778 = vmatpush3.bf16.msra.mxu1 %v4720_v32 }
0x5079   :  { %3791 = vmatprep.subr.bf16.mxu1 %v4194_v4 }
0x5146   :  { %v2796_v6 = vpop.f32.mrb[64].mxu1 }
0x5147   :  { %v2797_v5 = vadd.f32 %v4742_v43, %v2796_v6  ;;  %v3765_v23 = vpop.f32.mrb[65].mxu1 }
0x5148   :  { %v2799_v13 = vpop.f32.mrb[66].mxu1 }
0x5149   :  { %4064 = vtanh.f32 %v2797_v5  ;;  %v3766_v10 = vpop.f32.mrb[67].mxu1  ;;  %v3379_v31 = vmul.f32 -1.442695, %v2797_v5 }
0x514b   :  { %4066 = vpow2.f32 %v3379_v31 }
0x5153   :  { %v4065_v14 = vpop.eup %4064 }
0x5154   :  { %2811 = vrot.lane.b32.xlu1 %v4065_v14, %s4201_s29 }
0x5155   :  { %v4067_v55 = vpop.eup %4066 }
0x5156   :  { %v2805_v16 = vadd.f32 1.0, %v4067_v55 }
0x5158   :  { %4068 = vrcp.f32 %v2805_v16 }
0x5162   :  { %v4069_v29 = vpop.eup %4068 }
0x5163   :  { %v2809_v19 = vmul.f32 %v4069_v29, %v4971_v27 }
0x51c6   :  { %v2812_v18 = vpop.permute.xlu1 %2811 }
0x51c7   :  { %v2814_v32 = vmul.f32 %v4069_v29, %v2812_v18 }
0x51c9   :  { %2816 = vrot.lane.b32.xlu0 %v2814_v32, %s4200_s5 }
0x523b   :  { %v2817_v43 = vpop.permute.xlu0 %2816 }
0x523c   :  { %v5011_v53 = vadd.f32 %v2817_v43, %v2809_v19 }
0x523e   :  { %4070 = vtanh.f32 %v5011_v53 }
0x5248   :  { %v4071_v20 = vpop.eup %4070 }
0x5249   :  { %2822 = vrot.lane.b32.xlu1 %v4071_v20, %s4200_s5  ;;  %v4097_v20 = vld [vmem:[%s5234_s18 + $0x1] ss:$0 sm:$0xff] }
0x524d   :  { %2830 = vrot.lane.b32.xlu1 %v4995_v60, %s4203_s6 }
0x52bb   :  { %v2823_v21 = vpop.permute.xlu1 %2822 }
0x52bc   :  { %v2825_v24 = vmul.f32 %v4069_v29, %v2823_v21 }
0x52be   :  { %2827 = vrot.lane.b32.xlu0 %v2825_v24, %s4202_s17 }
0x52bf   :  { %v2831_v25 = vpop.permute.xlu1 %2830 }
0x5330   :  { %v2828_v26 = vpop.permute.xlu0 %2827 }
0x5331   :  { %v2833_v28 = vsel %vm134_vm7, %v2828_v26, %v2831_v25 }
0x5332   :  { %v2834_v27 = vpack.c.bf16 %v2833_v28, %v2833_v28 }
0x5334   :  { %3772 = vmatmul.mubr.msk.bf16.vlgmr.msra.gmra.mrb[68].mxu0 %vm273_vm8, %v2834_v27 }
0x5335   :  { %3784 = vmatpush3.bf16.msra.mxu0 %v4753_v63  ;;  %3787 = vmatprep.mubr.msk.bf16.mxu0 %vm4196_vm0, %v4194_v4 }
0x5336   :  { %3785 = vmatprep.subr.bf16.mxu0 %v4194_v4 }
0x5339   :  { %3786 = vmatpush3.bf16.msra.mxu0 %v4759_v0 }
0x5407   :  { %v2872_v33 = vpop.f32.mrb[68].mxu0 }
0x5408   :  { %v2873_v34 = vadd.f32 %v4785_v12, %v2872_v33  ;;  %v3773_v37 = vpop.f32.mrb[69].mxu0 }
0x5409   :  { %v2875_v38 = vpop.f32.mrb[70].mxu0 }
0x540a   :  { %4072 = vtanh.f32 %v2873_v34  ;;  %v3774_v39 = vpop.f32.mrb[71].mxu0  ;;  %v3381_v8 = vmul.f32 -1.442695, %v2873_v34 }
0x540c   :  { %4074 = vpow2.f32 %v3381_v8 }
0x5414   :  { %v4073_v36 = vpop.eup %4072 }
0x5415   :  { %2887 = vrot.lane.b32.xlu0 %v4073_v36, %s4201_s29 }
0x5416   :  { %v4075_v63 = vpop.eup %4074 }
0x5417   :  { %v2881_v41 = vadd.f32 1.0, %v4075_v63 }
0x5419   :  { %4076 = vrcp.f32 %v2881_v41  ;;  %v3101_v41 = vld [vmem:[%s5235_s19] sm:$0xf] }
0x5423   :  { %v4077_v42 = vpop.eup %4076 }
0x5424   :  { %v2885_v0 = vmul.f32 %v4077_v42, %v4990_v56  ;;  %v4096_v56 = vld [vmem:[%s5234_s18] ss:$0 sm:$0xff] }
0x5487   :  { %v2888_v40 = vpop.permute.xlu0 %2887 }
0x5488   :  { %v2890_v44 = vmul.f32 %v4077_v42, %v2888_v40 }
0x548a   :  { %2892 = vrot.lane.b32.xlu1 %v2890_v44, %s4200_s5  ;;  %v3073_v44 = vrot.slane %v4835_v22, 6 }
0x54fc   :  { %v2893_v12 = vpop.permute.xlu1 %2892 }
0x54fd   :  { %v5029_v45 = vadd.f32 %v2893_v12, %v2885_v0  ;;  %v3079_v0 = vrot.slane %v4995_v60, 6  ;;  %v3075_v12 = vrot.slane %v4875_v17, 4 }
0x54ff   :  { %4078 = vtanh.f32 %v5029_v45 }
0x5509   :  { %v4079_v46 = vpop.eup %4078 }
0x550a   :  { %2898 = vrot.lane.b32.xlu0 %v4079_v46, %s4200_s5 }
0x550e   :  { %2906 = vrot.lane.b32.xlu0 %v2825_v24, %s4203_s6 }
0x557c   :  { %v2899_v48 = vpop.permute.xlu0 %2898 }
0x557d   :  { %v5034_v47 = vmul.f32 %v4077_v42, %v2899_v48  ;;  %v3117_v42 = vsel %vm896_vm11, %v3101_v41, 0  ;;  %v3077_v48 = vrot.slane %v4915_v7, 2 }
0x557f   :  { %2903 = vrot.lane.b32.xlu1 %v5034_v47, %s4202_s17 }
0x5580   :  { %v2907_v49 = vpop.permute.xlu0 %2906 }
0x55f1   :  { %v2904_v50 = vpop.permute.xlu1 %2903 }
0x55f2   :  { %v2909_v51 = vsel %vm134_vm7, %v2904_v50, %v2907_v49  ;;  %v3085_v50 = vsel %vm894_vm10, %v4795_v35, %v3073_v44 }
0x55f3   :  { %v2910_v52 = vpack.c.bf16 %v2909_v51, %v2909_v51  ;;  %v3088_v51 = vsel %vm894_vm10, %v4955_v62, %v3079_v0  ;;  %v3386_v62 = vld [vmem:[%s5236_s20] ss:$0 sm:$0xff]  ;;  %s4204_s20 = smov 88  }
0x55f5   :  { %3780 = vmatmul.mubr.msk.bf16.vlgmr.msra.gmra.mrb[68].mxu1 %vm273_vm8, %v2910_v52 }
0x55f6   :  { %3793 = vmatprep.mubr.msk.bf16.mxu1 %vm4196_vm0, %v4194_v4  ;;  %3792 = vmatpush3.bf16.msra.mxu1 %v3117_v42 }
0x56c8   :  { %v2948_v57 = vpop.f32.mrb[68].mxu1 }
0x56c9   :  { %v2949_v58 = vadd.f32 %v4096_v56, %v2948_v57  ;;  %v3781_v59 = vpop.f32.mrb[69].mxu1  ;;  %v3086_v57 = vsel %vm896_vm11, %v3085_v50, %v3075_v12 }
0x56ca   :  { %v2951_v1 = vpop.f32.mrb[70].mxu1  ;;  %v5087_v17 = vsel %vm898_vm12, %v3086_v57, %v3077_v48 }
0x56cb   :  { %4080 = vtanh.f32 %v2949_v58  ;;  %v3782_v2 = vpop.f32.mrb[71].mxu1  ;;  %v3383_v3 = vmul.f32 -1.442695, %v2949_v58 }
0x56cd   :  { %4082 = vpow2.f32 %v3383_v3 }
0x56d5   :  { %v4081_v30 = vpop.eup %4080 }
0x56d6   :  { %2963 = vrot.lane.b32.xlu1 %v4081_v30, %s4201_s29 }
0x56d7   :  { %v4083_v6 = vpop.eup %4082 }
0x56d8   :  { %v2957_v5 = vadd.f32 1.0, %v4083_v6 }
0x56da   :  { %4084 = vrcp.f32 %v2957_v5 }
0x56e4   :  { %v4085_v23 = vpop.eup %4084 }
0x56e5   :  { %v2961_v10 = vmul.f32 %v4085_v23, %v5011_v53 }
0x5748   :  { %v2964_v4 = vpop.permute.xlu1 %2963 }
0x5749   :  { %v2966_v13 = vmul.f32 %v4085_v23, %v2964_v4 }
0x574b   :  { %2968 = vrot.lane.b32.xlu0 %v2966_v13, %s4200_s5 }
0x57bd   :  { %v2969_v14 = vpop.permute.xlu0 %2968 }
0x57be   :  { %v5048_v31 = vadd.f32 %v2969_v14, %v2961_v10 }
0x57c0   :  { %4086 = vtanh.f32 %v5048_v31 }
0x57ca   :  { %v4087_v55 = vpop.eup %4086 }
0x57cb   :  { %2974 = vrot.lane.b32.xlu1 %v4087_v55, %s4200_s5 }
0x57cf   :  { %2982 = vrot.lane.b32.xlu1 %v5034_v47, %s4203_s6 }
0x583d   :  { %v2975_v16 = vpop.permute.xlu1 %2974 }
0x583e   :  { %v2977_v29 = vmul.f32 %v4085_v23, %v2975_v16 }
0x5840   :  { %2979 = vrot.lane.b32.xlu0 %v2977_v29, %s4202_s17 }
0x5841   :  { %v2983_v18 = vpop.permute.xlu1 %2982 }
0x58b2   :  { %v2980_v32 = vpop.permute.xlu0 %2979 }
0x58b3   :  { %v2985_v19 = vsel %vm134_vm7, %v2980_v32, %v2983_v18  ;;  %3055 = vst.msk [vmem:[#allocation6] sm:$0x3] %vm3054_vm14, %v2980_v32 }
0x58b4   :  { %v2986_v43 = vpack.c.bf16 %v2985_v19, %v2985_v19 }
0x58b6   :  { %3788 = vmatmul.mubr.msk.bf16.vlgmr.msra.gmra.mrb[72].mxu0 %vm273_vm8, %v2986_v43 }
0x5989   :  { %v3024_v53 = vpop.f32.mrb[72].mxu0 }
0x598a   :  { %v3025_v21 = vadd.f32 %v4097_v20, %v3024_v53  ;;  %v3789_v24 = vpop.f32.mrb[73].mxu0 }
0x598b   :  { %v3027_v25 = vpop.f32.mrb[74].mxu0 }
0x598c   :  { %4088 = vtanh.f32 %v3025_v21  ;;  %v3790_v26 = vpop.f32.mrb[75].mxu0  ;;  %v3385_v27 = vmul.f32 -1.442695, %v3025_v21 }
0x598e   :  { %4090 = vpow2.f32 %v3385_v27 }
0x5996   :  { %v4089_v28 = vpop.eup %4088 }
0x5997   :  { %3039 = vrot.lane.b32.xlu0 %v4089_v28, %s4201_s29 }
0x5998   :  { %v4091_v33 = vpop.eup %4090 }
0x5999   :  { %v3033_v34 = vadd.f32 1.0, %v4091_v33 }
0x599b   :  { %4092 = vrcp.f32 %v3033_v34 }
0x59a5   :  { %v4093_v37 = vpop.eup %4092 }
0x59a6   :  { %v3037_v36 = vmul.f32 %v4093_v37, %v5029_v45  ;;  %v3081_v45 = vrot.slane %v5034_v47, 4 }
0x59a8   :  { %v3089_v22 = vsel %vm896_vm11, %v3088_v51, %v3081_v45 }
0x5a09   :  { %v3040_v38 = vpop.permute.xlu0 %3039 }
0x5a0a   :  { %v3042_v39 = vmul.f32 %v4093_v37, %v3040_v38 }
0x5a0c   :  { %3044 = vrot.lane.b32.xlu1 %v3042_v39, %s4200_s5 }
0x5a7e   :  { %v3045_v8 = vpop.permute.xlu1 %3044 }
0x5a7f   :  { %v5064_v63 = vadd.f32 %v3045_v8, %v3037_v36 }
0x5a81   :  { %4094 = vtanh.f32 %v5064_v63 }
0x5a8b   :  { %v4095_v40 = vpop.eup %4094 }
0x5a8c   :  { %3050 = vrot.lane.b32.xlu0 %v4095_v40, %s4200_s5 }
0x5afe   :  { %v3051_v46 = vpop.permute.xlu0 %3050 }
0x5aff   :  { %v3053_v49 = vmul.f32 %v4093_v37, %v3051_v46 }
0x5b01   :  { %v3083_v52 = vrot.slane %v3053_v49, 2 }
0x5b03   :  { %v5084_v60 = vsel %vm898_vm12, %v3089_v22, %v3083_v52 }
0x5b04   :  { %v3102_v7 = vpack.c.bf16 %v5084_v60, %v5087_v17 }
0x5b06   :  { %3111 = vrot.lane.b32.xlu1 %v3102_v7, %s4202_s17 }
0x5b78   :  { %v3112_v35 = vpop.permute.xlu1 %3111 }
0x5b79   :  { %3794 = vmatmul.mubr.msk.bf16.vlgmr.msra.gmra.mrb[72].mxu1 %vm191_vm9, %v3112_v35 }
0x5c4c   :  { %v3153_v47 = vpop.f32.mrb[72].mxu1 }
0x5c4d   :  { %v3154_v56 = vadd.f32 %v3386_v62, %v3153_v47  ;;  %v3795_v58 = vpop.f32.mrb[73].mxu1 }
0x5c4e   :  { %v3156_v59 = vpop.f32.mrb[74].mxu1 }
0x5c4f   :  { %3160 = vst.msk [vmem:[%s5237_s21] sm:$0xff] %vm134_vm7, %v3154_v56  ;;  %v3157_v1 = vadd.f32 %v3386_v62, %v3156_v59  ;;  %v3796_v2 = vpop.f32.mrb[75].mxu1  ;;  %v3162_v30 = vsel %vm134_vm7, %v3154_v56, -inf }
0x5c50   :  { %3163 = vmax.xlane.f32.xlu0 %v3162_v30 }
0x5c51   :  { %3161 = vst.msk [vmem:[%s5237_s21 + $0x8] sm:$0xff] %vm134_vm7, %v3157_v1  ;;  %v3165_v3 = vsel %vm134_vm7, %v3157_v1, -inf  ;;  %s4205_s21 = smov [#allocation4]  }
0x5c52   :  { %3166 = vmax.xlane.f32.xlu1 %v3165_v3 }
0x5c63   :  { %1622 = vrot.lane.b32.xlu1 %v4533_v54, %s4202_s17 }
0x5c67   :  { %1616 = vrot.lane.b32.xlu1 %v4569_v61, %s4199_s8 }
0x5c6b   :  { %1627 = vrot.lane.b32.xlu1 %v4688_v15, %s4199_s8  ;;  %s3228_s8 = sshll.u32 %s4205_s21, 4  ;;  %s3229_s8 = int_to_ptr.vmem [resolvable:$true] %s3228_s8 }
0x5c6c   :  { %s4098_s0 = scalar_lea.vmem %s3229_s8, 64  ;;  %p4103_p1 = scmp.lt.s32.totalorder %s3229_s8, %s3229_s8 }
0x5c6d   :  { %p4099_p0 = scmp.ne.s32.totalorder %s3229_s8, %s4098_s0  ;;  %p4104_p2 = scmp.lt.s32.totalorder %s4098_s0, %s4098_s0 }
0x5c6f   :  { %3062 = vrot.lane.b32.xlu1 %v3053_v49, %s4202_s17  ;;  %p4105_p3 = por %p4104_p2, %p4103_p1 }
0x5c71   :  { %p4106_p4 = pnand %p4105_p3, %p4099_p0 }
0x5cdd   :  { %v3164_v6 = vpop.xlane.xlu0 %3163 }
0x5cde   :  { %vm3168_vm15 = vcmp.eq.f32.partialorder %v3154_v56, %v3164_v6 }
0x5cdf   :  { %v3170_v5 = vsel %vm3168_vm15, %v4372_v11, 16  ;;  %v3167_v23 = vpop.xlane.xlu1 %3166 }
0x5ce0   :  { %v3172_v4 = vsel %vm134_vm7, %v3170_v5, 2147483647  ;;  %vm3169_vm0 = vcmp.eq.f32.partialorder %v3157_v1, %v3167_v23 }
0x5ce1   :  { %v3174_v13 = vshra.s32 %v3172_v4, 16  ;;  %v3171_v10 = vsel %vm3169_vm0, %v4372_v11, 16  ;;  %v3173_v11 = vand.u32 65535, %v3172_v4 }
0x5ce2   :  { %v3187_v54 = vsel %vm134_vm7, %v3171_v10, 2147483647 }
0x5ce3   :  { %v3189_v61 = vshra.s32 %v3187_v54, 16  ;;  %v1623_v14 = vpop.permute.xlu1 %1622  ;;  %v3176_v55 = vcvt.s32.f32 %v3174_v13  ;;  %v3188_v32 = vand.u32 65535, %v3187_v54  ;;  %v3175_v43 = vcvt.s32.f32 %v3173_v11 }
0x5ce4   :  { %1625 = vst.msk [vmem:[#allocation4 - $0x6] sm:$0xc0] %vm1619_vm1, %v1623_v14 }
0x5ce5   :  { %3177 = vmin.xlane.f32.xlu0 %v3176_v55  ;;  %v3191_v16 = vcvt.s32.f32 %v3189_v61  ;;  %v3190_v21 = vcvt.s32.f32 %v3188_v32 }
0x5ce7   :  { %v1617_v15 = vpop.permute.xlu1 %1616 }
0x5ce8   :  { %1620 = vst.msk [vmem:[#allocation2 - $0x6] sm:$0xc0] %vm1619_vm1, %v1617_v15 }
0x5ce9   :  { %3192 = vmin.xlane.f32.xlu0 %v3191_v16 }
0x5ceb   :  { %v1628_v29 = vpop.permute.xlu1 %1627 }
0x5cec   :  { %1631 = vst.msk [vmem:[#allocation2 - $0x4] sm:$0xc0] %vm1619_vm1, %v1628_v29 }
0x5cef   :  { %v3063_v18 = vpop.permute.xlu1 %3062 }
0x5cf0   :  { %3066 = vst.msk [vmem:[#allocation6 + $0x2] sm:$0x3] %vm3054_vm14, %v3063_v18 }
0x5cff   :  { %1633 = vrot.lane.b32.xlu0 %v4672_v9, %s4202_s17 }
0x5d03   :  { %3057 = vrot.lane.b32.xlu0 %v5048_v31, %s4203_s6 }
0x5d07   :  { %3068 = vrot.lane.b32.xlu0 %v5064_v63, %s4203_s6 }
0x5d72   :  { %v5127_v19 = vpop.xlane.xlu0 %3177 }
0x5d73   :  { %vm3179_vm2 = vcmp.eq.f32.partialorder %v3176_v55, %v5127_v19 }
0x5d74   :  { %v3180_v53 = vsel %vm3179_vm2, %v3175_v43, inf }
0x5d75   :  { %3181 = vmin.xlane.f32.xlu1 %v3180_v53 }
0x5d76   :  { %v5130_v20 = vpop.xlane.xlu0 %3192 }
0x5d77   :  { %vm3194_vm3 = vcmp.eq.f32.partialorder %v3191_v16, %v5130_v20 }
0x5d78   :  { %v3195_v9 = vsel %vm3194_vm3, %v3190_v21, inf }
0x5d79   :  { %3196 = vmin.xlane.f32.xlu0 %v3195_v9 }
0x5d7a   :  { %v1634_v31 = vpop.permute.xlu0 %1633 }
0x5d7b   :  { %1637 = vst.msk [vmem:[#allocation4 - $0x4] sm:$0xc0] %vm1619_vm1, %v1634_v31 }
0x5d7e   :  { %v3058_v24 = vpop.permute.xlu0 %3057 }
0x5d7f   :  { %3060 = vst.msk [vmem:[#allocation7] sm:$0x3] %vm3054_vm14, %v3058_v24 }
0x5d82   :  { %v3069_v25 = vpop.permute.xlu0 %3068 }
0x5d83   :  { %3072 = vst.msk [vmem:[#allocation7 + $0x2] sm:$0x3] %vm3054_vm14, %v3069_v25 }
0x5d86   :  { %3093 = vrot.lane.b32.xlu1 %v5087_v17, %s4204_s20 }
0x5d87   :  { %4109 = shalt.err (!%p4106_p4)
}
0x5d88   :  { %s4110_s12 = scalar_lea.hbm %s5241_s25, 64 }
0x5d89   :  { %p4111_p5 = scmp.ne.s32.totalorder %s5241_s25, %s4110_s12  ;;  %p4114_p6 = scmp.lt.u32.totalorder %s4110_s12, %s5241_s25 }
0x5d8b   :  { %p4116_p7 = pnand %p4114_p6, %p4111_p5 }
0x5d8d   :  { %4119 = shalt.err (!%p4116_p7)
}
0x5d8e   :  { %s4206_s6 = smov 2   ;;  %s4207_s4 = smov [#allocation2]  }
0x5d8f   :  { %3234 = dma.vmem_to_hbm [thread:$0]  %s3229_s8, 64, %s5241_s25, [#allocation5], %s4198_s2, %s4198_s2, %s4206_s6  }
0x5d90   :  { %s3216_s14 = sshll.u32 %s4207_s4, 4  ;;  %s4208_s18 = smov [#allocation6]   ;;  %s3217_s14 = int_to_ptr.vmem [resolvable:$true] %s3216_s14 }
0x5d91   :  { %s3240_s30 = sshll.u32 %s4208_s18, 4  ;;  %s4120_s19 = scalar_lea.vmem %s3217_s14, 64  ;;  %s3241_s30 = int_to_ptr.vmem [resolvable:$true] %s3240_s30 }
0x5d92   :  { %p4121_p8 = scmp.ne.s32.totalorder %s3217_s14, %s4120_s19  ;;  %p4125_p9 = scmp.lt.s32.totalorder %s3217_s14, %s3217_s14 }
0x5d93   :  { %p4126_p10 = scmp.lt.s32.totalorder %s4120_s19, %s4120_s19 }
0x5d95   :  { %p4127_p11 = por %p4126_p10, %p4125_p9 }
0x5d97   :  { %p4128_p12 = pnand %p4127_p11, %p4121_p8 }
0x5d99   :  { %4131 = shalt.err (!%p4128_p12)
}
0x5d9a   :  { %s4132_s9 = scalar_lea.hbm %s5240_s24, 64 }
0x5d9b   :  { %p4133_p13 = scmp.ne.s32.totalorder %s5240_s24, %s4132_s9  ;;  %p4136_p0 = scmp.lt.u32.totalorder %s4132_s9, %s5240_s24 }
0x5d9d   :  { %p4138_p1 = pnand %p4136_p0, %p4133_p13 }
0x5d9f   :  { %4141 = shalt.err (!%p4138_p1)
}
0x5da0   :  { %3222 = dma.vmem_to_hbm [thread:$0]  %s3217_s14, 64, %s5240_s24, [#allocation3], %s4198_s2, %s4198_s2, %s4206_s6  }
0x5da1   :  { %3095 = vrot.lane.b32.xlu0 %v5084_v60, %s4204_s20  ;;  %s4209_s13 = smov [#allocation7]   ;;  %s4142_s12 = scalar_lea.vmem %s3241_s30, 64 }
0x5da2   :  { %s3252_s10 = sshll.u32 %s4209_s13, 4  ;;  %p4143_p2 = scmp.ne.s32.totalorder %s3241_s30, %s4142_s12  ;;  %s3253_s10 = int_to_ptr.vmem [resolvable:$true] %s3252_s10 }
0x5da3   :  { %p4147_p3 = scmp.lt.s32.totalorder %s3241_s30, %s3241_s30  ;;  %p4148_p4 = scmp.lt.s32.totalorder %s4142_s12, %s4142_s12 }
0x5da5   :  { %p4149_p5 = por %p4148_p4, %p4147_p3 }
0x5da7   :  { %p4150_p6 = pnand %p4149_p5, %p4143_p2 }
0x5da9   :  { %4153 = shalt.err (!%p4150_p6)
}
0x5daa   :  { %s4154_s15 = scalar_lea.hbm %s5242_s26, 64 }
0x5dab   :  { %p4155_p7 = scmp.ne.s32.totalorder %s5242_s26, %s4154_s15  ;;  %p4158_p8 = scmp.lt.u32.totalorder %s4154_s15, %s5242_s26 }
0x5dad   :  { %p4160_p9 = pnand %p4158_p8, %p4155_p7 }
0x5daf   :  { %4163 = shalt.err (!%p4160_p9)
}
0x5db0   :  { %3246 = dma.vmem_to_hbm [thread:$0]  %s3241_s30, 64, %s5242_s26, [#allocation5], %s4198_s2, %s4198_s2, %s4206_s6  }
0x5db1   :  { %s4164_s14 = scalar_lea.vmem %s3253_s10, 64  ;;  %p4169_p11 = scmp.lt.s32.totalorder %s3253_s10, %s3253_s10 }
0x5db2   :  { %p4165_p10 = scmp.ne.s32.totalorder %s3253_s10, %s4164_s14  ;;  %p4170_p12 = scmp.lt.s32.totalorder %s4164_s14, %s4164_s14 }
0x5db4   :  { %p4171_p13 = por %p4170_p12, %p4169_p11 }
0x5db6   :  { %p4172_p0 = pnand %p4171_p13, %p4165_p10 }
0x5db8   :  { %4175 = shalt.err (!%p4172_p0)
}
0x5db9   :  { %s4176_s5 = scalar_lea.hbm %s5243_s27, 64 }
0x5dba   :  { %p4177_p1 = scmp.ne.s32.totalorder %s5243_s27, %s4176_s5  ;;  %p4180_p2 = scmp.lt.u32.totalorder %s4176_s5, %s5243_s27 }
0x5dbc   :  { %p4182_p3 = pnand %p4180_p2, %p4177_p1 }
0x5dbe   :  { %4185 = shalt.err (!%p4182_p3)
}
0x5dbf   :  { %3258 = dma.vmem_to_hbm [thread:$0]  %s3253_s10, 64, %s5243_s27, [#allocation8], %s4198_s2, %s4198_s2, %s4206_s6   ;;  %v3184_v26 = vcvt.f32.s32 %v5127_v19  ;;  %v3199_v33 = vcvt.f32.s32 %v5130_v20  ;;  %vm3202_vm4 = vcmask 7168  }
0x5dc1   :  { %v3185_v27 = vshll.u32 %v3184_v26, 16  ;;  %v3200_v36 = vshll.u32 %v3199_v33, 16 }
0x5e02   :  { %v3182_v28 = vpop.xlane.xlu1 %3181 }
0x5e03   :  { %v3183_v34 = vcvt.f32.s32 %v3182_v28 }
0x5e05   :  { %v3186_v37 = vadd.s32 %v3185_v27, %v3183_v34 }
0x5e06   :  { %v3197_v38 = vpop.xlane.xlu0 %3196  ;;  %v3094_v39 = vpop.permute.xlu1 %3093 }
0x5e07   :  { %3203 = vst.msk [vmem:[%s5238_s22] sm:$0xff] %vm3202_vm4, %v3186_v37  ;;  %v3198_v8 = vcvt.f32.s32 %v3197_v38 }
0x5e08   :  { %3099 = vst.msk [vmem:[%s5239_s23] sm:$0xff] %vm191_vm9, %v3094_v39 }
0x5e09   :  { %v3201_v63 = vadd.s32 %v3200_v36, %v3198_v8 }
0x5e0b   :  { %3204 = vst.msk [vmem:[%s5238_s22 + $0x8] sm:$0xff] %vm3202_vm4, %v3201_v63 }
0x5e13   :  { %v3096_v41 = vpop.permute.xlu0 %3095 }
0x5e14   :  { %3100 = vst.msk [vmem:[%s5239_s23 + $0x8] sm:$0xff] %vm191_vm9, %v3096_v41 }
0x5e15   :  { %4186 = dma.done.wait [#allocation3], 64  }
0x5e16   :  { %4187 = vsyncadd [#allocation3], 4294967232 }
0x5e17   :  { %4188 = dma.done.wait [#allocation5], 128  }
0x5e18   :  { %4189 = vsyncadd [#allocation5], 4294967168 }
0x5e19   :  { %4190 = dma.done.wait [#allocation8], 64  }
0x5e1a   :  { %4191 = vsyncadd [#allocation8], 4294967232 }
0x5e1b   :  { %3277 = vsyncpa [#allocation3], 1 }
0x5e1c   :  { %3278 = vsyncpa [#allocation5], 1 }
0x5e1d   :  { %3279 = vsyncpa [#allocation8], 1 }

</bundles_post_ra>
